<compile_context>
chip_gen: v5e
topology: v5e:2x2
jax: 0.10.0
libtpu: 0.0.40
codegen_flags: <defaults>
</compile_context>

<pallas_src>
import functools
import math

import jax
import jax.numpy as jnp
from jax.experimental import pallas as pl
from jax.experimental.pallas import tpu as pltpu


# ----------------------------------------------------------------------------
# Kernel 1: fused QKV projection.
# ----------------------------------------------------------------------------
def _qkv_proj_kernel(scale, x_ref, w_ref, b_ref, q_ref, k_ref, v_ref):
    # x_ref: (tm, C) f32,  w_ref: (C, 3C) bf16,  b_ref: (1, 3C) f32
    # outputs: q/k/v (tm, C) bf16  (q pre-scaled by 1/sqrt(head_dim))
    C = q_ref.shape[-1]
    x = x_ref[...].astype(jnp.bfloat16)
    qkv = jnp.dot(x, w_ref[...], preferred_element_type=jnp.float32)
    qkv = qkv + b_ref[...]
    q_ref[...] = (qkv[:, :C] * scale).astype(q_ref.dtype)
    k_ref[...] = qkv[:, C:2 * C].astype(k_ref.dtype)
    v_ref[...] = qkv[:, 2 * C:].astype(v_ref.dtype)


# ----------------------------------------------------------------------------
# Kernel 2: causal flash attention + fused output projection.
# ----------------------------------------------------------------------------
def _flash_attn_kernel(n_head, tq, tk,
                       q_ref, k_ref, v_ref, wproj_ref, bproj_ref, o_ref,
                       m_sc, l_sc, acc_sc):
    qi = pl.program_id(1)
    ki = pl.program_id(2)
    C = q_ref.shape[-1]
    hd = C // n_head

    @pl.when(ki == 0)
    def _init():
        # Finite large-negative (not -inf) so exp() of masked/initial rows is
        # exactly 0 and never produces NaN.
        m_sc[...] = jnp.full_like(m_sc, -1e30)
        l_sc[...] = jnp.zeros_like(l_sc)
        acc_sc[...] = jnp.zeros_like(acc_sc)

    # Causal block skip: kv tiles strictly above the diagonal do no work
    # (their DMA is also skipped because the kv index_map clamps to qi).
    @pl.when(ki <= qi)
    def _compute():
        q = q_ref[...]          # (tq, C) bf16, already scaled by 1/sqrt(hd)
        k = k_ref[...]          # (tk, C) bf16
        v = v_ref[...]          # (tk, C) bf16

        # Element-level mask is only actually needed on the diagonal tile.
        row = jax.lax.broadcasted_iota(jnp.int32, (tq, tk), 0)
        col = jax.lax.broadcasted_iota(jnp.int32, (tq, tk), 1)
        allowed = jnp.logical_or(ki < qi, col <= row)

        for h in range(n_head):                       # static unroll, nh small
            sl = slice(h * hd, (h + 1) * hd)

            # scores: (tq, tk) = q_h @ k_h^T   (bf16 MXU, f32 accumulate)
            s = jax.lax.dot_general(
                q[:, sl], k[:, sl], (((1,), (1,)), ((), ())),
                preferred_element_type=jnp.float32)
            s = jnp.where(allowed, s, -1e30)

            m_prev = m_sc[h]                           # (tq, 1)
            m_new = jnp.maximum(m_prev, jnp.max(s, axis=-1, keepdims=True))
            alpha = jnp.exp(m_prev - m_new)            # rescale factor
            p = jnp.exp(s - m_new)                     # unnormalized probs

            l_sc[h] = alpha * l_sc[h] + jnp.sum(p, axis=-1, keepdims=True)
            m_sc[h] = m_new

            # head output written in place into the packed (tq, C) accumulator
            acc_sc[:, sl] = alpha * acc_sc[:, sl] + jnp.dot(
                p.astype(jnp.bfloat16), v[:, sl],
                preferred_element_type=jnp.float32)

    @pl.when(ki == pl.num_programs(2) - 1)
    def _finalize():
        # Normalize once, after all PV matmuls (EUP reciprocal ~ free slot).
        for h in range(n_head):
            sl = slice(h * hd, (h + 1) * hd)
            acc_sc[:, sl] = acc_sc[:, sl] * pl.reciprocal(l_sc[h], approx=True)
        # Fused output projection for this q tile.
        y = acc_sc[...].astype(jnp.bfloat16)           # (tq, C)
        out = jnp.dot(y, wproj_ref[...], preferred_element_type=jnp.float32)
        o_ref[...] = (out + bproj_ref[...]).astype(o_ref.dtype)


# ----------------------------------------------------------------------------
# Wrapper.
# ----------------------------------------------------------------------------
def causal_self_attention(x, w_qkv, b_qkv, w_proj, b_proj, n_head,
                          *, q_tile=128, kv_tile=128, proj_tile=128):
    """x: (B, T, C) float32; weights in (in, out) layout; biases 1-D."""
    B, T, C = x.shape
    assert C % n_head == 0
    hd = C // n_head
    assert q_tile == kv_tile, "causal block skip assumes square q/kv tiles"
    assert T % q_tile == 0 and T % proj_tile == 0
    assert C % 128 == 0 and q_tile % 128 == 0, "lane/sublane aligned tiles"
    scale = 1.0 / math.sqrt(hd)

    # bf16 weights feed the MXU; biases stay f32 (added post-accumulation).
    w_qkv_b = w_qkv.astype(jnp.bfloat16)
    w_proj_b = w_proj.astype(jnp.bfloat16)
    b_qkv_2d = b_qkv.reshape(1, 3 * C).astype(jnp.float32)
    b_proj_2d = b_proj.reshape(1, C).astype(jnp.float32)

    # ---------------- kernel 1: QKV projection ----------------
    nt = T // proj_tile
    proj_cost = pl.CostEstimate(
        flops=2 * B * T * C * 3 * C,
        transcendentals=0,
        bytes_accessed=B * T * C * 4 + C * 3 * C * 2 + 3 * B * T * C * 2)

    q, k, v = pl.pallas_call(
        functools.partial(_qkv_proj_kernel, scale),
        out_shape=(jax.ShapeDtypeStruct((B, T, C), jnp.bfloat16),
                   jax.ShapeDtypeStruct((B, T, C), jnp.bfloat16),
                   jax.ShapeDtypeStruct((B, T, C), jnp.bfloat16)),
        grid_spec=pltpu.PrefetchScalarGridSpec(
            num_scalar_prefetch=0,
            grid=(B, nt),
            in_specs=[
                pl.BlockSpec((None, proj_tile, C), lambda b, i: (b, i, 0)),
                pl.BlockSpec((C, 3 * C), lambda b, i: (0, 0)),
                pl.BlockSpec((1, 3 * C), lambda b, i: (0, 0)),
            ],
            out_specs=[
                pl.BlockSpec((None, proj_tile, C), lambda b, i: (b, i, 0)),
                pl.BlockSpec((None, proj_tile, C), lambda b, i: (b, i, 0)),
                pl.BlockSpec((None, proj_tile, C), lambda b, i: (b, i, 0)),
            ],
        ),
        compiler_params=pltpu.CompilerParams(
            dimension_semantics=("parallel", "parallel")),
        cost_estimate=proj_cost,
    )(x, w_qkv_b, b_qkv_2d)

    # ---------------- kernel 2: flash attention + output projection ----------
    nq = T // q_tile
    nk = T // kv_tile
    attn_cost = pl.CostEstimate(
        flops=2 * (2 * B * n_head * T * T * hd) + 2 * B * T * C * C,
        transcendentals=B * n_head * T * T,
        bytes_accessed=3 * B * T * C * 2 + B * T * C * 4 + C * C * 2)

    out = pl.pallas_call(
        functools.partial(_flash_attn_kernel, n_head, q_tile, kv_tile),
        out_shape=jax.ShapeDtypeStruct((B, T, C), x.dtype),
        grid_spec=pltpu.PrefetchScalarGridSpec(
            num_scalar_prefetch=0,
            grid=(B, nq, nk),
            in_specs=[
                pl.BlockSpec((None, q_tile, C),
                             lambda b, qi, ki: (b, qi, 0)),
                # kv index clamped to the diagonal -> no DMA for skipped tiles
                pl.BlockSpec((None, kv_tile, C),
                             lambda b, qi, ki: (b, jnp.minimum(ki, qi), 0)),
                pl.BlockSpec((None, kv_tile, C),
                             lambda b, qi, ki: (b, jnp.minimum(ki, qi), 0)),
                pl.BlockSpec((C, C), lambda b, qi, ki: (0, 0)),
                pl.BlockSpec((1, C), lambda b, qi, ki: (0, 0)),
            ],
            out_specs=pl.BlockSpec((None, q_tile, C),
                                   lambda b, qi, ki: (b, qi, 0)),
            scratch_shapes=[
                pltpu.VMEM((n_head, q_tile, 1), jnp.float32),   # running max
                pltpu.VMEM((n_head, q_tile, 1), jnp.float32),   # running sum
                pltpu.VMEM((q_tile, C), jnp.float32),           # packed acc
            ],
        ),
        compiler_params=pltpu.CompilerParams(
            dimension_semantics=("parallel", "parallel", "arbitrary")),
        cost_estimate=attn_cost,
    )(q, k, v, w_proj_b, b_proj_2d)

    return out


# ----------------------------------------------------------------------------
# Pure-JAX reference mirroring the PyTorch forward (f32 throughout).
# ----------------------------------------------------------------------------
def reference(x, w_qkv, b_qkv, w_proj, b_proj, n_head):
    B, T, C = x.shape
    hd = C // n_head
    qkv = x @ w_qkv + b_qkv
    q, k, v = jnp.split(qkv, 3, axis=-1)
    q = q.reshape(B, T, n_head, hd).transpose(0, 2, 1, 3)
    k = k.reshape(B, T, n_head, hd).transpose(0, 2, 1, 3)
    v = v.reshape(B, T, n_head, hd).transpose(0, 2, 1, 3)
    att = jnp.einsum("bhqd,bhkd->bhqk", q, k) * (1.0 / math.sqrt(hd))
    mask = jnp.tril(jnp.ones((T, T), dtype=bool))
    att = jnp.where(mask[None, None], att, -jnp.inf)
    att = jax.nn.softmax(att, axis=-1)
    y = jnp.einsum("bhqk,bhkd->bhqd", att, v)
    y = y.transpose(0, 2, 1, 3).reshape(B, T, C)
    return y @ w_proj + b_proj


if __name__ == "__main__":
    # GPTConfig dims (n_head=6, n_embd=384); T kept small but multi-tile so the
    # online-softmax accumulation and causal block skipping are exercised.
    B, T = 2, 256
    n_head = 6
    n_embd = 384

    key = jax.random.PRNGKey(0)
    kx, k1, k2, k3, k4 = jax.random.split(key, 5)

    x = jax.random.normal(kx, (B, T, n_embd), dtype=jnp.float32)

    bound = 1.0 / math.sqrt(n_embd)
    w_qkv = jax.random.uniform(k1, (n_embd, 3 * n_embd), jnp.float32, -bound, bound)
    b_qkv = jax.random.uniform(k2, (3 * n_embd,), jnp.float32, -bound, bound)
    w_proj = jax.random.uniform(k3, (n_embd, n_embd), jnp.float32, -bound, bound)
    b_proj = jax.random.uniform(k4, (n_embd,), jnp.float32, -bound, bound)

    out = causal_self_attention(x, w_qkv, b_qkv, w_proj, b_proj, n_head)
    out = jax.block_until_ready(out)

    ref = reference(x, w_qkv, b_qkv, w_proj, b_proj, n_head)
    assert out.shape == (B, T, n_embd)
    # bf16 MXU inputs with f32 accumulation -> compare with a loose tolerance.
    assert jnp.allclose(out, ref, atol=5e-2, rtol=5e-2), "mismatch vs reference"

    print("KERNEL_OK")
</pallas_src>

<mosaic_0001>
module attributes {stable_mosaic.version = 11 : i64} {
  func.func @_qkv_proj_kernel(%arg0: i32, %arg1: i32, %arg2: memref<1x128x384xf32, #tpu.memory_space<vmem>>, %arg3: memref<384x1152xbf16, #tpu.memory_space<vmem>>, %arg4: memref<1x1152xf32, #tpu.memory_space<vmem>>, %arg5: memref<1x128x384xbf16, #tpu.memory_space<vmem>>, %arg6: memref<1x128x384xbf16, #tpu.memory_space<vmem>>, %arg7: memref<1x128x384xbf16, #tpu.memory_space<vmem>>) attributes {dimension_semantics = [#tpu.dimension_semantics<parallel>, #tpu.dimension_semantics<parallel>], iteration_bounds = array<i64: 2, 2>, scalar_prefetch = 0 : i64, scratch_operands = 0 : i64, tpu.core_type = #tpu.core_type<tc>, window_params = [{transform_indices = @transform_0, window_bounds = array<i64: 1, 128, 384>}, {pipeline_mode = #tpu.pipeline_mode<synchronous>, transform_indices = @transform_1, window_bounds = array<i64: 384, 1152>}, {pipeline_mode = #tpu.pipeline_mode<synchronous>, transform_indices = @transform_2, window_bounds = array<i64: 1, 1152>}, {transform_indices = @transform_3, window_bounds = array<i64: 1, 128, 384>}, {transform_indices = @transform_4, window_bounds = array<i64: 1, 128, 384>}, {transform_indices = @transform_5, window_bounds = array<i64: 1, 128, 384>}]} {
    %c0 = arith.constant 0 : index
    %c0_0 = arith.constant 0 : index
    %c0_1 = arith.constant 0 : index
    %0 = vector.load %arg2[%c0, %c0_0, %c0_1] : memref<1x128x384xf32, #tpu.memory_space<vmem>>, vector<1x128x384xf32>
    %1 = vector.shape_cast %0 : vector<1x128x384xf32> to vector<128x384xf32>
    %2 = arith.truncf %1 : vector<128x384xf32> to vector<128x384xbf16>
    %c0_2 = arith.constant 0 : index
    %c0_3 = arith.constant 0 : index
    %3 = vector.load %arg3[%c0_2, %c0_3] : memref<384x1152xbf16, #tpu.memory_space<vmem>>, vector<384x1152xbf16>
    %cst = arith.constant dense<0.000000e+00> : vector<128x1152xf32>
    %4 = tpu.matmul %2, %3, %cst {dimension_numbers = #tpu.dot_dimension_numbers<[1], [0], [0], [1], [0, 0, 1, 1], [], []>} : vector<128x384xbf16>, vector<384x1152xbf16>, vector<128x1152xf32> -> vector<128x1152xf32>
    %c0_4 = arith.constant 0 : index
    %c0_5 = arith.constant 0 : index
    %5 = vector.load %arg4[%c0_4, %c0_5] : memref<1x1152xf32, #tpu.memory_space<vmem>>, vector<1x1152xf32>
    %6 = vector.broadcast %5 : vector<1x1152xf32> to vector<128x1152xf32>
    %7 = arith.addf %4, %6 : vector<128x1152xf32>
    %8 = vector.extract_strided_slice %7 {offsets = [0, 0], sizes = [128, 384], strides = [1, 1]} : vector<128x1152xf32> to vector<128x384xf32>
    %cst_6 = arith.constant 1.250000e-01 : f32
    %9 = vector.broadcast %cst_6 : f32 to vector<128x384xf32>
    %10 = arith.mulf %8, %9 : vector<128x384xf32>
    %11 = arith.truncf %10 : vector<128x384xf32> to vector<128x384xbf16>
    %c0_7 = arith.constant 0 : index
    %c0_8 = arith.constant 0 : index
    %c0_9 = arith.constant 0 : index
    %12 = vector.load %arg5[%c0_7, %c0_8, %c0_9] : memref<1x128x384xbf16, #tpu.memory_space<vmem>>, vector<1x128x384xbf16>
    %13 = vector.shape_cast %12 : vector<1x128x384xbf16> to vector<128x384xbf16>
    %14 = vector.shape_cast %11 : vector<128x384xbf16> to vector<1x128x384xbf16>
    tpu.vector_store %arg5[%c0_7, %c0_8, %c0_9], %14 {strides = array<i32>} : memref<1x128x384xbf16, #tpu.memory_space<vmem>>, vector<1x128x384xbf16>,
    %15 = vector.extract_strided_slice %7 {offsets = [0, 384], sizes = [128, 384], strides = [1, 1]} : vector<128x1152xf32> to vector<128x384xf32>
    %16 = arith.truncf %15 : vector<128x384xf32> to vector<128x384xbf16>
    %c0_10 = arith.constant 0 : index
    %c0_11 = arith.constant 0 : index
    %c0_12 = arith.constant 0 : index
    %17 = vector.load %arg6[%c0_10, %c0_11, %c0_12] : memref<1x128x384xbf16, #tpu.memory_space<vmem>>, vector<1x128x384xbf16>
    %18 = vector.shape_cast %17 : vector<1x128x384xbf16> to vector<128x384xbf16>
    %19 = vector.shape_cast %16 : vector<128x384xbf16> to vector<1x128x384xbf16>
    tpu.vector_store %arg6[%c0_10, %c0_11, %c0_12], %19 {strides = array<i32>} : memref<1x128x384xbf16, #tpu.memory_space<vmem>>, vector<1x128x384xbf16>,
    %20 = vector.extract_strided_slice %7 {offsets = [0, 768], sizes = [128, 384], strides = [1, 1]} : vector<128x1152xf32> to vector<128x384xf32>
    %21 = arith.truncf %20 : vector<128x384xf32> to vector<128x384xbf16>
    %c0_13 = arith.constant 0 : index
    %c0_14 = arith.constant 0 : index
    %c0_15 = arith.constant 0 : index
    %22 = vector.load %arg7[%c0_13, %c0_14, %c0_15] : memref<1x128x384xbf16, #tpu.memory_space<vmem>>, vector<1x128x384xbf16>
    %23 = vector.shape_cast %22 : vector<1x128x384xbf16> to vector<128x384xbf16>
    %24 = vector.shape_cast %21 : vector<128x384xbf16> to vector<1x128x384xbf16>
    tpu.vector_store %arg7[%c0_13, %c0_14, %c0_15], %24 {strides = array<i32>} : memref<1x128x384xbf16, #tpu.memory_space<vmem>>, vector<1x128x384xbf16>,
    return
  }
  func.func @transform_0(%arg0: i32, %arg1: i32) -> (i32, i32, i32) {
    %c0_i32 = arith.constant 0 : i32
    %c0_i32_0 = arith.constant 0 : i32
    return %arg0, %arg1, %c0_i32 : i32, i32, i32
  }
  func.func @transform_1(%arg0: i32, %arg1: i32) -> (i32, i32) {
    %c0_i32 = arith.constant 0 : i32
    %c0_i32_0 = arith.constant 0 : i32
    %c0_i32_1 = arith.constant 0 : i32
    return %c0_i32, %c0_i32_0 : i32, i32
  }
  func.func @transform_2(%arg0: i32, %arg1: i32) -> (i32, i32) {
    %c0_i32 = arith.constant 0 : i32
    %c0_i32_0 = arith.constant 0 : i32
    %c0_i32_1 = arith.constant 0 : i32
    return %c0_i32, %c0_i32_0 : i32, i32
  }
  func.func @transform_3(%arg0: i32, %arg1: i32) -> (i32, i32, i32) {
    %c0_i32 = arith.constant 0 : i32
    %c0_i32_0 = arith.constant 0 : i32
    return %arg0, %arg1, %c0_i32 : i32, i32, i32
  }
  func.func @transform_4(%arg0: i32, %arg1: i32) -> (i32, i32, i32) {
    %c0_i32 = arith.constant 0 : i32
    %c0_i32_0 = arith.constant 0 : i32
    return %arg0, %arg1, %c0_i32 : i32, i32, i32
  }
  func.func @transform_5(%arg0: i32, %arg1: i32) -> (i32, i32, i32) {
    %c0_i32 = arith.constant 0 : i32
    %c0_i32_0 = arith.constant 0 : i32
    return %arg0, %arg1, %c0_i32 : i32, i32, i32
  }
}

</mosaic_0001>

<bundles_post_ra>
// kernel: tpu_custom_call.1
= control target key start
LH: loop header
LB: loop body
LE: loop exit
PB: predicated region body
PF: predicated region fallthrough
CT: control target
= control target key end

     0   :  { %s6313_s0 = inlined_call_operand.hbm [shape: f32[2,256,384], index: 0, kind: input, shape index: {}]   ;;  %s6314_s1 = inlined_call_operand.hbm [shape: bf16[384,1152], index: 1, kind: input, shape index: {}]   ;;  %s6315_s2 = inlined_call_operand.hbm [shape: f32[1,1152], index: 2, kind: input, shape index: {}]   ;;  %s6316_s3 = inlined_call_operand.hbm [shape: bf16[2,256,384], index: 3, kind: output, shape index: {0}]   ;;  %s6317_s4 = inlined_call_operand.hbm [shape: bf16[2,256,384], index: 4, kind: output, shape index: {1}]   ;;  %s6318_s5 = inlined_call_operand.hbm [shape: bf16[2,256,384], index: 5, kind: output, shape index: {2}]  }
   0x1   :  { %6329 = sst [smem:[#allocation23_spill]] %s6314_s1 }
   0x2   :  { %6330 = sst [smem:[#allocation24_spill]] %s6315_s2 }
   0x3   :  { %6331 = sst [smem:[#allocation25_spill]] %s6316_s3 }
   0x4   :  { %6332 = sst [smem:[#allocation26_spill]] %s6318_s5 }
   0x5   :  { %11 = vsyncpa [#allocation3], 0 }
   0x6   :  { %13 = vsyncpa [#allocation3 + $0x1], 0 }
   0x7   :  { %14 = vsyncpa [#allocation6], 0 }
   0x8   :  { %15 = vsyncpa [#allocation4], 0 }
   0x9   :  { %17 = vsyncpa [#allocation4 + $0x1], 0 }
   0xa   :  { %18 = vsyncpa [#allocation10], 0 }
   0xb   :  { %20 = vsyncpa [#allocation10 + $0x1], 0  ;;  %s5117_s18 = smov 0   ;;  %s5119_s19 = smov 0  }
   0xc   :  { %s5121_s20 = smov 0   ;;  %s5123_s21 = smov 0  }
   0xd   :  { %s5125_s22 = smov 0   ;;  %s5127_s23 = smov 0  }
   0xe   :  { %s5129_s24 = smov 0   ;;  %s5131_s25 = smov 0  }
   0xf LB: > { %6333 = sst [smem:[#allocation16_spill]] %s5049_s18  ;;  %s5158_s26 = sadd.s32 4294967295, %s5077_s25   ;;  %s5077_s25 = sphi %s5131_s25, %s26_s25   ;;  %s5073_s24 = sphi %s5129_s24, %s6362_s24   ;;  %s5069_s23 = sphi %s5127_s23, %s6356_s23   ;;  %s5065_s22 = sphi %s5125_s22, %s6361_s22   ;;  %s5061_s21 = sphi %s5123_s21, %s6355_s21   ;;  %s5057_s20 = sphi %s5121_s20, %s6360_s20   ;;  %s5053_s19 = sphi %s5119_s19, %s6359_s19   ;;  %s5049_s18 = sphi %s5117_s18, %s6358_s18  }
  0x10   : > { %6334 = sst [smem:[#allocation17_spill]] %s5069_s23  ;;  %s6319_s27 = sadd.s32 4294967294, %s5077_s25  }
  0x11   : > { %6335 = sst [smem:[#allocation18_spill]] %s5077_s25  ;;  %p60_p0 = scmp.ne.s32.totalorder %s5053_s19, %s5049_s18 }
  0x12   : > { %p61_p1 = scmp.eq.s32.totalorder %s5158_s26, 0  ;;  %p128_p2 = scmp.eq.s32.totalorder %s5158_s26, 3 }
  0x13   : > { %p134_p3 = scmp.eq.s32.totalorder %s6319_s27, 3  ;;  %p3571_p5 = scmp.ge.s32.totalorder %s5077_s25, 1 }
  0x14   : > { %p5169_p4 = por %p61_p1, %p60_p0  ;;  %p197_p7 = scmp.lt.s32.totalorder %s5077_s25, 5 }
  0x15   : > { %p5174_p6 = por %p134_p3, %p60_p0  ;;  %s6339_s1 = sld [smem:[#allocation23_spill]] }
  0x16   : > { %p5182_p8 = pnand %p3571_p5, %p197_p7  ;;  %s5079_s9 = smov [#allocation5]  }
  0x17   : > { %s6337_s29 = scalar_select %p5174_p6, 1, 0 }
  0x18   : > { %p4723_p9 = pneg %p5182_p8  ;;  %s210_s10 = sshll.u32 %s5079_s9, 4  ;;  %s211_s10 = int_to_ptr.vmem [resolvable:$true] %s210_s10 }
  0x19   : > { %6338 = sst [smem:[#allocation19_spill]] %s6337_s29  ;;  %s5080_s14 = smov 576  }
  0x1a   : > { %p4724_p10 = pnand %p4723_p9, %p61_p1  ;;  %s6341_s2 = sld [smem:[#allocation24_spill]] }
  0x1b   : > { %s208_s7 = sshll.u32 %s6339_s1, 4  ;;  %s5081_s15 = smov 36   ;;  %s209_s7 = int_to_ptr.hbm [resolvable:$true] %s208_s7 }
  0x1c   : > { %4726 = dma.hbm_to_vmem [thread:$0]  (!%p4724_p10), %s209_s7, 27648, %s211_s10, [#allocation6], %s5080_s14, %s5080_s14, %s5081_s15  }
  0x1d   : > { %s5082_s16 = smov [#allocation7]   ;;  %s35_s30 = sadd.s32 1, %s5069_s23 }
  0x1e   : > { %s225_s17 = sshll.u32 %s5082_s16, 4  ;;  %s38_s6 = sadd.s32 1, %s5073_s24  ;;  %s226_s17 = int_to_ptr.vmem [resolvable:$true] %s225_s17 }
  0x1f   : > { %p36_p11 = scmp.ge.s32.totalorder %s35_s30, 2  ;;  %s47_s9 = sadd.s32 1, %s5057_s20 }
  0x20   : > { %s223_s13 = sshll.u32 %s6341_s2, 4  ;;  %p54_p12 = scmp.ne.s32.totalorder %s5057_s20, %s5053_s19  ;;  %s224_s13 = int_to_ptr.hbm [resolvable:$true] %s223_s13 }
  0x21   : > { %4729 = dma.hbm_to_vmem [thread:$0]  (!%p4724_p10), %s224_s13, 144, %s226_s17, [#allocation6]  }
  0x22   : > { %p55_p13 = scmp.eq.s32.totalorder %s5077_s25, 0  ;;  %s6364_s30 = smov (%p36_p11, %s35_s30), 0 }
  0x23   : > { %6342 = sst [smem:[#allocation20_spill]] %s6364_s30  ;;  %s6366_s6 = smov (!%p36_p11, %s38_s6), %s5073_s24 }
  0x24   : > { %s43_s7 = ssub.s32 %s5069_s23, %s6364_s30  ;;  %p5204_p0 = por %p55_p13, %p54_p12 }
  0x25   : > { %p40_p3 = scmp.ge.s32.totalorder %s6366_s6, 2  ;;  %p5210_p5 = por %p128_p2, %p54_p12 }
  0x26   : > { %p4746_p7 = scmp.lt.s32.totalorder %s5077_s25, 4  ;;  %s236_s12 = sand.u32 1, %s5057_s20  }
  0x27   : > { %s6368_s6 = smov (%p40_p3, %s6366_s6), 0  ;;  %s4696_s13 = smul.u32 384, %s236_s12 }
  0x28   : > { %6345 = sst [smem:[#allocation21_spill]] %s6368_s6  ;;  %s42_s14 = ssub.s32 %s5073_s24, %s6368_s6 }
  0x29   : > { %s4697_s15 = smul.u32 48, %s5069_s23  ;;  %s44_s16 = sor.u32 %s43_s7, %s42_s14 }
  0x2a   : > { %p45_p9 = scmp.eq.s32.totalorder %s44_s16, 0  ;;  %s4698_s17 = smul.u32 96, %s5073_s24 }
  0x2b   : > { %s240_s27 = scalar_lea.vmem [#allocation2], %s4696_s13  ;;  %p4731_p10 = pnand %p4746_p7, %p5204_p0 }
  0x2c   : > { %s251_s1 = sshll.u32 %s240_s27, 4  ;;  %s246_s30 = sadd.s32 %s4698_s17, %s4697_s15  ;;  %s252_s1 = int_to_ptr.vmem [resolvable:$true] %s251_s1 }
  0x2d   : > { %s5225_s2 = scalar_select %p45_p9, %s5057_s20, %s47_s9  }
  0x2e   : > { %s3577_s29 = sshll.u32 %s246_s30, 3  ;;  %s237_s6 = scalar_lea.sflag [#allocation3], %s236_s12 }
  0x2f   : > { %s248_s5 = scalar_lea.hbm %s6313_s0, %s3577_s29  ;;  %s5083_s23 = smov 384  }
  0x30   : > { %s249_s3 = sshll.u32 %s248_s5, 4  ;;  %s5084_s7 = smov 24   ;;  %s250_s3 = int_to_ptr.hbm [resolvable:$true] %s249_s3 }
  0x31   : > { %4733 = dma.hbm_to_vmem [thread:$0]  (!%p4731_p10), %s250_s3, 6144, %s252_s1, %s237_s6, %s5083_s23, %s5083_s23, %s5084_s7  }
  0x32   : > { %263 = sbr.rel (%p5182_p8) target bundleno = 1108 (0x454), region = 32 }
  0x37   : > { %s5233_s27 = sand.u32 1, %s5053_s19  }
  0x38   : > { %s4699_s30 = smul.u32 384, %s5233_s27  ;;  %s266_s9 = scalar_lea.sflag [#allocation3], %s5233_s27 }
  0x3a   : > { %s5237_s10 = scalar_lea.vmem [#allocation2], %s4699_s30 }
  0x3b   : > { %5032 = dma.done.wait (%p5169_p4), %s266_s9, 6144  }
  0x3c   : > { %5034 = vsyncadd (%p5169_p4), %s266_s9, 4294961152 }
  0x3d   : > { %5036 = dma.done.wait (%p61_p1), [#allocation6], 27792  }
  0x3e   : > { %5038 = vsyncadd (%p61_p1), [#allocation6], 4294939504  ;;  %v3835_v0 = vld [vmem:[#allocation5 + $0x1f8] sm:$0xf]  ;;  %v4523_v1 = vld [vmem:[#allocation5 + $0x218] sm:$0xf0] }
  0x3f   : > { %v4123_v2 = vld [vmem:[#allocation5 + $0x438] sm:$0xf]  ;;  %v3836_v3 = vor.u32 %v4523_v1, %v3835_v0  ;;  %v4595_v4 = vld [vmem:[#allocation5 + $0x458] sm:$0xf0]  ;;  %v3799_v9 = vld [vmem:[#allocation5 + $0x1b0] sm:$0xf] }
  0x40   : > { %v4411_v5 = vld [vmem:[#allocation5 + $0x678] sm:$0xf]  ;;  %v4667_v6 = vld [vmem:[#allocation5 + $0x698] sm:$0xf0]  ;;  %v5247_v7 = vor.u32 %v4595_v4, %v4123_v2  ;;  %v4514_v10 = vld [vmem:[#allocation5 + $0x1d0] sm:$0xf0] }
  0x41   : > { %v5249_v8 = vor.u32 %v4667_v6, %v4411_v5  ;;  %v4087_v11 = vld [vmem:[#allocation5 + $0x3f0] sm:$0xf]  ;;  %1759 = vmatpush.bf16.msra.mxu0 %v3836_v3  ;;  %4672 = vmatpush.bf16.msra.mxu3 %v3836_v3  ;;  %v3800_v12 = vor.u32 %v4514_v10, %v3799_v9  ;;  %v4586_v13 = vld [vmem:[#allocation5 + $0x410] sm:$0xf0]  ;;  %v3763_v18 = vld [vmem:[#allocation5 + $0x168] sm:$0xf] }
  0x42   : > { %v4375_v14 = vld [vmem:[#allocation5 + $0x630] sm:$0xf]  ;;  %v4658_v15 = vld [vmem:[#allocation5 + $0x650] sm:$0xf0]  ;;  %4680 = vmatpush.bf16.msra.mxu1 %v5247_v7  ;;  %v5253_v16 = vor.u32 %v4586_v13, %v4087_v11  ;;  %v4505_v19 = vld [vmem:[#allocation5 + $0x188] sm:$0xf0] }
  0x43   : > { %4688 = vmatpush.bf16.msra.mxu2 %v5249_v8  ;;  %v5255_v17 = vor.u32 %v4658_v15, %v4375_v14  ;;  %v4051_v20 = vld [vmem:[#allocation5 + $0x3a8] sm:$0xf]  ;;  %v4577_v21 = vld [vmem:[#allocation5 + $0x3c8] sm:$0xf0]  ;;  %v3764_v24 = vor.u32 %v4505_v19, %v3763_v18  ;;  %v3727_v27 = vld [vmem:[#allocation5 + $0x120] sm:$0xf] }
  0x44   : > { %v4339_v22 = vld [vmem:[#allocation5 + $0x5e8] sm:$0xf]  ;;  %v4649_v23 = vld [vmem:[#allocation5 + $0x608] sm:$0xf0]  ;;  %v5259_v25 = vor.u32 %v4577_v21, %v4051_v20  ;;  %v4496_v28 = vld [vmem:[#allocation5 + $0x140] sm:$0xf0] }
  0x45   : > { %1760 = vmatpush.bf16.msra.mxu0 %v3800_v12  ;;  %4673 = vmatpush.bf16.msra.mxu3 %v3800_v12  ;;  %v5261_v26 = vor.u32 %v4649_v23, %v4339_v22  ;;  %v4015_v29 = vld [vmem:[#allocation5 + $0x360] sm:$0xf]  ;;  %v4568_v30 = vld [vmem:[#allocation5 + $0x380] sm:$0xf0]  ;;  %v3728_v33 = vor.u32 %v4496_v28, %v3727_v27  ;;  %v3691_v36 = vld [vmem:[#allocation5 + $0xd8] sm:$0xf] }
  0x46   : > { %4681 = vmatpush.bf16.msra.mxu1 %v5253_v16  ;;  %v4303_v31 = vld [vmem:[#allocation5 + $0x5a0] sm:$0xf]  ;;  %v4640_v32 = vld [vmem:[#allocation5 + $0x5c0] sm:$0xf0]  ;;  %v5265_v34 = vor.u32 %v4568_v30, %v4015_v29  ;;  %v4487_v37 = vld [vmem:[#allocation5 + $0xf8] sm:$0xf0] }
  0x47   : > { %4689 = vmatpush.bf16.msra.mxu2 %v5255_v17  ;;  %v5267_v35 = vor.u32 %v4640_v32, %v4303_v31  ;;  %v3979_v38 = vld [vmem:[#allocation5 + $0x318] sm:$0xf]  ;;  %v4559_v39 = vld [vmem:[#allocation5 + $0x338] sm:$0xf0]  ;;  %v3692_v42 = vor.u32 %v4487_v37, %v3691_v36  ;;  %v3655_v45 = vld [vmem:[#allocation5 + $0x90] sm:$0xf] }
  0x48   : > { %v4267_v40 = vld [vmem:[#allocation5 + $0x558] sm:$0xf]  ;;  %v4631_v41 = vld [vmem:[#allocation5 + $0x578] sm:$0xf0]  ;;  %v5271_v43 = vor.u32 %v4559_v39, %v3979_v38  ;;  %v4478_v46 = vld [vmem:[#allocation5 + $0xb0] sm:$0xf0] }
  0x49   : > { %1761 = vmatpush.bf16.msra.mxu0 %v3764_v24  ;;  %4674 = vmatpush.bf16.msra.mxu3 %v3764_v24  ;;  %v5273_v44 = vor.u32 %v4631_v41, %v4267_v40  ;;  %v3943_v47 = vld [vmem:[#allocation5 + $0x2d0] sm:$0xf]  ;;  %v4550_v48 = vld [vmem:[#allocation5 + $0x2f0] sm:$0xf0]  ;;  %v3656_v51 = vor.u32 %v4478_v46, %v3655_v45  ;;  %v3619_v54 = vld [vmem:[#allocation5 + $0x48] sm:$0xf] }
  0x4a   : > { %4682 = vmatpush.bf16.msra.mxu1 %v5259_v25  ;;  %v4231_v49 = vld [vmem:[#allocation5 + $0x510] sm:$0xf]  ;;  %v4622_v50 = vld [vmem:[#allocation5 + $0x530] sm:$0xf0]  ;;  %v5277_v52 = vor.u32 %v4550_v48, %v3943_v47  ;;  %v4469_v55 = vld [vmem:[#allocation5 + $0x68] sm:$0xf0] }
  0x4b   : > { %4690 = vmatpush.bf16.msra.mxu2 %v5261_v26  ;;  %v5279_v53 = vor.u32 %v4622_v50, %v4231_v49  ;;  %v3907_v56 = vld [vmem:[#allocation5 + $0x288] sm:$0xf]  ;;  %v4541_v57 = vld [vmem:[#allocation5 + $0x2a8] sm:$0xf0]  ;;  %v3620_v60 = vor.u32 %v4469_v55, %v3619_v54  ;;  %v3583_v61 = vld [vmem:[#allocation5] sm:$0xf] }
  0x4c   : > { %v4195_v58 = vld [vmem:[#allocation5 + $0x4c8] sm:$0xf]  ;;  %v4613_v59 = vld [vmem:[#allocation5 + $0x4e8] sm:$0xf0]  ;;  %v4460_v62 = vld [vmem:[#allocation5 + $0x20] sm:$0xf0]  ;;  %v5283_v0 = vor.u32 %v4541_v57, %v3907_v56 }
  0x4d   : > { %1762 = vmatpush.bf16.msra.mxu0 %v3728_v33  ;;  %4675 = vmatpush.bf16.msra.mxu3 %v3728_v33  ;;  %v3871_v63 = vld [vmem:[#allocation5 + $0x240] sm:$0xf]  ;;  %v5285_v1 = vor.u32 %v4613_v59, %v4195_v58  ;;  %v4532_v2 = vld [vmem:[#allocation5 + $0x260] sm:$0xf0]  ;;  %v324_v6 = vld [vmem:[%s5237_s10 + $0x18] sm:$0xff]  ;;  %v3584_v13 = vor.u32 %v4460_v62, %v3583_v61  ;;  %s5545_s1 = smul.u32 192, %s5233_s27 }
  0x4e   : > { %4683 = vmatpush.bf16.msra.mxu1 %v5265_v34  ;;  %v4159_v3 = vld [vmem:[#allocation5 + $0x480] sm:$0xf]  ;;  %v4604_v4 = vld [vmem:[#allocation5 + $0x4a0] sm:$0xf0]  ;;  %v4519_v9 = vld [vmem:[#allocation5 + $0x1fc] sm:$0xf]  ;;  %v5294_v19 = vor.u32 %v4532_v2, %v3871_v63 }
  0x4f   : > { %4691 = vmatpush.bf16.msra.mxu2 %v5267_v35  ;;  %v321_v5 = vld [vmem:[%s5237_s10] sm:$0xff]  ;;  %v336_v15 = vld [vmem:[%s5237_s10 + $0x78] sm:$0xff]  ;;  %v334_v18 = vld [vmem:[%s5237_s10 + $0x68] sm:$0xff]  ;;  %v5296_v20 = vor.u32 %v4604_v4, %v4159_v3  ;;  %s5557_s3 = scalar_lea.vmem [#allocation8], %s5545_s1  ;;  %s5808_s5 = scalar_lea.vmem [#allocation9], %s5545_s1 }
  0x50   : > { %v3837_v10 = vld [vmem:[#allocation5 + $0x21c] sm:$0xf0]  ;;  %v4524_v12 = vld [vmem:[#allocation5 + $0x220] sm:$0xf0]  ;;  %v335_v22 = vld [vmem:[%s5237_s10 + $0x70] sm:$0xff]  ;;  %v5301_v31 = vpack.c.bf16 %v324_v6, %v321_v5  ;;  %s4701_s18 = smul.u32 48, %s5061_s21 }
  0x51   : > { %1763 = vmatpush.bf16.msra.mxu0 %v3692_v42  ;;  %4676 = vmatpush.bf16.msra.mxu3 %v3692_v42  ;;  %v3843_v11 = vld [vmem:[#allocation5 + $0x200] sm:$0xf]  ;;  %v338_v23 = vld [vmem:[%s5237_s10 + $0x88] sm:$0xff]  ;;  %v3840_v24 = vor.u32 %v4519_v9, %v3837_v10  ;;  %v4663_v28 = vld [vmem:[#allocation5 + $0x67c] sm:$0xf]  ;;  %s4702_s23 = smul.u32 96, %s5065_s22 }
  0x52   : > { %4684 = vmatpush.bf16.msra.mxu1 %v5271_v43  ;;  %v333_v14 = vld [vmem:[%s5237_s10 + $0x60] sm:$0xff]  ;;  %v3844_v27 = vor.u32 %v4524_v12, %v3843_v11  ;;  %v4510_v30 = vld [vmem:[#allocation5 + $0x1b4] sm:$0xf]  ;;  %v3801_v33 = vld [vmem:[#allocation5 + $0x1d4] sm:$0xf0]  ;;  %v5307_v39 = vpack.c.bf16 %v338_v23, %v335_v22  ;;  %s3327_s29 = sand.u32 1, %s5158_s26  }
  0x53   : > { %4692 = vmatpush.bf16.msra.mxu2 %v5273_v44  ;;  %v337_v21 = vld [vmem:[%s5237_s10 + $0x80] sm:$0xff]  ;;  %v5303_v32 = vpack.c.bf16 %v336_v15, %v333_v14  ;;  %v3807_v36 = vld [vmem:[#allocation5 + $0x1b8] sm:$0xf]  ;;  %v4515_v37 = vld [vmem:[#allocation5 + $0x1d8] sm:$0xf0]  ;;  %v3804_v41 = vor.u32 %v4510_v30, %v3801_v33  ;;  %s3345_s25 = sadd.s32 %s4702_s23, %s4701_s18  ;;  %s3368_s22 = sshll.u32 %s5808_s5, 4  ;;  %s3369_s22 = int_to_ptr.vmem [resolvable:$true] %s3368_s22 }
  0x54   : > { %v4413_v29 = vld [vmem:[#allocation5 + $0x69c] sm:$0xf0]  ;;  %v5305_v38 = vpack.c.bf16 %v337_v21, %v334_v18  ;;  %v3808_v42 = vor.u32 %v4515_v37, %v3807_v36  ;;  %v4654_v45 = vld [vmem:[#allocation5 + $0x634] sm:$0xf]  ;;  %v4377_v46 = vld [vmem:[#allocation5 + $0x654] sm:$0xf0] }
  0x55   : > { %1764 = vmatpush.bf16.msra.mxu0 %v3656_v51  ;;  %4677 = vmatpush.bf16.msra.mxu3 %v3656_v51  ;;  %v4416_v40 = vor.u32 %v4663_v28, %v4413_v29  ;;  %v4501_v47 = vld [vmem:[#allocation5 + $0x16c] sm:$0xf]  ;;  %v3765_v48 = vld [vmem:[#allocation5 + $0x18c] sm:$0xf0]  ;;  %v4506_v50 = vld [vmem:[#allocation5 + $0x190] sm:$0xf0]  ;;  %v4380_v51 = vor.u32 %v4654_v45, %v4377_v46 }
  0x56   : > { %4685 = vmatpush.bf16.msra.mxu1 %v5277_v52  ;;  %v3771_v49 = vld [vmem:[#allocation5 + $0x170] sm:$0xf]  ;;  %v3768_v54 = vor.u32 %v4501_v47, %v3765_v48  ;;  %v4645_v56 = vld [vmem:[#allocation5 + $0x5ec] sm:$0xf]  ;;  %v4492_v58 = vld [vmem:[#allocation5 + $0x124] sm:$0xf] }
  0x57   : > { %4693 = vmatpush.bf16.msra.mxu2 %v5279_v53  ;;  %v3772_v55 = vor.u32 %v4506_v50, %v3771_v49  ;;  %v4341_v57 = vld [vmem:[#allocation5 + $0x60c] sm:$0xf0]  ;;  %v3729_v59 = vld [vmem:[#allocation5 + $0x144] sm:$0xf0]  ;;  %v4497_v61 = vld [vmem:[#allocation5 + $0x148] sm:$0xf0] }
  0x58   : > { %v3732_v62 = vor.u32 %v4492_v58, %v3729_v59  ;;  %v4636_v2 = vld [vmem:[#allocation5 + $0x5a4] sm:$0xf]  ;;  %v4305_v3 = vld [vmem:[#allocation5 + $0x5c4] sm:$0xf0]  ;;  %v327_v4 = vld [vmem:[%s5237_s10 + $0x30] sm:$0xff]  ;;  %s6139_s28 = sshll.u32 %s3345_s25, 2 }
  0x59   : > { %1765 = vmatpush.bf16.msra.mxu0 %v3620_v60  ;;  %4678 = vmatpush.bf16.msra.mxu3 %v3620_v60  ;;  %v3735_v60 = vld [vmem:[#allocation5 + $0x128] sm:$0xf]  ;;  %v339_v6 = vld [vmem:[%s5237_s10 + $0x90] sm:$0xff]  ;;  %v340_v10 = vld [vmem:[%s5237_s10 + $0x98] sm:$0xff]  ;;  %s3367_s6 = scalar_lea.hbm %s6317_s4, %s6139_s28  ;;  %s6148_s13 = scalar_lea.sflag [#allocation10], %s3327_s29 }
  0x5a   : > { %4686 = vmatpush.bf16.msra.mxu1 %v5283_v0  ;;  %v3736_v63 = vor.u32 %v4497_v61, %v3735_v60  ;;  %v330_v5 = vld [vmem:[%s5237_s10 + $0x48] sm:$0xff]  ;;  %v343_v11 = vld [vmem:[%s5237_s10 + $0xb0] sm:$0xff]  ;;  %v341_v12 = vld [vmem:[%s5237_s10 + $0xa0] sm:$0xff]  ;;  %s3370_s12 = sshll.u32 %s3367_s6, 4  ;;  %s4935_s17 = scalar_lea.hbm %s6317_s4, 768  ;;  %s3371_s12 = int_to_ptr.hbm [resolvable:$true] %s3370_s12 }
  0x5b   : > { %4694 = vmatpush.bf16.msra.mxu2 %v5285_v1  ;;  %v342_v9 = vld [vmem:[%s5237_s10 + $0xa8] sm:$0xff]  ;;  %v5326_v14 = vpack.c.bf16 %v330_v5, %v327_v4  ;;  %v5330_v18 = vpack.c.bf16 %v343_v11, %v340_v10  ;;  %v3693_v22 = vld [vmem:[#allocation5 + $0xfc] sm:$0xf0]  ;;  %v3657_v33 = vld [vmem:[#allocation5 + $0xb4] sm:$0xf0]  ;;  %s4929_s14 = sshra.s32 %s3371_s12, 4  ;;  %s4930_s14 = int_to_ptr.hbm [resolvable:$true] %s4929_s14 }
  0x5c   : > { %v5328_v15 = vpack.c.bf16 %v342_v9, %v339_v6  ;;  %v3699_v23 = vld [vmem:[#allocation5 + $0xe0] sm:$0xf]  ;;  %v3663_v36 = vld [vmem:[#allocation5 + $0x98] sm:$0xf]  ;;  %v322_v45 = vld [vmem:[%s5237_s10 + $0x8] sm:$0xff]  ;;  %s4931_s15 = scalar_lea.hbm %s4930_s14, 192  ;;  %p4936_p8 = scmp.lt.s32.totalorder %s4930_s14, %s6317_s4 }
  0x5d   : > { %1766 = vmatpush.bf16.msra.mxu0 %v3584_v13  ;;  %4679 = vmatpush.bf16.msra.mxu3 %v3584_v13  ;;  %v4308_v13 = vor.u32 %v4636_v2, %v4305_v3  ;;  %v4269_v28 = vld [vmem:[#allocation5 + $0x57c] sm:$0xf0]  ;;  %v346_v48 = vld [vmem:[%s5237_s10 + $0xc8] sm:$0xff]  ;;  %v3621_v59 = vld [vmem:[#allocation5 + $0x6c] sm:$0xf0]  ;;  %p4932_p1 = scmp.ne.s32.totalorder %s4930_s14, %s4931_s15  ;;  %p4937_p11 = scmp.lt.s32.totalorder %s4935_s17, %s4931_s15 }
  0x5e   : > { %4687 = vmatpush.bf16.msra.mxu1 %v5294_v19  ;;  %v325_v47 = vld [vmem:[%s5237_s10 + $0x20] sm:$0xff]  ;;  %v350_v50 = vld [vmem:[%s5237_s10 + $0xe8] sm:$0xff]  ;;  %v3627_v60 = vld [vmem:[#allocation5 + $0x50] sm:$0xf] }
  0x5f   : > { %4695 = vmatpush.bf16.msra.mxu2 %v5296_v20  ;;  %v349_v49 = vld [vmem:[%s5237_s10 + $0xe0] sm:$0xff]  ;;  %v4470_v61 = vld [vmem:[#allocation5 + $0x70] sm:$0xf0]  ;;  %v354_v3 = vld [vmem:[%s5237_s10 + $0x108] sm:$0xff]  ;;  %p4933_p2 = pnand %p4932_p1, %p5210_p5  ;;  %p4938_p12 = por %p4937_p11, %p4936_p8 }
  0x60   : > { %1767 = vmatmul.bf16.vlgmr.msra.gmra.mxu0 %v5301_v31  ;;  %1777 = vmatmul.bf16.vlgmr.msra.gmra.mxu3 %v5303_v32  ;;  %v328_v4 = vld [vmem:[%s5237_s10 + $0x38] sm:$0xff]  ;;  %v331_v5 = vld [vmem:[%s5237_s10 + $0x50] sm:$0xff]  ;;  %v353_v10 = vld [vmem:[%s5237_s10 + $0x100] sm:$0xff] }
  0x61   : > { %1906 = vmatpush.bf16.msrb.mxu3 %v3840_v24  ;;  %1826 = vmatmul.bf16.vlgmr.msra.gmra.mxu1 %v5305_v38  ;;  %v352_v6 = vld [vmem:[%s5237_s10 + $0xf8] sm:$0xff]  ;;  %v355_v9 = vld [vmem:[%s5237_s10 + $0x110] sm:$0xff]  ;;  %p4934_p4 = pneg %p4933_p2 }
  0x62   : > { %1875 = vmatmul.bf16.vlgmr.msra.gmra.mxu2 %v5307_v39  ;;  %1808 = vmatpush.bf16.msrb.mxu0 %v5247_v7  ;;  %v4344_v7 = vor.u32 %v4645_v56, %v4341_v57  ;;  %v4233_v57 = vld [vmem:[#allocation5 + $0x534] sm:$0xf0] }
  0x63   : > { %2053 = vmatpush.bf16.msrb.mxu2 %v3844_v27  ;;  %2004 = vmatpush.bf16.msrb.mxu1 %v4416_v40  ;;  %v4488_v27 = vld [vmem:[#allocation5 + $0x100] sm:$0xf0]  ;;  %v4479_v40 = vld [vmem:[#allocation5 + $0xb8] sm:$0xf0]  ;;  %p4939_p13 = pnand %p4938_p12, %p4934_p4 }
  0x64   : > { %v3700_v29 = vor.u32 %v4488_v27, %v3699_v23  ;;  %v3664_v46 = vor.u32 %v4479_v40, %v3663_v36  ;;  %v356_v11 = vld [vmem:[%s5237_s10 + $0x118] sm:$0xff]  ;;  %v358_v36 = vld [vmem:[%s5237_s10 + $0x128] sm:$0xff] }
  0x65   : > { %1907 = vmatpush.bf16.msrb.mxu3 %v3804_v41  ;;  %v345_v41 = vld [vmem:[%s5237_s10 + $0xc0] sm:$0xff]  ;;  %v4089_v40 = vld [vmem:[#allocation5 + $0x414] sm:$0xf0] }
  0x66   : > { %1809 = vmatpush.bf16.msrb.mxu0 %v5253_v16  ;;  %v344_v16 = vld [vmem:[%s5237_s10 + $0xb8] sm:$0xff] }
  0x67   : > { %2054 = vmatpush.bf16.msrb.mxu2 %v3808_v42  ;;  %2005 = vmatpush.bf16.msrb.mxu1 %v4380_v51  ;;  %v5332_v21 = vpack.c.bf16 %v344_v16, %v341_v12  ;;  %v348_v42 = vld [vmem:[%s5237_s10 + $0xd8] sm:$0xff]  ;;  %v5377_v16 = vpack.c.bf16 %v331_v5, %v328_v4  ;;  %v3981_v4 = vld [vmem:[#allocation5 + $0x33c] sm:$0xf0] }
  0x68   : > { %v5350_v51 = vpack.c.bf16 %v348_v42, %v345_v41  ;;  %v361_v41 = vld [vmem:[%s5237_s10 + $0x140] sm:$0xff]  ;;  %v323_v42 = vld [vmem:[%s5237_s10 + $0x10] sm:$0xff] }
  0x69   : > { %1908 = vmatpush.bf16.msrb.mxu3 %v3768_v54  ;;  %v5352_v54 = vpack.c.bf16 %v325_v47, %v322_v45  ;;  %v326_v45 = vld [vmem:[%s5237_s10 + $0x28] sm:$0xff] }
  0x6a   : > { %1810 = vmatpush.bf16.msrb.mxu0 %v5259_v25  ;;  %v4483_v25 = vld [vmem:[#allocation5 + $0xdc] sm:$0xf]  ;;  %v362_v47 = vld [vmem:[%s5237_s10 + $0x148] sm:$0xff] }
  0x6b   : > { %2055 = vmatpush.bf16.msrb.mxu2 %v3772_v55  ;;  %2006 = vmatpush.bf16.msrb.mxu1 %v4344_v7  ;;  %v3696_v24 = vor.u32 %v4483_v25, %v3693_v22  ;;  %v5354_v55 = vpack.c.bf16 %v349_v49, %v346_v48  ;;  %v3628_v7 = vor.u32 %v4470_v61, %v3627_v60  ;;  %v3591_v22 = vld [vmem:[#allocation5 + $0x8] sm:$0xf]  ;;  %v4592_v60 = vld [vmem:[#allocation5 + $0x444] sm:$0xf] }
  0x6c   : > { %v5381_v25 = vpack.c.bf16 %v356_v11, %v353_v10  ;;  %v364_v11 = vld [vmem:[%s5237_s10 + $0x158] sm:$0xff] }
  0x6d   : > { %1909 = vmatpush.bf16.msrb.mxu3 %v3732_v62  ;;  %v4609_v62 = vld [vmem:[#allocation5 + $0x4cc] sm:$0xf] }
  0x6e   : > { %1811 = vmatpush.bf16.msrb.mxu0 %v5265_v34  ;;  %v4627_v34 = vld [vmem:[#allocation5 + $0x55c] sm:$0xf] }
  0x6f   : > { %2056 = vmatpush.bf16.msrb.mxu2 %v3736_v63  ;;  %2007 = vmatpush.bf16.msrb.mxu1 %v4308_v13  ;;  %v4272_v30 = vor.u32 %v4627_v34, %v4269_v28  ;;  %v4197_v63 = vld [vmem:[#allocation5 + $0x4ec] sm:$0xf0]  ;;  %v5379_v13 = vpack.c.bf16 %v355_v9, %v352_v6  ;;  %v4161_v34 = vld [vmem:[#allocation5 + $0x4a4] sm:$0xf0]  ;;  %v4591_v28 = vld [vmem:[#allocation5 + $0x43c] sm:$0xf] }
  0x70   : > { %1772 = vmatmul.bf16.gmra.mxu0 %v5326_v14  ;;  %1782 = vmatmul.bf16.gmra.mxu3 %v5328_v15  ;;  %v4200_v2 = vor.u32 %v4609_v62, %v4197_v63  ;;  %v363_v6 = vld [vmem:[%s5237_s10 + $0x150] sm:$0xff]  ;;  %v366_v9 = vld [vmem:[%s5237_s10 + $0x168] sm:$0xff] }
  0x71   : > { %1831 = vmatmul.bf16.gmra.mxu1 %v5330_v18  ;;  %1910 = vmatpush.bf16.msrb.mxu3 %v3696_v24  ;;  %v4461_v24 = vld [vmem:[#allocation5 + $0x28] sm:$0xf0] }
  0x72   : > { %1880 = vmatmul.bf16.gmra.mxu2 %v5332_v21  ;;  %1812 = vmatpush.bf16.msrb.mxu0 %v5271_v43  ;;  %v4474_v43 = vld [vmem:[#allocation5 + $0x94] sm:$0xf]  ;;  %v3592_v27 = vor.u32 %v4461_v24, %v3591_v22  ;;  %v332_v24 = vld [vmem:[%s5237_s10 + $0x58] sm:$0xff] }
  0x73   : > { %2057 = vmatpush.bf16.msrb.mxu2 %v3700_v29  ;;  %2008 = vmatpush.bf16.msrb.mxu1 %v4272_v30  ;;  %v3660_v37 = vor.u32 %v4474_v43, %v3657_v33  ;;  %v4125_v29 = vld [vmem:[#allocation5 + $0x45c] sm:$0xf0]  ;;  %v360_v43 = vld [vmem:[%s5237_s10 + $0x138] sm:$0xff]  ;;  %v367_v22 = vld [vmem:[%s5237_s10 + $0x170] sm:$0xff] }
  0x74   : > { %v4128_v33 = vor.u32 %v4591_v28, %v4125_v29  ;;  %v5421_v29 = vpack.c.bf16 %v367_v22, %v364_v11  ;;  %v3773_v11 = vld [vmem:[#allocation5 + $0x194] sm:$0xf0]  ;;  %v4569_v22 = vld [vmem:[#allocation5 + $0x388] sm:$0xf0] }
  0x75   : > { %1911 = vmatpush.bf16.msrb.mxu3 %v3660_v37  ;;  %v4582_v37 = vld [vmem:[#allocation5 + $0x3f4] sm:$0xf] }
  0x76   : > { %1813 = vmatpush.bf16.msrb.mxu0 %v5277_v52  ;;  %v347_v52 = vld [vmem:[%s5237_s10 + $0xd0] sm:$0xff]  ;;  %v4092_v49 = vor.u32 %v4582_v37, %v4089_v40  ;;  %v4528_v37 = vld [vmem:[#allocation5 + $0x244] sm:$0xf]  ;;  %v3873_v40 = vld [vmem:[#allocation5 + $0x264] sm:$0xf0] }
  0x77   : > { %2058 = vmatpush.bf16.msrb.mxu2 %v3664_v46  ;;  %v5357_v56 = vpack.c.bf16 %v350_v50, %v347_v52  ;;  %v359_v46 = vld [vmem:[%s5237_s10 + $0x130] sm:$0xff]  ;;  %v5401_v52 = vpack.c.bf16 %v361_v41, %v358_v36  ;;  %v4573_v50 = vld [vmem:[#allocation5 + $0x3ac] sm:$0xf]  ;;  %v4419_v41 = vld [vmem:[#allocation5 + $0x680] sm:$0xf] }
  0x7a   : > { %1814 = vmatpush.bf16.msrb.mxu0 %v5283_v0  ;;  %v4618_v0 = vld [vmem:[#allocation5 + $0x514] sm:$0xf] }
  0x7b   : > { %v4236_v58 = vor.u32 %v4618_v0, %v4233_v57  ;;  %2059 = vmatpush.bf16.msrb.mxu2 %v3628_v7  ;;  %v4053_v0 = vld [vmem:[#allocation5 + $0x3cc] sm:$0xf0]  ;;  %v5405_v57 = vpack.c.bf16 %v362_v47, %v359_v46  ;;  %v4133_v7 = vld [vmem:[#allocation5 + $0x464] sm:$0xf0]  ;;  %v4587_v46 = vld [vmem:[#allocation5 + $0x418] sm:$0xf0] }
  0x7c   : > { %v4136_v63 = vor.u32 %v4592_v60, %v4133_v7  ;;  %v4583_v47 = vld [vmem:[#allocation5 + $0x3fc] sm:$0xf]  ;;  %v4383_v60 = vld [vmem:[#allocation5 + $0x638] sm:$0xf] }
  0x7d   : > { %2009 = vmatpush.bf16.msrb.mxu1 %v4236_v58  ;;  %v4056_v58 = vor.u32 %v4573_v50, %v4053_v0  ;;  %v4097_v50 = vld [vmem:[#allocation5 + $0x41c] sm:$0xf0]  ;;  %v3876_v0 = vor.u32 %v4528_v37, %v3873_v40  ;;  %v3737_v37 = vld [vmem:[#allocation5 + $0x14c] sm:$0xf0] }
  0x7e   : > { %1815 = vmatpush.bf16.msrb.mxu0 %v5294_v19  ;;  %v4465_v19 = vld [vmem:[#allocation5 + $0x4c] sm:$0xf] }
  0x7f   : > { %2060 = vmatpush.bf16.msrb.mxu2 %v3592_v27  ;;  %v365_v27 = vld [vmem:[%s5237_s10 + $0x160] sm:$0xff] }
  0x80   : > { %1787 = vmatmul.bf16.gmra.mxu3 %v5350_v51 }
  0x81   : > { %1816 = vmatmul.bf16.vlgmr.msrb.gmra.mxu0 %v5352_v54  ;;  %1836 = vmatmul.bf16.gmra.mxu1 %v5354_v55 }
  0x82   : > { %1857 = vmatpush.bf16.msra.mxu0 %v5249_v8  ;;  %1885 = vmatmul.bf16.gmra.mxu2 %v5357_v56  ;;  %v3624_v8 = vor.u32 %v4465_v19, %v3621_v59  ;;  %v4017_v19 = vld [vmem:[#allocation5 + $0x384] sm:$0xf0]  ;;  %v4131_v59 = vld [vmem:[#allocation5 + $0x440] sm:$0xf] }
  0x83   : > { %2010 = vmatpush.bf16.msrb.mxu1 %v4200_v2  ;;  %v4520_v2 = vld [vmem:[#allocation5 + $0x204] sm:$0xf]  ;;  %2249 = vmatpush.bf16.msra.mxu2 %v4136_v63  ;;  %v4578_v63 = vld [vmem:[#allocation5 + $0x3d0] sm:$0xf0] }
  0x84   : > { %1912 = vmatpush.bf16.msrb.mxu3 %v3624_v8  ;;  %v4596_v8 = vld [vmem:[#allocation5 + $0x460] sm:$0xf0] }
  0x85   : > { %v4132_v61 = vor.u32 %v4596_v8, %v4131_v59 }
  0x86   : > { %1858 = vmatpush.bf16.msra.mxu0 %v5255_v17  ;;  %v351_v17 = vld [vmem:[%s5237_s10 + $0xf0] sm:$0xff] }
  0x87   : > { %v5375_v12 = vpack.c.bf16 %v354_v3, %v351_v17  ;;  %v3845_v17 = vld [vmem:[#allocation5 + $0x224] sm:$0xf0]  ;;  %v4555_v3 = vld [vmem:[#allocation5 + $0x31c] sm:$0xf] }
  0x88   : > { %v3848_v5 = vor.u32 %v4520_v2, %v3845_v17  ;;  %v3984_v10 = vor.u32 %v4555_v3, %v3981_v4  ;;  %v4574_v2 = vld [vmem:[#allocation5 + $0x3b4] sm:$0xf]  ;;  %v4061_v3 = vld [vmem:[#allocation5 + $0x3d4] sm:$0xf0]  ;;  %v4347_v4 = vld [vmem:[#allocation5 + $0x5f0] sm:$0xf] }
  0x8a   : > { %1859 = vmatpush.bf16.msra.mxu0 %v5261_v26  ;;  %v4456_v26 = vld [vmem:[#allocation5 + $0x4] sm:$0xf] }
  0x8e   : > { %1860 = vmatpush.bf16.msra.mxu0 %v5267_v35  ;;  %v3585_v35 = vld [vmem:[#allocation5 + $0x24] sm:$0xf0] }
  0x8f   : > { %v3588_v23 = vor.u32 %v4456_v26, %v3585_v35  ;;  %v4546_v26 = vld [vmem:[#allocation5 + $0x2d4] sm:$0xf]  ;;  %v3945_v35 = vld [vmem:[#allocation5 + $0x2f4] sm:$0xf0] }
  0x90   : > { %1792 = vmatmul.bf16.gmra.mxu3 %v5375_v12  ;;  %v3948_v28 = vor.u32 %v4546_v26, %v3945_v35  ;;  %v4023_v35 = vld [vmem:[#allocation5 + $0x368] sm:$0xf] }
  0x91   : > { %1821 = vmatmul.bf16.gmra.mxu0 %v5377_v16  ;;  %1841 = vmatmul.bf16.gmra.mxu1 %v5379_v13 }
  0x92   : > { %1861 = vmatpush.bf16.msra.mxu0 %v5273_v44  ;;  %1890 = vmatmul.bf16.gmra.mxu2 %v5381_v25  ;;  %v4600_v44 = vld [vmem:[#allocation5 + $0x484] sm:$0xf] }
  0x93   : > { %1913 = vmatpush.bf16.msrb.mxu3 %v3588_v23  ;;  %v4164_v30 = vor.u32 %v4600_v44, %v4161_v34  ;;  %v329_v23 = vld [vmem:[%s5237_s10 + $0x40] sm:$0xff]  ;;  %v368_v44 = vld [vmem:[%s5237_s10 + $0x178] sm:$0xff]  ;;  %v5419_v34 = vpack.c.bf16 %v366_v9, %v363_v6  ;;  %v4064_v6 = vor.u32 %v4574_v2, %v4061_v3 }
  0x94   : > { %v4484_v3 = vld [vmem:[#allocation5 + $0xe4] sm:$0xf] }
  0x95   : > { %2011 = vmatpush.bf16.msrb.mxu1 %v4164_v30  ;;  %v5423_v30 = vpack.c.bf16 %v332_v24, %v329_v23  ;;  %v4565_v23 = vld [vmem:[#allocation5 + $0x36c] sm:$0xf]  ;;  %v4024_v24 = vor.u32 %v4569_v22, %v4023_v35 }
  0x96   : > { %1862 = vmatpush.bf16.msra.mxu0 %v5279_v53  ;;  %v357_v53 = vld [vmem:[%s5237_s10 + $0x120] sm:$0xff] }
  0x97   : > { %v5399_v48 = vpack.c.bf16 %v360_v43, %v357_v53  ;;  %2102 = vmatpush.bf16.msra.mxu3 %v4132_v61  ;;  %v4537_v53 = vld [vmem:[#allocation5 + $0x28c] sm:$0xf]  ;;  %v3909_v43 = vld [vmem:[#allocation5 + $0x2ac] sm:$0xf0]  ;;  %v4659_v61 = vld [vmem:[#allocation5 + $0x658] sm:$0xf0] }
  0x98   : > { %v3912_v36 = vor.u32 %v4537_v53, %v3909_v43  ;;  %v4384_v7 = vor.u32 %v4659_v61, %v4383_v60 }
  0x99   : > { %2200 = vmatpush.bf16.msra.mxu1 %v3848_v5  ;;  %v4650_v5 = vld [vmem:[#allocation5 + $0x610] sm:$0xf0] }
  0x9a   : > { %1863 = vmatpush.bf16.msra.mxu0 %v5285_v1  ;;  %v5403_v1 = vpack.c.bf16 %v326_v45, %v323_v42  ;;  %v4668_v42 = vld [vmem:[#allocation5 + $0x6a0] sm:$0xf0]  ;;  %v4095_v45 = vld [vmem:[#allocation5 + $0x3f8] sm:$0xf]  ;;  %v4348_v9 = vor.u32 %v4650_v5, %v4347_v4  ;;  %v3701_v4 = vld [vmem:[#allocation5 + $0x104] sm:$0xf0] }
  0x9b   : > { %v4420_v59 = vor.u32 %v4668_v42, %v4419_v41  ;;  %v5441_v42 = vld [vmem:[#allocation7] sm:$0xff] }
  0x9e   : > { %1864 = vmatpush.bf16.msra.mxu0 %v5296_v20  ;;  %v4564_v20 = vld [vmem:[#allocation5 + $0x364] sm:$0xf] }
  0x9f   : > { %v4020_v62 = vor.u32 %v4564_v20, %v4017_v19  ;;  %v4511_v20 = vld [vmem:[#allocation5 + $0x1bc] sm:$0xf]  ;;  %v3809_v19 = vld [vmem:[#allocation5 + $0x1dc] sm:$0xf0] }
  0xa0   : > { %1797 = vmatmul.bf16.gmra.mxu3 %v5399_v48  ;;  %v3812_v8 = vor.u32 %v4511_v20, %v3809_v19  ;;  %v3989_v20 = vld [vmem:[#allocation5 + $0x344] sm:$0xf0]  ;;  %v4275_v19 = vld [vmem:[#allocation5 + $0x560] sm:$0xf] }
  0xa1   : > { %1846 = vmatmul.bf16.gmra.mxu1 %v5401_v52  ;;  %1865 = vmatmul.bf16.vlgmr.msra.gmra.mxu0 %v5403_v1 }
  0xa2   : > { %1955 = vmatpush.bf16.msrb.mxu0 %v4128_v33  ;;  %1895 = vmatmul.bf16.gmra.mxu2 %v5405_v57  ;;  %v5425_v33 = vpack.c.bf16 %v368_v44, %v365_v27  ;;  %v4025_v27 = vld [vmem:[#allocation5 + $0x38c] sm:$0xf0]  ;;  %v4311_v44 = vld [vmem:[#allocation5 + $0x5a8] sm:$0xf] }
  0xa3   : > { %2201 = vmatpush.bf16.msra.mxu1 %v3812_v8  ;;  %v4028_v53 = vor.u32 %v4565_v23, %v4025_v27  ;;  %v3951_v23 = vld [vmem:[#allocation5 + $0x2d8] sm:$0xf] }
  0xa6   : > { %1956 = vmatpush.bf16.msrb.mxu0 %v4092_v49  ;;  %v4096_v49 = vor.u32 %v4587_v46, %v4095_v45  ;;  %v5445_v46 = vperm.slane %v5441_v42, 0 }
  0xa8   : > { %2103 = vmatpush.bf16.msra.mxu3 %v4096_v49  ;;  %v4560_v49 = vld [vmem:[#allocation5 + $0x340] sm:$0xf0] }
  0xaa   : > { %1957 = vmatpush.bf16.msrb.mxu0 %v4056_v58  ;;  %v4100_v58 = vor.u32 %v4583_v47, %v4097_v50  ;;  %v3987_v47 = vld [vmem:[#allocation5 + $0x320] sm:$0xf]  ;;  %v4556_v50 = vld [vmem:[#allocation5 + $0x324] sm:$0xf] }
  0xab   : > { %v3992_v61 = vor.u32 %v4556_v50, %v3989_v20  ;;  %v4475_v20 = vld [vmem:[#allocation5 + $0x9c] sm:$0xf] }
  0xac   : > { %2250 = vmatpush.bf16.msra.mxu2 %v4100_v58  ;;  %v3988_v58 = vor.u32 %v4560_v49, %v3987_v47 }
  0xae   : > { %1958 = vmatpush.bf16.msrb.mxu0 %v4020_v62  ;;  %v4059_v62 = vld [vmem:[#allocation5 + $0x3b0] sm:$0xf] }
  0xaf   : > { %v4060_v17 = vor.u32 %v4578_v63, %v4059_v62 }
  0xb0   : > { %1802 = vmatmul.bf16.gmra.mxu3 %v5419_v34  ;;  %2251 = vmatpush.bf16.msra.mxu2 %v4064_v6  ;;  %v3704_v6 = vor.u32 %v4484_v3, %v3701_v4 }
  0xb1   : > { %1851 = vmatmul.bf16.gmra.mxu1 %v5421_v29  ;;  %1870 = vmatmul.bf16.gmra.mxu0 %v5423_v30 }
  0xb2   : > { %1959 = vmatpush.bf16.msrb.mxu0 %v3984_v10  ;;  %1900 = vmatmul.bf16.gmra.mxu2 %v5425_v33  ;;  %v4502_v10 = vld [vmem:[#allocation5 + $0x174] sm:$0xf] }
  0xb3   : > { %2104 = vmatpush.bf16.msra.mxu3 %v4060_v17  ;;  %v3776_v26 = vor.u32 %v4502_v10, %v3773_v11 }
  0xb4   : > { %2252 = vmatpush.bf16.msra.mxu2 %v4028_v53  ;;  %v3953_v53 = vld [vmem:[#allocation5 + $0x2fc] sm:$0xf0] }
  0xb5   : > { %2202 = vmatpush.bf16.msra.mxu1 %v3776_v26 }
  0xb6   : > { %1960 = vmatpush.bf16.msrb.mxu0 %v3948_v28  ;;  %v4641_v28 = vld [vmem:[#allocation5 + $0x5c8] sm:$0xf0] }
  0xb7   : > { %v4312_v43 = vor.u32 %v4641_v28, %v4311_v44  ;;  %2105 = vmatpush.bf16.msra.mxu3 %v4024_v24  ;;  %v4551_v24 = vld [vmem:[#allocation5 + $0x2f8] sm:$0xf0] }
  0xb8   : > { %2253 = vmatpush.bf16.msra.mxu2 %v3992_v61  ;;  %v3952_v44 = vor.u32 %v4551_v24, %v3951_v23  ;;  %v4547_v28 = vld [vmem:[#allocation5 + $0x2dc] sm:$0xf]  ;;  %v4203_v23 = vld [vmem:[#allocation5 + $0x4d0] sm:$0xf] }
  0xba   : > { %1961 = vmatpush.bf16.msrb.mxu0 %v3912_v36  ;;  %v4493_v36 = vld [vmem:[#allocation5 + $0x12c] sm:$0xf] }
  0xbb   : > { %v3740_v40 = vor.u32 %v4493_v36, %v3737_v37  ;;  %2106 = vmatpush.bf16.msra.mxu3 %v3988_v58 }
  0xbd   : > { %2203 = vmatpush.bf16.msra.mxu1 %v3740_v40  ;;  %v3956_v40 = vor.u32 %v4547_v28, %v3953_v53 }
  0xbe   : > { %1962 = vmatpush.bf16.msrb.mxu0 %v3876_v0 }
  0xbf   : > { %2107 = vmatpush.bf16.msra.mxu3 %v3952_v44  ;;  %2254 = vmatpush.bf16.msra.mxu2 %v3956_v40  ;;  %v4614_v44 = vld [vmem:[#allocation5 + $0x4f0] sm:$0xf0] }
  0xc0   : > { %1914 = vmatmul.bf16.vlgmr.msrb.gmra.mxu3 %v5301_v31 }
  0xc1   : > { %1963 = vmatmul.bf16.vlgmr.msrb.gmra.mxu0 %v5352_v54  ;;  %2012 = vmatmul.bf16.vlgmr.msrb.gmra.mxu1 %v5403_v1 }
  0xc2   : > { %2151 = vmatpush.bf16.msra.mxu0 %v4420_v59  ;;  %2061 = vmatmul.bf16.vlgmr.msrb.gmra.mxu2 %v5301_v31  ;;  %v4632_v59 = vld [vmem:[#allocation5 + $0x580] sm:$0xf0] }
  0xc3   : > { %2204 = vmatpush.bf16.msra.mxu1 %v3704_v6  ;;  %v3915_v6 = vld [vmem:[#allocation5 + $0x290] sm:$0xf] }
  0xc6   : > { %2152 = vmatpush.bf16.msra.mxu0 %v4384_v7  ;;  %v4276_v7 = vor.u32 %v4632_v59, %v4275_v19  ;;  %v3665_v19 = vld [vmem:[#allocation5 + $0xbc] sm:$0xf0] }
  0xca   : > { %2153 = vmatpush.bf16.msra.mxu0 %v4348_v9 }
  0xce   : > { %2154 = vmatpush.bf16.msra.mxu0 %v4312_v43  ;;  %v4239_v43 = vld [vmem:[#allocation5 + $0x518] sm:$0xf] }
  0xd0   : > { %1919 = vmatmul.bf16.gmra.mxu3 %v5326_v14 }
  0xd1   : > { %1968 = vmatmul.bf16.gmra.mxu0 %v5377_v16  ;;  %2017 = vmatmul.bf16.gmra.mxu1 %v5423_v30 }
  0xd2   : > { %2066 = vmatmul.bf16.gmra.mxu2 %v5326_v14  ;;  %2155 = vmatpush.bf16.msra.mxu0 %v4276_v7 }
  0xdd   : > { %v5439_v41 = vpop.f32.mrf.mxu0 }
  0xde   : > { %v1827_v45 = vpop.f32.mrf.mxu1  ;;  %v1769_v7 = vadd.f32 %v5439_v41, %v5445_v46 }
  0xe0   : > { %1924 = vmatmul.bf16.gmra.mxu3 %v5303_v32 }
  0xe1   : > { %1973 = vmatmul.bf16.gmra.mxu0 %v5305_v38  ;;  %2022 = vmatmul.bf16.gmra.mxu1 %v5307_v39 }
  0xe2   : > { %2071 = vmatmul.bf16.gmra.mxu2 %v5303_v32 }
  0xe3   : > { %v1778_v0 = vpop.f32.mrf.mxu3 }
  0xe4   : > { %v1779_v8 = vadd.f32 %v1778_v0, %v5445_v46 }
  0xe5   : > { %v1876_v60 = vpop.f32.mrf.mxu2  ;;  %v5451_v62 = vpop.f32.mrf.mxu0 }
  0xe6   : > { %v1828_v63 = vadd.f32 %v1827_v45, %v1779_v8  ;;  %v1829_v2 = vpop.f32.mrf.mxu1  ;;  %v4623_v45 = vld [vmem:[#allocation5 + $0x538] sm:$0xf0]  ;;  %v3668_v8 = vor.u32 %v4475_v20, %v3665_v19  ;;  %v1771_v28 = vadd.f32 %v5451_v62, %v5445_v46 }
  0xe7   : > { %v4240_v49 = vor.u32 %v4623_v45, %v4239_v43  ;;  %v4204_v43 = vor.u32 %v4614_v44, %v4203_v23 }
  0xe8   : > { %v5453_v17 = vadd.f32 %v1876_v60, %v1828_v63  ;;  %2205 = vmatpush.bf16.msra.mxu1 %v3668_v8 }
  0xe9   : > { %2156 = vmatpush.bf16.msra.mxu0 %v4240_v49 }
  0xeb   : > { %v1780_v5 = vpop.f32.mrf.mxu3 }
  0xec   : > { %v1781_v9 = vadd.f32 %v1780_v5, %v5445_v46 }
  0xed   : > { %v1878_v10 = vpop.f32.mrf.mxu2  ;;  %v5456_v11 = vpop.f32.mrf.mxu0  ;;  %2157 = vmatpush.bf16.msra.mxu0 %v4204_v43 }
  0xee   : > { %v1830_v26 = vadd.f32 %v1829_v2, %v1781_v9  ;;  %v1832_v35 = vpop.f32.mrf.mxu1  ;;  %v4542_v9 = vld [vmem:[#allocation5 + $0x2b0] sm:$0xf0]  ;;  %v1774_v62 = vadd.f32 %v5456_v11, %v5445_v46 }
  0xef   : > { %v3916_v41 = vor.u32 %v4542_v9, %v3915_v6  ;;  %v4533_v6 = vld [vmem:[#allocation5 + $0x268] sm:$0xf0] }
  0xf0   : > { %v5458_v22 = vadd.f32 %v1878_v10, %v1830_v26  ;;  %1929 = vmatmul.bf16.gmra.mxu3 %v5328_v15  ;;  %v4538_v26 = vld [vmem:[#allocation5 + $0x294] sm:$0xf] }
  0xf1   : > { %1978 = vmatmul.bf16.gmra.mxu0 %v5330_v18  ;;  %2027 = vmatmul.bf16.gmra.mxu1 %v5332_v21 }
  0xf2   : > { %2076 = vmatmul.bf16.gmra.mxu2 %v5328_v15  ;;  %2108 = vmatpush.bf16.msra.mxu3 %v3916_v41  ;;  %v3881_v41 = vld [vmem:[#allocation5 + $0x26c] sm:$0xf0] }
  0xf3   : > { %v1783_v27 = vpop.f32.mrf.mxu3 }
  0xf4   : > { %v1784_v36 = vadd.f32 %v1783_v27, %v5445_v46 }
  0xf5   : > { %v1881_v37 = vpop.f32.mrf.mxu2  ;;  %v5465_v47 = vpop.f32.mrf.mxu0 }
  0xf6   : > { %v1833_v50 = vadd.f32 %v1832_v35, %v1784_v36  ;;  %v1834_v0 = vpop.f32.mrf.mxu1  ;;  %v3917_v35 = vld [vmem:[#allocation5 + $0x2b4] sm:$0xf0] }
  0xf7   : > { %v3920_v27 = vor.u32 %v4538_v26, %v3917_v35  ;;  %v4167_v26 = vld [vmem:[#allocation5 + $0x488] sm:$0xf] }
  0xf8   : > { %v5467_v58 = vadd.f32 %v1881_v37, %v1833_v50  ;;  %v4466_v50 = vld [vmem:[#allocation5 + $0x54] sm:$0xf] }
  0xf9   : > { %2255 = vmatpush.bf16.msra.mxu2 %v3920_v27  ;;  %v1776_v27 = vadd.f32 %v5465_v47, %v5445_v46 }
  0xfb   : > { %v1785_v59 = vpop.f32.mrf.mxu3 }
  0xfc   : > { %v1786_v60 = vadd.f32 %v1785_v59, %v5445_v46 }
  0xfd   : > { %v1883_v61 = vpop.f32.mrf.mxu2 }
  0xfe   : > { %v1835_v63 = vadd.f32 %v1834_v0, %v1786_v60  ;;  %v1817_v2 = vpop.f32.mrf.mxu0  ;;  %v1837_v3 = vpop.f32.mrf.mxu1  ;;  %v3629_v0 = vld [vmem:[#allocation5 + $0x74] sm:$0xf0] }
  0xff   : > { %v5472_v4 = vadd.f32 %v1817_v2, %v1769_v7  ;;  %v3632_v19 = vor.u32 %v4466_v50, %v3629_v0  ;;  %v4457_v50 = vld [vmem:[#allocation5 + $0xc] sm:$0xf]  ;;  %v3593_v0 = vld [vmem:[#allocation5 + $0x2c] sm:$0xf0] }
 0x100   : > { %v5474_v5 = vadd.f32 %v1883_v61, %v1835_v63  ;;  %1934 = vmatmul.bf16.gmra.mxu3 %v5350_v51 }
 0x101   : > { %1983 = vmatmul.bf16.gmra.mxu0 %v5354_v55  ;;  %2032 = vmatmul.bf16.gmra.mxu1 %v5357_v56 }
 0x102   : > { %2081 = vmatmul.bf16.gmra.mxu2 %v5350_v51  ;;  %2206 = vmatpush.bf16.msra.mxu1 %v3632_v19  ;;  %v3596_v19 = vor.u32 %v4457_v50, %v3593_v0 }
 0x103   : > { %v1788_v10 = vpop.f32.mrf.mxu3 }
 0x104   : > { %v1789_v24 = vadd.f32 %v1788_v10, %v5445_v46  ;;  %v4529_v10 = vld [vmem:[#allocation5 + $0x24c] sm:$0xf] }
 0x105   : > { %v1886_v53 = vpop.f32.mrf.mxu2  ;;  %v3884_v23 = vor.u32 %v4529_v10, %v3881_v41  ;;  %v4669_v10 = vld [vmem:[#allocation5 + $0x6a8] sm:$0xf0]  ;;  %v3851_v41 = vld [vmem:[#allocation5 + $0x208] sm:$0xf] }
 0x106   : > { %v1838_v36 = vadd.f32 %v1837_v3, %v1789_v24  ;;  %v1819_v37 = vpop.f32.mrf.mxu0  ;;  %v1839_v40 = vpop.f32.mrf.mxu1  ;;  %v3879_v3 = vld [vmem:[#allocation5 + $0x248] sm:$0xf]  ;;  %v4605_v24 = vld [vmem:[#allocation5 + $0x4a8] sm:$0xf0]  ;;  %2207 = vmatpush.bf16.msra.mxu1 %v3596_v19 }
 0x107   : > { %v5483_v45 = vadd.f32 %v1819_v37, %v1771_v28  ;;  %v3880_v9 = vor.u32 %v4533_v6, %v3879_v3  ;;  %v4168_v28 = vor.u32 %v4605_v24, %v4167_v26  ;;  %2256 = vmatpush.bf16.msra.mxu2 %v3884_v23  ;;  %v4421_v3 = vld [vmem:[#allocation5 + $0x6a4] sm:$0xf0]  ;;  %v4525_v23 = vld [vmem:[#allocation5 + $0x228] sm:$0xf0] }
 0x108   : > { %v5485_v49 = vadd.f32 %v1886_v53, %v1838_v36 }
 0x109   : > { %2109 = vmatpush.bf16.msra.mxu3 %v3880_v9  ;;  %2158 = vmatpush.bf16.msra.mxu0 %v4168_v28  ;;  %v4427_v9 = vld [vmem:[#allocation5 + $0x688] sm:$0xf] }
 0x10b   : > { %v1790_v20 = vpop.f32.mrf.mxu3 }
 0x10c   : > { %v1791_v59 = vadd.f32 %v1790_v20, %v5445_v46 }
 0x10d   : > { %v1888_v8 = vpop.f32.mrf.mxu2 }
 0x10e   : > { %v1840_v60 = vadd.f32 %v1839_v40, %v1791_v59  ;;  %v1822_v61 = vpop.f32.mrf.mxu0  ;;  %v1842_v7 = vpop.f32.mrf.mxu1 }
 0x10f   : > { %v5490_v63 = vadd.f32 %v1822_v61, %v1774_v62 }
 0x110   : > { %v5492_v2 = vadd.f32 %v1888_v8, %v1840_v60  ;;  %1939 = vmatmul.bf16.gmra.mxu3 %v5375_v12 }
 0x111   : > { %1988 = vmatmul.bf16.gmra.mxu0 %v5379_v13  ;;  %2037 = vmatmul.bf16.gmra.mxu1 %v5381_v25 }
 0x112   : > { %2086 = vmatmul.bf16.gmra.mxu2 %v5375_v12 }
 0x113   : > { %v1793_v11 = vpop.f32.mrf.mxu3 }
 0x114   : > { %v1794_v35 = vadd.f32 %v1793_v11, %v5445_v46 }
 0x115   : > { %v1891_v44 = vpop.f32.mrf.mxu2 }
 0x116   : > { %v1843_v53 = vadd.f32 %v1842_v7, %v1794_v35  ;;  %v1824_v43 = vpop.f32.mrf.mxu0  ;;  %v1844_v36 = vpop.f32.mrf.mxu1  ;;  %v4664_v7 = vld [vmem:[#allocation5 + $0x684] sm:$0xf]  ;;  %v4428_v35 = vor.u32 %v4669_v10, %v4427_v9 }
 0x117   : > { %v5501_v37 = vadd.f32 %v1824_v43, %v1776_v27  ;;  %v4424_v11 = vor.u32 %v4664_v7, %v4421_v3  ;;  %v3852_v27 = vor.u32 %v4525_v23, %v3851_v41  ;;  %v4391_v23 = vld [vmem:[#allocation5 + $0x640] sm:$0xf] }
 0x118   : > { %v5503_v40 = vadd.f32 %v1891_v44, %v1843_v53  ;;  %2445 = vmatpush.bf16.msrb.mxu2 %v4428_v35  ;;  %v4385_v35 = vld [vmem:[#allocation5 + $0x65c] sm:$0xf0] }
 0x119   : > { %2298 = vmatpush.bf16.msrb.mxu3 %v4424_v11  ;;  %2347 = vmatpush.bf16.msrb.mxu0 %v3852_v27  ;;  %v4660_v27 = vld [vmem:[#allocation5 + $0x660] sm:$0xf0] }
 0x11b   : > { %v1795_v20 = vpop.f32.mrf.mxu3 }
 0x11c   : > { %v1796_v59 = vadd.f32 %v1795_v20, %v5445_v46 }
 0x11d   : > { %v1893_v62 = vpop.f32.mrf.mxu2 }
 0x11e   : > { %v1845_v47 = vadd.f32 %v1844_v36, %v1796_v59  ;;  %v1847_v8 = vpop.f32.mrf.mxu1  ;;  %v5506_v60 = vpop.f32.mrf.mxu0 }
 0x120   : > { %v5508_v61 = vadd.f32 %v1893_v62, %v1845_v47  ;;  %1944 = vmatmul.bf16.gmra.mxu3 %v5399_v48  ;;  %v4139_v62 = vld [vmem:[#allocation5 + $0x448] sm:$0xf]  ;;  %v4597_v47 = vld [vmem:[#allocation5 + $0x468] sm:$0xf0] }
 0x121   : > { %1993 = vmatmul.bf16.gmra.mxu0 %v5401_v52  ;;  %2042 = vmatmul.bf16.gmra.mxu1 %v5405_v57  ;;  %v4140_v7 = vor.u32 %v4597_v47, %v4139_v62 }
 0x122   : > { %2091 = vmatmul.bf16.gmra.mxu2 %v5399_v48 }
 0x123   : > { %v1798_v6 = vpop.f32.mrf.mxu3  ;;  %2396 = vmatpush.bf16.msrb.mxu1 %v4140_v7 }
 0x124   : > { %v1799_v26 = vadd.f32 %v1798_v6, %v5445_v46 }
 0x125   : > { %v1896_v24 = vpop.f32.mrf.mxu2 }
 0x126   : > { %v1848_v44 = vadd.f32 %v1847_v8, %v1799_v26  ;;  %v1849_v28 = vpop.f32.mrf.mxu1  ;;  %v5515_v53 = vpop.f32.mrf.mxu0  ;;  %v4655_v26 = vld [vmem:[#allocation5 + $0x63c] sm:$0xf] }
 0x128   : > { %v5517_v43 = vadd.f32 %v1896_v24, %v1848_v44  ;;  %v4388_v24 = vor.u32 %v4655_v26, %v4385_v35  ;;  %v3815_v44 = vld [vmem:[#allocation5 + $0x1c0] sm:$0xf]  ;;  %v4588_v26 = vld [vmem:[#allocation5 + $0x420] sm:$0xf0] }
 0x12a   : > { %2299 = vmatpush.bf16.msrb.mxu3 %v4388_v24 }
 0x12b   : > { %v1800_v36 = vpop.f32.mrf.mxu3 }
 0x12c   : > { %v1801_v50 = vadd.f32 %v1800_v36, %v5445_v46 }
 0x12d   : > { %v1898_v0 = vpop.f32.mrf.mxu2 }
 0x12e   : > { %v1850_v20 = vadd.f32 %v1849_v28, %v1801_v50  ;;  %v1852_v19 = vpop.f32.mrf.mxu1  ;;  %v5520_v59 = vpop.f32.mrf.mxu0  ;;  %v4516_v28 = vld [vmem:[#allocation5 + $0x1e0] sm:$0xf0]  ;;  %v4392_v50 = vor.u32 %v4660_v27, %v4391_v23  ;;  %v1867_v23 = vadd.f32 %v5506_v60, %v5472_v4 }
 0x130   : > { %v5522_v3 = vadd.f32 %v1898_v0, %v1850_v20  ;;  %1949 = vmatmul.bf16.gmra.mxu3 %v5419_v34  ;;  %v3816_v0 = vor.u32 %v4516_v28, %v3815_v44  ;;  %2446 = vmatpush.bf16.msrb.mxu2 %v4392_v50  ;;  %v4646_v44 = vld [vmem:[#allocation5 + $0x5f4] sm:$0xf]  ;;  %v4349_v28 = vld [vmem:[#allocation5 + $0x614] sm:$0xf0] }
 0x131   : > { %1998 = vmatmul.bf16.gmra.mxu0 %v5421_v29  ;;  %2047 = vmatmul.bf16.gmra.mxu1 %v5425_v33  ;;  %v4355_v50 = vld [vmem:[#allocation5 + $0x5f8] sm:$0xf] }
 0x132   : > { %6346 = vst [vmem:[#allocation22_spill] sm:$0xff] %v5522_v3  ;;  %2096 = vmatmul.bf16.gmra.mxu2 %v5419_v34  ;;  %2348 = vmatpush.bf16.msrb.mxu0 %v3816_v0  ;;  %v4352_v0 = vor.u32 %v4646_v44, %v4349_v28  ;;  %v1869_v44 = vadd.f32 %v5515_v53, %v5483_v45 }
 0x133   : > { %v1803_v8 = vpop.f32.mrf.mxu3 }
 0x134   : > { %v1804_v6 = vadd.f32 %v1803_v8, %v5445_v46  ;;  %2300 = vmatpush.bf16.msrb.mxu3 %v4352_v0 }
 0x135   : > { %v1901_v11 = vpop.f32.mrf.mxu2 }
 0x136   : > { %v1853_v9 = vadd.f32 %v1852_v19, %v1804_v6  ;;  %v1854_v10 = vpop.f32.mrf.mxu1  ;;  %v5529_v41 = vpop.f32.mrf.mxu0  ;;  %v4103_v6 = vld [vmem:[#allocation5 + $0x400] sm:$0xf] }
 0x137   : > { %v4104_v35 = vor.u32 %v4588_v26, %v4103_v6 }
 0x138   : > { %v5531_v36 = vadd.f32 %v1901_v11, %v1853_v9  ;;  %v5538_v11 = vperm.slane %v5441_v42, 1 }
 0x139   : > { %2397 = vmatpush.bf16.msrb.mxu1 %v4104_v35  ;;  %v3082_v35 = vmul.f32 0.125, %v1867_v23  ;;  %v4067_v23 = vld [vmem:[#allocation5 + $0x3b8] sm:$0xf] }
 0x13b   : > { %v1805_v20 = vpop.f32.mrf.mxu3 }
 0x13c   : > { %v1806_v19 = vadd.f32 %v1805_v20, %v5445_v46  ;;  %v4651_v20 = vld [vmem:[#allocation5 + $0x618] sm:$0xf0] }
 0x13d   : > { %v1903_v62 = vpop.f32.mrf.mxu2  ;;  %v4356_v6 = vor.u32 %v4651_v20, %v4355_v50  ;;  %v4579_v50 = vld [vmem:[#allocation5 + $0x3d8] sm:$0xf0] }
 0x13e   : > { %v1855_v47 = vadd.f32 %v1854_v10, %v1806_v19  ;;  %v1964_v7 = vpop.f32.mrf.mxu0  ;;  %v2013_v8 = vpop.f32.mrf.mxu1  ;;  %v3779_v19 = vld [vmem:[#allocation5 + $0x178] sm:$0xf]  ;;  %v4068_v0 = vor.u32 %v4579_v50, %v4067_v23 }
 0x13f   : > { %2447 = vmatpush.bf16.msrb.mxu2 %v4356_v6 }
 0x140   : > { %v5534_v3 = vadd.f32 %v1903_v62, %v1855_v47  ;;  %2110 = vmatmul.bf16.vlgmr.msra.gmra.mxu3 %v5352_v54  ;;  %v4507_v62 = vld [vmem:[#allocation5 + $0x198] sm:$0xf0]  ;;  %2398 = vmatpush.bf16.msrb.mxu1 %v4068_v0  ;;  %v4498_v0 = vld [vmem:[#allocation5 + $0x150] sm:$0xf0] }
 0x141   : > { %2159 = vmatmul.bf16.vlgmr.msra.gmra.mxu0 %v5403_v1  ;;  %2208 = vmatmul.bf16.vlgmr.msra.gmra.mxu1 %v5301_v31  ;;  %v3780_v26 = vor.u32 %v4507_v62, %v3779_v19  ;;  %v3085_v19 = vmul.f32 0.125, %v1869_v44  ;;  %v4642_v44 = vld [vmem:[#allocation5 + $0x5d0] sm:$0xf0] }
 0x142   : > { %2257 = vmatmul.bf16.vlgmr.msra.gmra.mxu2 %v5352_v54 }
 0x143   : > { %v1915_v46 = vpop.f32.mrf.mxu3  ;;  %2349 = vmatpush.bf16.msrb.mxu0 %v3780_v26 }
 0x144   : > { %v1916_v9 = vadd.f32 %v1915_v46, %v5538_v11 }
 0x145   : > { %v5547_v10 = vpop.f32.mrf.mxu2 }
 0x146   : > { %v1965_v24 = vadd.f32 %v1964_v7, %v1916_v9  ;;  %v1966_v42 = vpop.f32.mrf.mxu0  ;;  %v2015_v27 = vpop.f32.mrf.mxu1 }
 0x148   : > { %v2014_v47 = vadd.f32 %v2013_v8, %v1965_v24 }
 0x14a   : > { %v3083_v46 = vmul.f32 0.125, %v2014_v47 }
 0x14b   : > { %v1917_v4 = vpop.f32.mrf.mxu3 }
 0x14c   : > { %v3130_v60 = vpack.c.bf16 %v3083_v46, %v3082_v35  ;;  %v1918_v7 = vadd.f32 %v1917_v4, %v5538_v11  ;;  %v4637_v46 = vld [vmem:[#allocation5 + $0x5ac] sm:$0xf]  ;;  %v4313_v4 = vld [vmem:[#allocation5 + $0x5cc] sm:$0xf0] }
 0x14d   : > { %v5552_v9 = vpop.f32.mrf.mxu2 }
 0x14e   : > { %3162 = vst [vmem:[%s5557_s3] sm:$0xff] %v3130_v60  ;;  %v1967_v8 = vadd.f32 %v1966_v42, %v1918_v7  ;;  %v1969_v24 = vpop.f32.mrf.mxu0  ;;  %v2018_v28 = vpop.f32.mrf.mxu1  ;;  %v4316_v60 = vor.u32 %v4637_v46, %v4313_v4  ;;  %v4319_v7 = vld [vmem:[#allocation5 + $0x5b0] sm:$0xf]  ;;  %v4570_v4 = vld [vmem:[#allocation5 + $0x390] sm:$0xf0] }
 0x14f   : > { %v4320_v50 = vor.u32 %v4642_v44, %v4319_v7  ;;  %v4031_v46 = vld [vmem:[#allocation5 + $0x370] sm:$0xf] }
 0x150   : > { %v2016_v20 = vadd.f32 %v2015_v27, %v1967_v8  ;;  %2115 = vmatmul.bf16.gmra.mxu3 %v5377_v16  ;;  %v1872_v27 = vadd.f32 %v5520_v59, %v5490_v63  ;;  %v3743_v8 = vld [vmem:[#allocation5 + $0x130] sm:$0xf] }
 0x151   : > { %2164 = vmatmul.bf16.gmra.mxu0 %v5423_v30  ;;  %2213 = vmatmul.bf16.gmra.mxu1 %v5326_v14 }
 0x152   : > { %v3086_v45 = vmul.f32 0.125, %v2016_v20  ;;  %2262 = vmatmul.bf16.gmra.mxu2 %v5377_v16  ;;  %2301 = vmatpush.bf16.msrb.mxu3 %v4316_v60  ;;  %v3744_v20 = vor.u32 %v4498_v0, %v3743_v8  ;;  %v4628_v0 = vld [vmem:[#allocation5 + $0x564] sm:$0xf] }
 0x153   : > { %v1920_v53 = vpop.f32.mrf.mxu3  ;;  %2448 = vmatpush.bf16.msrb.mxu2 %v4320_v50 }
 0x154   : > { %v3132_v42 = vpack.c.bf16 %v3086_v45, %v3085_v19  ;;  %v1921_v62 = vadd.f32 %v1920_v53, %v5538_v11  ;;  %v3088_v19 = vmul.f32 0.125, %v1872_v27  ;;  %2350 = vmatpush.bf16.msrb.mxu0 %v3744_v20  ;;  %v4032_v27 = vor.u32 %v4570_v4, %v4031_v46  ;;  %v4277_v20 = vld [vmem:[#allocation5 + $0x584] sm:$0xf0] }
 0x155   : > { %v5565_v47 = vpop.f32.mrf.mxu2  ;;  %v3094_v4 = vmul.f32 0.125, %v5453_v17  ;;  %v3097_v17 = vmul.f32 0.125, %v5458_v22  ;;  %v4624_v22 = vld [vmem:[#allocation5 + $0x540] sm:$0xf0] }
 0x156   : > { %3164 = vst [vmem:[%s5557_s3 + $0xc] sm:$0xff] %v3132_v42  ;;  %v1970_v6 = vadd.f32 %v1969_v24, %v1921_v62  ;;  %v1971_v26 = vpop.f32.mrf.mxu0  ;;  %v2020_v35 = vpop.f32.mrf.mxu1  ;;  %v1874_v42 = vadd.f32 %v5529_v41, %v5501_v37  ;;  %2399 = vmatpush.bf16.msrb.mxu1 %v4032_v27 }
 0x158   : > { %v2019_v23 = vadd.f32 %v2018_v28, %v1970_v6  ;;  %v3091_v7 = vmul.f32 0.125, %v1874_v42 }
 0x15a   : > { %v3089_v45 = vmul.f32 0.125, %v2019_v23 }
 0x15b   : > { %v1922_v63 = vpop.f32.mrf.mxu3 }
 0x15c   : > { %v3134_v59 = vpack.c.bf16 %v3089_v45, %v3088_v19  ;;  %v1923_v24 = vadd.f32 %v1922_v63, %v5538_v11  ;;  %v4280_v19 = vor.u32 %v4628_v0, %v4277_v20  ;;  %v4283_v45 = vld [vmem:[#allocation5 + $0x568] sm:$0xf]  ;;  %v4633_v63 = vld [vmem:[#allocation5 + $0x588] sm:$0xf0] }
 0x15d   : > { %v5571_v53 = vpop.f32.mrf.mxu2  ;;  %v4284_v42 = vor.u32 %v4633_v63, %v4283_v45 }
 0x15e   : > { %3166 = vst [vmem:[%s5557_s3 + $0x18] sm:$0xff] %v3134_v59  ;;  %v1972_v62 = vadd.f32 %v1971_v26, %v1923_v24  ;;  %v1974_v28 = vpop.f32.mrf.mxu0  ;;  %v2023_v6 = vpop.f32.mrf.mxu1  ;;  %v3707_v59 = vld [vmem:[#allocation5 + $0xe8] sm:$0xf]  ;;  %2302 = vmatpush.bf16.msrb.mxu3 %v4280_v19 }
 0x15f   : > { %2449 = vmatpush.bf16.msrb.mxu2 %v4284_v42 }
 0x160   : > { %v2021_v60 = vadd.f32 %v2020_v35, %v1972_v62  ;;  %2120 = vmatmul.bf16.gmra.mxu3 %v5305_v38  ;;  %v4489_v62 = vld [vmem:[#allocation5 + $0x108] sm:$0xf0] }
 0x161   : > { %2169 = vmatmul.bf16.gmra.mxu0 %v5307_v39  ;;  %2218 = vmatmul.bf16.gmra.mxu1 %v5303_v32  ;;  %v3708_v46 = vor.u32 %v4489_v62, %v3707_v59  ;;  %v4619_v62 = vld [vmem:[#allocation5 + $0x51c] sm:$0xf] }
 0x162   : > { %v3092_v44 = vmul.f32 0.125, %v2021_v60  ;;  %2267 = vmatmul.bf16.gmra.mxu2 %v5305_v38 }
 0x163   : > { %v1925_v37 = vpop.f32.mrf.mxu3  ;;  %2351 = vmatpush.bf16.msrb.mxu0 %v3708_v46  ;;  %v4241_v46 = vld [vmem:[#allocation5 + $0x53c] sm:$0xf0] }
 0x164   : > { %v3136_v41 = vpack.c.bf16 %v3092_v44, %v3091_v7  ;;  %v1926_v26 = vadd.f32 %v1925_v37, %v5538_v11 }
 0x165   : > { %v5581_v8 = vpop.f32.mrf.mxu2 }
 0x166   : > { %3168 = vst [vmem:[%s5557_s3 + $0x24] sm:$0xff] %v3136_v41  ;;  %v1975_v23 = vadd.f32 %v1974_v28, %v1926_v26  ;;  %v1976_v35 = vpop.f32.mrf.mxu0  ;;  %v2025_v50 = vpop.f32.mrf.mxu1 }
 0x168   : > { %v2024_v24 = vadd.f32 %v2023_v6, %v1975_v23  ;;  %v3995_v6 = vld [vmem:[#allocation5 + $0x328] sm:$0xf]  ;;  %v4561_v23 = vld [vmem:[#allocation5 + $0x348] sm:$0xf0] }
 0x169   : > { %v3996_v0 = vor.u32 %v4561_v23, %v3995_v6  ;;  %v3100_v23 = vmul.f32 0.125, %v5467_v58  ;;  %v3103_v58 = vmul.f32 0.125, %v5474_v5  ;;  %v4615_v5 = vld [vmem:[#allocation5 + $0x4f8] sm:$0xf0] }
 0x16a   : > { %v3095_v27 = vmul.f32 0.125, %v2024_v24 }
 0x16b   : > { %v1927_v60 = vpop.f32.mrf.mxu3  ;;  %2400 = vmatpush.bf16.msrb.mxu1 %v3996_v0 }
 0x16c   : > { %v3138_v28 = vpack.c.bf16 %v3095_v27, %v3094_v4  ;;  %v1928_v7 = vadd.f32 %v1927_v60, %v5538_v11  ;;  %v4244_v4 = vor.u32 %v4619_v62, %v4241_v46  ;;  %v4247_v27 = vld [vmem:[#allocation5 + $0x520] sm:$0xf] }
 0x16d   : > { %v5586_v44 = vpop.f32.mrf.mxu2  ;;  %v3671_v60 = vld [vmem:[#allocation5 + $0xa0] sm:$0xf] }
 0x16e   : > { %3170 = vst [vmem:[%s5557_s3 + $0x30] sm:$0xff] %v3138_v28  ;;  %v1977_v37 = vadd.f32 %v1976_v35, %v1928_v7  ;;  %v1979_v41 = vpop.f32.mrf.mxu0  ;;  %v2028_v26 = vpop.f32.mrf.mxu1  ;;  %v4248_v7 = vor.u32 %v4624_v22, %v4247_v27  ;;  %2303 = vmatpush.bf16.msrb.mxu3 %v4244_v4 }
 0x170   : > { %v2026_v20 = vadd.f32 %v2025_v50, %v1977_v37  ;;  %2125 = vmatmul.bf16.gmra.mxu3 %v5330_v18  ;;  %v4480_v37 = vld [vmem:[#allocation5 + $0xc0] sm:$0xf0]  ;;  %2450 = vmatpush.bf16.msrb.mxu2 %v4248_v7 }
 0x171   : > { %2174 = vmatmul.bf16.gmra.mxu0 %v5332_v21  ;;  %2223 = vmatmul.bf16.gmra.mxu1 %v5328_v15  ;;  %v3672_v6 = vor.u32 %v4480_v37, %v3671_v60  ;;  %v4610_v37 = vld [vmem:[#allocation5 + $0x4d4] sm:$0xf] }
 0x172   : > { %v3098_v19 = vmul.f32 0.125, %v2026_v20  ;;  %2272 = vmatmul.bf16.gmra.mxu2 %v5330_v18 }
 0x173   : > { %v1930_v35 = vpop.f32.mrf.mxu3  ;;  %2352 = vmatpush.bf16.msrb.mxu0 %v3672_v6  ;;  %v4205_v6 = vld [vmem:[#allocation5 + $0x4f4] sm:$0xf0] }
 0x174   : > { %v3140_v45 = vpack.c.bf16 %v3098_v19, %v3097_v17  ;;  %v1931_v63 = vadd.f32 %v1930_v35, %v5538_v11 }
 0x175   : > { %v5595_v59 = vpop.f32.mrf.mxu2 }
 0x176   : > { %3172 = vst [vmem:[%s5557_s3 + $0x3c] sm:$0xff] %v3140_v45  ;;  %v1980_v50 = vadd.f32 %v1979_v41, %v1931_v63  ;;  %v1981_v24 = vpop.f32.mrf.mxu0  ;;  %v2030_v42 = vpop.f32.mrf.mxu1 }
 0x178   : > { %v2029_v28 = vadd.f32 %v2028_v26, %v1980_v50  ;;  %v3959_v26 = vld [vmem:[#allocation5 + $0x2e0] sm:$0xf]  ;;  %v4552_v50 = vld [vmem:[#allocation5 + $0x300] sm:$0xf0] }
 0x179   : > { %v3960_v62 = vor.u32 %v4552_v50, %v3959_v26  ;;  %v3106_v50 = vmul.f32 0.125, %v5485_v49  ;;  %v3109_v49 = vmul.f32 0.125, %v5492_v2  ;;  %v3599_v2 = vld [vmem:[#allocation5 + $0x10] sm:$0xf] }
 0x17a   : > { %v3101_v0 = vmul.f32 0.125, %v2029_v28 }
 0x17b   : > { %v1932_v20 = vpop.f32.mrf.mxu3  ;;  %2401 = vmatpush.bf16.msrb.mxu1 %v3960_v62 }
 0x17c   : > { %v3142_v41 = vpack.c.bf16 %v3101_v0, %v3100_v23  ;;  %v1933_v17 = vadd.f32 %v1932_v20, %v5538_v11  ;;  %v4208_v23 = vor.u32 %v4610_v37, %v4205_v6  ;;  %v4211_v0 = vld [vmem:[#allocation5 + $0x4d8] sm:$0xf] }
 0x17d   : > { %v5600_v19 = vpop.f32.mrf.mxu2  ;;  %v3635_v20 = vld [vmem:[#allocation5 + $0x58] sm:$0xf] }
 0x17e   : > { %3174 = vst [vmem:[%s5557_s3 + $0x48] sm:$0xff] %v3142_v41  ;;  %v1982_v35 = vadd.f32 %v1981_v24, %v1933_v17  ;;  %v1984_v45 = vpop.f32.mrf.mxu0  ;;  %v2033_v63 = vpop.f32.mrf.mxu1  ;;  %v4212_v17 = vor.u32 %v4615_v5, %v4211_v0  ;;  %2304 = vmatpush.bf16.msrb.mxu3 %v4208_v23 }
 0x180   : > { %v2031_v46 = vadd.f32 %v2030_v42, %v1982_v35  ;;  %2130 = vmatmul.bf16.gmra.mxu3 %v5354_v55  ;;  %v4471_v35 = vld [vmem:[#allocation5 + $0x78] sm:$0xf0]  ;;  %2451 = vmatpush.bf16.msrb.mxu2 %v4212_v17 }
 0x181   : > { %2179 = vmatmul.bf16.gmra.mxu0 %v5357_v56  ;;  %2228 = vmatmul.bf16.gmra.mxu1 %v5350_v51  ;;  %v3636_v26 = vor.u32 %v4471_v35, %v3635_v20  ;;  %v4601_v35 = vld [vmem:[#allocation5 + $0x48c] sm:$0xf] }
 0x182   : > { %v3104_v4 = vmul.f32 0.125, %v2031_v46  ;;  %2277 = vmatmul.bf16.gmra.mxu2 %v5354_v55 }
 0x183   : > { %v1935_v24 = vpop.f32.mrf.mxu3  ;;  %2353 = vmatpush.bf16.msrb.mxu0 %v3636_v26  ;;  %v4169_v26 = vld [vmem:[#allocation5 + $0x4ac] sm:$0xf0] }
 0x184   : > { %v3144_v27 = vpack.c.bf16 %v3104_v4, %v3103_v58  ;;  %v1936_v22 = vadd.f32 %v1935_v24, %v5538_v11 }
 0x185   : > { %v5609_v60 = vpop.f32.mrf.mxu2 }
 0x186   : > { %3176 = vst [vmem:[%s5557_s3 + $0x54] sm:$0xff] %v3144_v27  ;;  %v1985_v42 = vadd.f32 %v1984_v45, %v1936_v22  ;;  %v1986_v28 = vpop.f32.mrf.mxu0  ;;  %v2035_v7 = vpop.f32.mrf.mxu1 }
 0x188   : > { %v2034_v41 = vadd.f32 %v2033_v63, %v1985_v42  ;;  %v3923_v63 = vld [vmem:[#allocation5 + $0x298] sm:$0xf]  ;;  %v4543_v42 = vld [vmem:[#allocation5 + $0x2b8] sm:$0xf0] }
 0x189   : > { %v3924_v37 = vor.u32 %v4543_v42, %v3923_v63  ;;  %v3112_v42 = vmul.f32 0.125, %v5503_v40  ;;  %v3115_v40 = vmul.f32 0.125, %v5508_v61 }
 0x18a   : > { %v3107_v62 = vmul.f32 0.125, %v2034_v41 }
 0x18b   : > { %v1937_v46 = vpop.f32.mrf.mxu3  ;;  %2402 = vmatpush.bf16.msrb.mxu1 %v3924_v37 }
 0x18c   : > { %v3146_v45 = vpack.c.bf16 %v3107_v62, %v3106_v50  ;;  %v1938_v58 = vadd.f32 %v1937_v46, %v5538_v11  ;;  %v4172_v50 = vor.u32 %v4601_v35, %v4169_v26  ;;  %v4175_v62 = vld [vmem:[#allocation5 + $0x490] sm:$0xf]  ;;  %v4606_v46 = vld [vmem:[#allocation5 + $0x4b0] sm:$0xf0] }
 0x18d   : > { %v5614_v4 = vpop.f32.mrf.mxu2 }
 0x18e   : > { %3178 = vst [vmem:[%s5557_s3 + $0x60] sm:$0xff] %v3146_v45  ;;  %v1987_v24 = vadd.f32 %v1986_v28, %v1938_v58  ;;  %v1989_v27 = vpop.f32.mrf.mxu0  ;;  %v2038_v22 = vpop.f32.mrf.mxu1  ;;  %v4176_v58 = vor.u32 %v4606_v46, %v4175_v62  ;;  %2305 = vmatpush.bf16.msrb.mxu3 %v4172_v50 }
 0x190   : > { %v2036_v6 = vadd.f32 %v2035_v7, %v1987_v24  ;;  %2135 = vmatmul.bf16.gmra.mxu3 %v5379_v13  ;;  %v4462_v24 = vld [vmem:[#allocation5 + $0x30] sm:$0xf0]  ;;  %2452 = vmatpush.bf16.msrb.mxu2 %v4176_v58 }
 0x191   : > { %2184 = vmatmul.bf16.gmra.mxu0 %v5381_v25  ;;  %2233 = vmatmul.bf16.gmra.mxu1 %v5375_v12  ;;  %v3600_v63 = vor.u32 %v4462_v24, %v3599_v2  ;;  %v4521_v24 = vld [vmem:[#allocation5 + $0x20c] sm:$0xf] }
 0x192   : > { %v3110_v23 = vmul.f32 0.125, %v2036_v6  ;;  %2282 = vmatmul.bf16.gmra.mxu2 %v5379_v13 }
 0x193   : > { %v1940_v28 = vpop.f32.mrf.mxu3  ;;  %2354 = vmatpush.bf16.msrb.mxu0 %v3600_v63  ;;  %v3853_v63 = vld [vmem:[#allocation5 + $0x22c] sm:$0xf0] }
 0x194   : > { %v3148_v0 = vpack.c.bf16 %v3110_v23, %v3109_v49  ;;  %v1941_v5 = vadd.f32 %v1940_v28, %v5538_v11  ;;  %v3887_v23 = vld [vmem:[#allocation5 + $0x250] sm:$0xf]  ;;  %v4534_v28 = vld [vmem:[#allocation5 + $0x270] sm:$0xf0] }
 0x195   : > { %v5623_v20 = vpop.f32.mrf.mxu2 }
 0x196   : > { %3180 = vst [vmem:[%s5557_s3 + $0x6c] sm:$0xff] %v3148_v0  ;;  %v1990_v7 = vadd.f32 %v1989_v27, %v1941_v5  ;;  %v1991_v41 = vpop.f32.mrf.mxu0  ;;  %v2040_v17 = vpop.f32.mrf.mxu1  ;;  %v3888_v5 = vor.u32 %v4534_v28, %v3887_v23  ;;  %v4141_v23 = vld [vmem:[#allocation5 + $0x46c] sm:$0xf0] }
 0x198   : > { %v2039_v45 = vadd.f32 %v2038_v22, %v1990_v7  ;;  %2403 = vmatpush.bf16.msrb.mxu1 %v3888_v5  ;;  %v3118_v5 = vmul.f32 0.125, %v5517_v43  ;;  %v6347_v43 = vld [vmem:[#allocation22_spill] sm:$0xff] }
 0x19a   : > { %v3113_v37 = vmul.f32 0.125, %v2039_v45 }
 0x19b   : > { %v1942_v6 = vpop.f32.mrf.mxu3 }
 0x19c   : > { %v3150_v27 = vpack.c.bf16 %v3113_v37, %v3112_v42  ;;  %v1943_v49 = vadd.f32 %v1942_v6, %v5538_v11  ;;  %v3856_v42 = vor.u32 %v4521_v24, %v3853_v63  ;;  %v3859_v37 = vld [vmem:[#allocation5 + $0x210] sm:$0xf]  ;;  %v4526_v6 = vld [vmem:[#allocation5 + $0x230] sm:$0xf0] }
 0x19d   : > { %v5628_v0 = vpop.f32.mrf.mxu2 }
 0x19e   : > { %3182 = vst [vmem:[%s5557_s3 + $0x78] sm:$0xff] %v3150_v27  ;;  %v1992_v22 = vadd.f32 %v1991_v41, %v1943_v49  ;;  %v1994_v7 = vpop.f32.mrf.mxu0  ;;  %v2043_v35 = vpop.f32.mrf.mxu1  ;;  %v4593_v27 = vld [vmem:[#allocation5 + $0x44c] sm:$0xf]  ;;  %v3860_v49 = vor.u32 %v4526_v6, %v3859_v37  ;;  %2494 = vmatpush.bf16.msra.mxu3 %v3856_v42  ;;  %v3121_v42 = vmul.f32 0.125, %v6347_v43 }
 0x19f   : > { %v4144_v28 = vor.u32 %v4593_v27, %v4141_v23  ;;  %v3823_v23 = vld [vmem:[#allocation5 + $0x1c8] sm:$0xf] }
 0x1a0   : > { %v2041_v26 = vadd.f32 %v2040_v17, %v1992_v22  ;;  %2140 = vmatmul.bf16.gmra.mxu3 %v5401_v52  ;;  %2641 = vmatpush.bf16.msra.mxu2 %v3860_v49  ;;  %v3817_v49 = vld [vmem:[#allocation5 + $0x1e4] sm:$0xf0] }
 0x1a1   : > { %2189 = vmatmul.bf16.gmra.mxu0 %v5405_v57  ;;  %2238 = vmatmul.bf16.gmra.mxu1 %v5399_v48 }
 0x1a2   : > { %v3116_v50 = vmul.f32 0.125, %v2041_v26  ;;  %2287 = vmatmul.bf16.gmra.mxu2 %v5401_v52  ;;  %2543 = vmatpush.bf16.msra.mxu0 %v4144_v28 }
 0x1a3   : > { %v1945_v62 = vpop.f32.mrf.mxu3 }
 0x1a4   : > { %v3152_v46 = vpack.c.bf16 %v3116_v50, %v3115_v40  ;;  %v1946_v2 = vadd.f32 %v1945_v62, %v5538_v11  ;;  %v4665_v50 = vld [vmem:[#allocation5 + $0x68c] sm:$0xf]  ;;  %v4429_v62 = vld [vmem:[#allocation5 + $0x6ac] sm:$0xf0] }
 0x1a5   : > { %v5637_v41 = vpop.f32.mrf.mxu2 }
 0x1a6   : > { %3184 = vst [vmem:[%s5557_s3 + $0x84] sm:$0xff] %v3152_v46  ;;  %v1995_v45 = vadd.f32 %v1994_v7, %v1946_v2  ;;  %v1996_v17 = vpop.f32.mrf.mxu0  ;;  %v2045_v58 = vpop.f32.mrf.mxu1  ;;  %v4432_v2 = vor.u32 %v4665_v50, %v4429_v62 }
 0x1a8   : > { %v2044_v61 = vadd.f32 %v2043_v35, %v1995_v45  ;;  %2592 = vmatpush.bf16.msra.mxu1 %v4432_v2 }
 0x1aa   : > { %v3119_v22 = vmul.f32 0.125, %v2044_v61  ;;  %v4512_v61 = vld [vmem:[#allocation5 + $0x1c4] sm:$0xf] }
 0x1ab   : > { %v1947_v26 = vpop.f32.mrf.mxu3  ;;  %v3820_v28 = vor.u32 %v4512_v61, %v3817_v49  ;;  %v4656_v61 = vld [vmem:[#allocation5 + $0x644] sm:$0xf]  ;;  %v4393_v49 = vld [vmem:[#allocation5 + $0x664] sm:$0xf0] }
 0x1ac   : > { %v3154_v7 = vpack.c.bf16 %v3119_v22, %v3118_v5  ;;  %v1948_v40 = vadd.f32 %v1947_v26, %v5538_v11  ;;  %v4517_v5 = vld [vmem:[#allocation5 + $0x1e8] sm:$0xf0]  ;;  %v4584_v22 = vld [vmem:[#allocation5 + $0x404] sm:$0xf]  ;;  %v4105_v26 = vld [vmem:[#allocation5 + $0x424] sm:$0xf0] }
 0x1ad   : > { %v5642_v46 = vpop.f32.mrf.mxu2  ;;  %v3824_v62 = vor.u32 %v4517_v5, %v3823_v23  ;;  %v4108_v2 = vor.u32 %v4584_v22, %v4105_v26  ;;  %2495 = vmatpush.bf16.msra.mxu3 %v3820_v28 }
 0x1ae   : > { %3186 = vst [vmem:[%s5557_s3 + $0x90] sm:$0xff] %v3154_v7  ;;  %v1997_v35 = vadd.f32 %v1996_v17, %v1948_v40  ;;  %v1999_v45 = vpop.f32.mrf.mxu0  ;;  %v2048_v24 = vpop.f32.mrf.mxu1 }
 0x1af   : > { %2642 = vmatpush.bf16.msra.mxu2 %v3824_v62  ;;  %2544 = vmatpush.bf16.msra.mxu0 %v4108_v2 }
 0x1b0   : > { %v2046_v63 = vadd.f32 %v2045_v58, %v1997_v35  ;;  %2145 = vmatmul.bf16.gmra.mxu3 %v5421_v29 }
 0x1b1   : > { %2194 = vmatmul.bf16.gmra.mxu0 %v5425_v33  ;;  %2243 = vmatmul.bf16.gmra.mxu1 %v5419_v34 }
 0x1b2   : > { %v3122_v37 = vmul.f32 0.125, %v2046_v63  ;;  %2292 = vmatmul.bf16.gmra.mxu2 %v5421_v29  ;;  %v3124_v63 = vmul.f32 0.125, %v5531_v36 }
 0x1b3   : > { %v1950_v6 = vpop.f32.mrf.mxu3 }
 0x1b4   : > { %v3156_v27 = vpack.c.bf16 %v3122_v37, %v3121_v42  ;;  %v1951_v17 = vadd.f32 %v1950_v6, %v5538_v11 }
 0x1b5   : > { %v5651_v58 = vpop.f32.mrf.mxu2 }
 0x1b6   : > { %3188 = vst [vmem:[%s5557_s3 + $0x9c] sm:$0xff] %v3156_v27  ;;  %v2000_v7 = vadd.f32 %v1999_v45, %v1951_v17  ;;  %v2001_v40 = vpop.f32.mrf.mxu0  ;;  %v2050_v50 = vpop.f32.mrf.mxu1  ;;  %v4396_v45 = vor.u32 %v4656_v61, %v4393_v49  ;;  %v5658_v17 = vld [vmem:[#allocation7] sm:$0xff]  ;;  %v4575_v61 = vld [vmem:[#allocation5 + $0x3bc] sm:$0xf] }
 0x1b7   : > { %v5661_v23 = vperm.slane %v5658_v17, 2  ;;  %v5665_v36 = vperm.slane %v5658_v17, 3 }
 0x1b8   : > { %v2049_v35 = vadd.f32 %v2048_v24, %v2000_v7  ;;  %2593 = vmatpush.bf16.msra.mxu1 %v4396_v45 }
 0x1b9   : > { %v2063_v26 = vadd.f32 %v5547_v10, %v5661_v23 }
 0x1ba   : > { %v3125_v43 = vmul.f32 0.125, %v2049_v35  ;;  %v4503_v35 = vld [vmem:[#allocation5 + $0x17c] sm:$0xf] }
 0x1bb   : > { %v1952_v42 = vpop.f32.mrf.mxu3 }
 0x1bc   : > { %v3158_v37 = vpack.c.bf16 %v3125_v43, %v3124_v63  ;;  %v1953_v6 = vadd.f32 %v1952_v42, %v5538_v11  ;;  %v3127_v11 = vmul.f32 0.125, %v5534_v3  ;;  %v3781_v63 = vld [vmem:[#allocation5 + $0x19c] sm:$0xf0] }
 0x1bd   : > { %v5656_v27 = vpop.f32.mrf.mxu2  ;;  %v3787_v43 = vld [vmem:[#allocation5 + $0x180] sm:$0xf] }
 0x1be   : > { %3190 = vst [vmem:[%s5557_s3 + $0xa8] sm:$0xff] %v3158_v37  ;;  %v2002_v24 = vadd.f32 %v2001_v40, %v1953_v6  ;;  %v2160_v28 = vpop.f32.mrf.mxu0  ;;  %v2209_v5 = vpop.f32.mrf.mxu1  ;;  %v3784_v37 = vor.u32 %v4503_v35, %v3781_v63  ;;  %v4508_v6 = vld [vmem:[#allocation5 + $0x1a0] sm:$0xf0]  ;;  %v4069_v3 = vld [vmem:[#allocation5 + $0x3dc] sm:$0xf0] }
 0x1bf   : > { %v2210_v40 = vadd.f32 %v2209_v5, %v5665_v36  ;;  %v3788_v5 = vor.u32 %v4508_v6, %v3787_v43 }
 0x1c0   : > { %v2051_v22 = vadd.f32 %v2050_v50, %v2002_v24  ;;  %2306 = vmatmul.bf16.vlgmr.msrb.gmra.mxu3 %v5403_v1 }
 0x1c1   : > { %2355 = vmatmul.bf16.vlgmr.msrb.gmra.mxu0 %v5301_v31  ;;  %2404 = vmatmul.bf16.vlgmr.msrb.gmra.mxu1 %v5352_v54 }
 0x1c2   : > { %v3128_v7 = vmul.f32 0.125, %v2051_v22  ;;  %2453 = vmatmul.bf16.vlgmr.msrb.gmra.mxu2 %v5403_v1  ;;  %v4072_v22 = vor.u32 %v4575_v61, %v4069_v3  ;;  %2496 = vmatpush.bf16.msra.mxu3 %v3784_v37 }
 0x1c3   : > { %v2111_v62 = vpop.f32.mrf.mxu3  ;;  %2643 = vmatpush.bf16.msra.mxu2 %v3788_v5  ;;  %v4494_v5 = vld [vmem:[#allocation5 + $0x134] sm:$0xf] }
 0x1c4   : > { %v3160_v2 = vpack.c.bf16 %v3128_v7, %v3127_v11  ;;  %v2112_v50 = vadd.f32 %v2111_v62, %v2063_v26  ;;  %2545 = vmatpush.bf16.msra.mxu0 %v4072_v22  ;;  %v2065_v26 = vadd.f32 %v5552_v9, %v5661_v23  ;;  %v2068_v9 = vadd.f32 %v5565_v47, %v5661_v23  ;;  %v3745_v22 = vld [vmem:[#allocation5 + $0x154] sm:$0xf0] }
 0x1c5   : > { %v2258_v42 = vpop.f32.mrf.mxu2 }
 0x1c6   : > { %3192 = vst [vmem:[%s5557_s3 + $0xb4] sm:$0xff] %v3160_v2  ;;  %v2161_v49 = vadd.f32 %v2160_v28, %v2112_v50  ;;  %v5676_v10 = vadd.f32 %v2258_v42, %v2210_v40  ;;  %v2162_v45 = vpop.f32.mrf.mxu0  ;;  %v2211_v24 = vpop.f32.mrf.mxu1  ;;  %v4647_v28 = vld [vmem:[#allocation5 + $0x5fc] sm:$0xf]  ;;  %v4357_v40 = vld [vmem:[#allocation5 + $0x61c] sm:$0xf0] }
 0x1c7   : > { %v2212_v35 = vadd.f32 %v2211_v24, %v5665_v36  ;;  %v4360_v63 = vor.u32 %v4647_v28, %v4357_v40 }
 0x1c8   : > { %v3084_v11 = vmul.f32 0.125, %v2161_v49 }
 0x1c9   : > { %2594 = vmatpush.bf16.msra.mxu1 %v4360_v63  ;;  %v4033_v63 = vld [vmem:[#allocation5 + $0x394] sm:$0xf0] }
 0x1ca   : > { %v3131_v7 = vpack.c.bf16 %v3084_v11, %v3084_v11 }
 0x1cb   : > { %v2113_v62 = vpop.f32.mrf.mxu3 }
 0x1cc   : > { %3163 = vst [vmem:[%s5557_s3 + $0x8] sm:$0xf] %v3131_v7  ;;  %v2114_v2 = vadd.f32 %v2113_v62, %v2065_v26  ;;  %v3748_v26 = vor.u32 %v4494_v5, %v3745_v22  ;;  %v3751_v7 = vld [vmem:[#allocation5 + $0x138] sm:$0xf]  ;;  %v4499_v62 = vld [vmem:[#allocation5 + $0x158] sm:$0xf0] }
 0x1cd   : > { %v2260_v50 = vpop.f32.mrf.mxu2 }
 0x1ce   : > { %v2163_v43 = vadd.f32 %v2162_v45, %v2114_v2  ;;  %v5682_v42 = vadd.f32 %v2260_v50, %v2212_v35  ;;  %v2165_v37 = vpop.f32.mrf.mxu0  ;;  %v2214_v6 = vpop.f32.mrf.mxu1  ;;  %v4566_v35 = vld [vmem:[#allocation5 + $0x374] sm:$0xf]  ;;  %v3752_v50 = vor.u32 %v4499_v62, %v3751_v7  ;;  %2497 = vmatpush.bf16.msra.mxu3 %v3748_v26 }
 0x1cf   : > { %v2215_v49 = vadd.f32 %v2214_v6, %v5665_v36 }
 0x1d0   : > { %v3087_v61 = vmul.f32 0.125, %v2163_v43  ;;  %2311 = vmatmul.bf16.gmra.mxu3 %v5423_v30  ;;  %v4036_v43 = vor.u32 %v4566_v35, %v4033_v63  ;;  %2644 = vmatpush.bf16.msra.mxu2 %v3752_v50  ;;  %v4485_v63 = vld [vmem:[#allocation5 + $0xec] sm:$0xf] }
 0x1d1   : > { %2360 = vmatmul.bf16.gmra.mxu0 %v5326_v14  ;;  %2409 = vmatmul.bf16.gmra.mxu1 %v5377_v16 }
 0x1d2   : > { %v3133_v3 = vpack.c.bf16 %v3087_v61, %v3087_v61  ;;  %2458 = vmatmul.bf16.gmra.mxu2 %v5423_v30  ;;  %2546 = vmatpush.bf16.msra.mxu0 %v4036_v43  ;;  %v2070_v61 = vadd.f32 %v5571_v53, %v5661_v23  ;;  %v2073_v53 = vadd.f32 %v5581_v8, %v5661_v23  ;;  %v3709_v43 = vld [vmem:[#allocation5 + $0x10c] sm:$0xf0] }
 0x1d3   : > { %v2116_v45 = vpop.f32.mrf.mxu3 }
 0x1d4   : > { %3165 = vst [vmem:[%s5557_s3 + $0x14] sm:$0xf] %v3133_v3  ;;  %v2117_v24 = vadd.f32 %v2116_v45, %v2068_v9 }
 0x1d5   : > { %v2263_v11 = vpop.f32.mrf.mxu2 }
 0x1d6   : > { %v2166_v2 = vadd.f32 %v2165_v37, %v2117_v24  ;;  %v5692_v28 = vadd.f32 %v2263_v11, %v2215_v49  ;;  %v2167_v47 = vpop.f32.mrf.mxu0  ;;  %v2216_v40 = vpop.f32.mrf.mxu1  ;;  %v4638_v49 = vld [vmem:[#allocation5 + $0x5b4] sm:$0xf]  ;;  %v4321_v24 = vld [vmem:[#allocation5 + $0x5d4] sm:$0xf0] }
 0x1d7   : > { %v2217_v45 = vadd.f32 %v2216_v40, %v5665_v36  ;;  %v4324_v22 = vor.u32 %v4638_v49, %v4321_v24 }
 0x1d8   : > { %v3090_v6 = vmul.f32 0.125, %v2166_v2 }
 0x1d9   : > { %2595 = vmatpush.bf16.msra.mxu1 %v4324_v22  ;;  %v3997_v22 = vld [vmem:[#allocation5 + $0x34c] sm:$0xf0] }
 0x1da   : > { %v3135_v9 = vpack.c.bf16 %v3090_v6, %v3090_v6 }
 0x1db   : > { %v2118_v3 = vpop.f32.mrf.mxu3 }
 0x1dc   : > { %3167 = vst [vmem:[%s5557_s3 + $0x20] sm:$0xf] %v3135_v9  ;;  %v2119_v37 = vadd.f32 %v2118_v3, %v2070_v61  ;;  %v3712_v61 = vor.u32 %v4485_v63, %v3709_v43  ;;  %v3715_v9 = vld [vmem:[#allocation5 + $0xf0] sm:$0xf]  ;;  %v4490_v3 = vld [vmem:[#allocation5 + $0x110] sm:$0xf0] }
 0x1dd   : > { %v2265_v5 = vpop.f32.mrf.mxu2 }
 0x1de   : > { %v2168_v11 = vadd.f32 %v2167_v47, %v2119_v37  ;;  %v5698_v26 = vadd.f32 %v2265_v5, %v2217_v45  ;;  %v2170_v7 = vpop.f32.mrf.mxu0  ;;  %v2219_v62 = vpop.f32.mrf.mxu1  ;;  %v4557_v45 = vld [vmem:[#allocation5 + $0x32c] sm:$0xf]  ;;  %v3716_v5 = vor.u32 %v4490_v3, %v3715_v9  ;;  %2498 = vmatpush.bf16.msra.mxu3 %v3712_v61 }
 0x1df   : > { %v2220_v40 = vadd.f32 %v2219_v62, %v5665_v36 }
 0x1e0   : > { %v3093_v35 = vmul.f32 0.125, %v2168_v11  ;;  %2316 = vmatmul.bf16.gmra.mxu3 %v5307_v39  ;;  %v4000_v11 = vor.u32 %v4557_v45, %v3997_v22  ;;  %2645 = vmatpush.bf16.msra.mxu2 %v3716_v5  ;;  %v4476_v22 = vld [vmem:[#allocation5 + $0xa4] sm:$0xf] }
 0x1e1   : > { %2365 = vmatmul.bf16.gmra.mxu0 %v5303_v32  ;;  %2414 = vmatmul.bf16.gmra.mxu1 %v5305_v38 }
 0x1e2   : > { %v3137_v2 = vpack.c.bf16 %v3093_v35, %v3093_v35  ;;  %2463 = vmatmul.bf16.gmra.mxu2 %v5307_v39  ;;  %2547 = vmatpush.bf16.msra.mxu0 %v4000_v11  ;;  %v2075_v35 = vadd.f32 %v5586_v44, %v5661_v23  ;;  %v2078_v44 = vadd.f32 %v5595_v59, %v5661_v23  ;;  %v3673_v11 = vld [vmem:[#allocation5 + $0xc4] sm:$0xf0] }
 0x1e3   : > { %v2121_v47 = vpop.f32.mrf.mxu3 }
 0x1e4   : > { %3169 = vst [vmem:[%s5557_s3 + $0x2c] sm:$0xf] %v3137_v2  ;;  %v2122_v50 = vadd.f32 %v2121_v47, %v2073_v53 }
 0x1e5   : > { %v2268_v6 = vpop.f32.mrf.mxu2 }
 0x1e6   : > { %v2171_v37 = vadd.f32 %v2170_v7, %v2122_v50  ;;  %v5708_v49 = vadd.f32 %v2268_v6, %v2220_v40  ;;  %v2172_v8 = vpop.f32.mrf.mxu0  ;;  %v2221_v24 = vpop.f32.mrf.mxu1  ;;  %v4629_v40 = vld [vmem:[#allocation5 + $0x56c] sm:$0xf]  ;;  %v4285_v50 = vld [vmem:[#allocation5 + $0x58c] sm:$0xf0] }
 0x1e7   : > { %v2222_v47 = vadd.f32 %v2221_v24, %v5665_v36  ;;  %v4288_v43 = vor.u32 %v4629_v40, %v4285_v50 }
 0x1e8   : > { %v3096_v62 = vmul.f32 0.125, %v2171_v37 }
 0x1e9   : > { %2596 = vmatpush.bf16.msra.mxu1 %v4288_v43  ;;  %v3961_v43 = vld [vmem:[#allocation5 + $0x304] sm:$0xf0] }
 0x1ea   : > { %v3139_v53 = vpack.c.bf16 %v3096_v62, %v3096_v62 }
 0x1eb   : > { %v2123_v2 = vpop.f32.mrf.mxu3 }
 0x1ec   : > { %3171 = vst [vmem:[%s5557_s3 + $0x38] sm:$0xf] %v3139_v53  ;;  %v2124_v7 = vadd.f32 %v2123_v2, %v2075_v35  ;;  %v3676_v35 = vor.u32 %v4476_v22, %v3673_v11  ;;  %v3679_v53 = vld [vmem:[#allocation5 + $0xa8] sm:$0xf]  ;;  %v4481_v2 = vld [vmem:[#allocation5 + $0xc8] sm:$0xf0] }
 0x1ed   : > { %v2270_v63 = vpop.f32.mrf.mxu2 }
 0x1ee   : > { %v2173_v6 = vadd.f32 %v2172_v8, %v2124_v7  ;;  %v5714_v61 = vadd.f32 %v2270_v63, %v2222_v47  ;;  %v2175_v9 = vpop.f32.mrf.mxu0  ;;  %v2224_v3 = vpop.f32.mrf.mxu1  ;;  %v4548_v47 = vld [vmem:[#allocation5 + $0x2e4] sm:$0xf]  ;;  %v3680_v63 = vor.u32 %v4481_v2, %v3679_v53  ;;  %2499 = vmatpush.bf16.msra.mxu3 %v3676_v35 }
 0x1ef   : > { %v2225_v24 = vadd.f32 %v2224_v3, %v5665_v36 }
 0x1f0   : > { %v3099_v45 = vmul.f32 0.125, %v2173_v6  ;;  %2321 = vmatmul.bf16.gmra.mxu3 %v5332_v21  ;;  %v3964_v6 = vor.u32 %v4548_v47, %v3961_v43  ;;  %2646 = vmatpush.bf16.msra.mxu2 %v3680_v63  ;;  %v4467_v43 = vld [vmem:[#allocation5 + $0x5c] sm:$0xf] }
 0x1f1   : > { %2370 = vmatmul.bf16.gmra.mxu0 %v5328_v15  ;;  %2419 = vmatmul.bf16.gmra.mxu1 %v5330_v18 }
 0x1f2   : > { %v3141_v37 = vpack.c.bf16 %v3099_v45, %v3099_v45  ;;  %2468 = vmatmul.bf16.gmra.mxu2 %v5332_v21  ;;  %2548 = vmatpush.bf16.msra.mxu0 %v3964_v6  ;;  %v2080_v45 = vadd.f32 %v5600_v19, %v5661_v23  ;;  %v2083_v19 = vadd.f32 %v5609_v60, %v5661_v23  ;;  %v3637_v6 = vld [vmem:[#allocation5 + $0x7c] sm:$0xf0] }
 0x1f3   : > { %v2126_v8 = vpop.f32.mrf.mxu3 }
 0x1f4   : > { %3173 = vst [vmem:[%s5557_s3 + $0x44] sm:$0xf] %v3141_v37  ;;  %v2127_v5 = vadd.f32 %v2126_v8, %v2078_v44 }
 0x1f5   : > { %v2273_v62 = vpop.f32.mrf.mxu2 }
 0x1f6   : > { %v2176_v7 = vadd.f32 %v2175_v9, %v2127_v5  ;;  %v5724_v40 = vadd.f32 %v2273_v62, %v2225_v24  ;;  %v2177_v59 = vpop.f32.mrf.mxu0  ;;  %v2226_v50 = vpop.f32.mrf.mxu1  ;;  %v4620_v24 = vld [vmem:[#allocation5 + $0x524] sm:$0xf]  ;;  %v4249_v5 = vld [vmem:[#allocation5 + $0x544] sm:$0xf0] }
 0x1f7   : > { %v2227_v8 = vadd.f32 %v2226_v50, %v5665_v36  ;;  %v4252_v11 = vor.u32 %v4620_v24, %v4249_v5 }
 0x1f8   : > { %v3102_v3 = vmul.f32 0.125, %v2176_v7 }
 0x1f9   : > { %2597 = vmatpush.bf16.msra.mxu1 %v4252_v11  ;;  %v3925_v11 = vld [vmem:[#allocation5 + $0x2bc] sm:$0xf0] }
 0x1fa   : > { %v3143_v44 = vpack.c.bf16 %v3102_v3, %v3102_v3 }
 0x1fb   : > { %v2128_v37 = vpop.f32.mrf.mxu3 }
 0x1fc   : > { %3175 = vst [vmem:[%s5557_s3 + $0x50] sm:$0xf] %v3143_v44  ;;  %v2129_v9 = vadd.f32 %v2128_v37, %v2080_v45  ;;  %v3640_v45 = vor.u32 %v4467_v43, %v3637_v6  ;;  %v3643_v44 = vld [vmem:[#allocation5 + $0x60] sm:$0xf]  ;;  %v4472_v37 = vld [vmem:[#allocation5 + $0x80] sm:$0xf0] }
 0x1fd   : > { %v2275_v22 = vpop.f32.mrf.mxu2 }
 0x1fe   : > { %v2178_v62 = vadd.f32 %v2177_v59, %v2129_v9  ;;  %v5730_v35 = vadd.f32 %v2275_v22, %v2227_v8  ;;  %v2180_v53 = vpop.f32.mrf.mxu0  ;;  %v2229_v2 = vpop.f32.mrf.mxu1  ;;  %v4539_v8 = vld [vmem:[#allocation5 + $0x29c] sm:$0xf]  ;;  %v3644_v22 = vor.u32 %v4472_v37, %v3643_v44  ;;  %2500 = vmatpush.bf16.msra.mxu3 %v3640_v45 }
 0x1ff   : > { %v2230_v50 = vadd.f32 %v2229_v2, %v5665_v36 }
 0x200   : > { %v3105_v47 = vmul.f32 0.125, %v2178_v62  ;;  %2326 = vmatmul.bf16.gmra.mxu3 %v5357_v56  ;;  %v3928_v62 = vor.u32 %v4539_v8, %v3925_v11  ;;  %2647 = vmatpush.bf16.msra.mxu2 %v3644_v22  ;;  %v4458_v11 = vld [vmem:[#allocation5 + $0x14] sm:$0xf] }
 0x201   : > { %2375 = vmatmul.bf16.gmra.mxu0 %v5350_v51  ;;  %2424 = vmatmul.bf16.gmra.mxu1 %v5354_v55 }
 0x202   : > { %v3145_v7 = vpack.c.bf16 %v3105_v47, %v3105_v47  ;;  %2473 = vmatmul.bf16.gmra.mxu2 %v5357_v56  ;;  %2549 = vmatpush.bf16.msra.mxu0 %v3928_v62  ;;  %v2085_v47 = vadd.f32 %v5614_v4, %v5661_v23  ;;  %v2088_v4 = vadd.f32 %v5623_v20, %v5661_v23  ;;  %v3601_v62 = vld [vmem:[#allocation5 + $0x34] sm:$0xf0] }
 0x203   : > { %v2131_v59 = vpop.f32.mrf.mxu3 }
 0x204   : > { %3177 = vst [vmem:[%s5557_s3 + $0x5c] sm:$0xf] %v3145_v7  ;;  %v2132_v63 = vadd.f32 %v2131_v59, %v2083_v19 }
 0x205   : > { %v2278_v3 = vpop.f32.mrf.mxu2 }
 0x206   : > { %v2181_v9 = vadd.f32 %v2180_v53, %v2132_v63  ;;  %v5740_v24 = vadd.f32 %v2278_v3, %v2230_v50  ;;  %v2182_v60 = vpop.f32.mrf.mxu0  ;;  %v2231_v5 = vpop.f32.mrf.mxu1  ;;  %v4611_v50 = vld [vmem:[#allocation5 + $0x4dc] sm:$0xf]  ;;  %v4213_v63 = vld [vmem:[#allocation5 + $0x4fc] sm:$0xf0] }
 0x207   : > { %v2232_v59 = vadd.f32 %v2231_v5, %v5665_v36  ;;  %v4216_v6 = vor.u32 %v4611_v50, %v4213_v63 }
 0x208   : > { %v3108_v2 = vmul.f32 0.125, %v2181_v9 }
 0x209   : > { %2598 = vmatpush.bf16.msra.mxu1 %v4216_v6  ;;  %v3889_v6 = vld [vmem:[#allocation5 + $0x274] sm:$0xf0] }
 0x20a   : > { %v3147_v19 = vpack.c.bf16 %v3108_v2, %v3108_v2 }
 0x20b   : > { %v2133_v7 = vpop.f32.mrf.mxu3 }
 0x20c   : > { %3179 = vst [vmem:[%s5557_s3 + $0x68] sm:$0xf] %v3147_v19  ;;  %v2134_v53 = vadd.f32 %v2133_v7, %v2085_v47  ;;  %v3604_v47 = vor.u32 %v4458_v11, %v3601_v62  ;;  %v3607_v19 = vld [vmem:[#allocation5 + $0x18] sm:$0xf]  ;;  %v4463_v7 = vld [vmem:[#allocation5 + $0x38] sm:$0xf0] }
 0x20d   : > { %v2280_v43 = vpop.f32.mrf.mxu2 }
 0x20e   : > { %v2183_v3 = vadd.f32 %v2182_v60, %v2134_v53  ;;  %v5746_v45 = vadd.f32 %v2280_v43, %v2232_v59  ;;  %v2185_v44 = vpop.f32.mrf.mxu0  ;;  %v2234_v37 = vpop.f32.mrf.mxu1  ;;  %v4530_v59 = vld [vmem:[#allocation5 + $0x254] sm:$0xf]  ;;  %v3608_v43 = vor.u32 %v4463_v7, %v3607_v19  ;;  %2501 = vmatpush.bf16.msra.mxu3 %v3604_v47 }
 0x20f   : > { %v2235_v5 = vadd.f32 %v2234_v37, %v5665_v36 }
 0x210   : > { %v3111_v8 = vmul.f32 0.125, %v2183_v3  ;;  %2331 = vmatmul.bf16.gmra.mxu3 %v5381_v25  ;;  %v3892_v3 = vor.u32 %v4530_v59, %v3889_v6  ;;  %2648 = vmatpush.bf16.msra.mxu2 %v3608_v43  ;;  %v4147_v6 = vld [vmem:[#allocation5 + $0x450] sm:$0xf] }
 0x211   : > { %2380 = vmatmul.bf16.gmra.mxu0 %v5375_v12  ;;  %2429 = vmatmul.bf16.gmra.mxu1 %v5379_v13 }
 0x212   : > { %v3149_v9 = vpack.c.bf16 %v3111_v8, %v3111_v8  ;;  %2478 = vmatmul.bf16.gmra.mxu2 %v5381_v25  ;;  %2550 = vmatpush.bf16.msra.mxu0 %v3892_v3  ;;  %v2090_v8 = vadd.f32 %v5628_v0, %v5661_v23  ;;  %v2093_v0 = vadd.f32 %v5637_v41, %v5661_v23  ;;  %v4598_v3 = vld [vmem:[#allocation5 + $0x470] sm:$0xf0] }
 0x213   : > { %v2136_v60 = vpop.f32.mrf.mxu3 }
 0x214   : > { %3181 = vst [vmem:[%s5557_s3 + $0x74] sm:$0xf] %v3149_v9  ;;  %v2137_v22 = vadd.f32 %v2136_v60, %v2088_v4 }
 0x215   : > { %v2283_v2 = vpop.f32.mrf.mxu2 }
 0x216   : > { %v2186_v53 = vadd.f32 %v2185_v44, %v2137_v22  ;;  %v5756_v50 = vadd.f32 %v2283_v2, %v2235_v5  ;;  %v2187_v20 = vpop.f32.mrf.mxu0  ;;  %v2236_v63 = vpop.f32.mrf.mxu1  ;;  %v4602_v5 = vld [vmem:[#allocation5 + $0x494] sm:$0xf]  ;;  %v4177_v22 = vld [vmem:[#allocation5 + $0x4b4] sm:$0xf0] }
 0x217   : > { %v2237_v60 = vadd.f32 %v2236_v63, %v5665_v36  ;;  %v4180_v62 = vor.u32 %v4602_v5, %v4177_v22 }
 0x218   : > { %v3114_v37 = vmul.f32 0.125, %v2186_v53 }
 0x219   : > { %2599 = vmatpush.bf16.msra.mxu1 %v4180_v62  ;;  %v4670_v62 = vld [vmem:[#allocation5 + $0x6b0] sm:$0xf0] }
 0x21a   : > { %v3151_v4 = vpack.c.bf16 %v3114_v37, %v3114_v37 }
 0x21b   : > { %v2138_v9 = vpop.f32.mrf.mxu3 }
 0x21c   : > { %3183 = vst [vmem:[%s5557_s3 + $0x80] sm:$0xf] %v3151_v4  ;;  %v2139_v44 = vadd.f32 %v2138_v9, %v2090_v8  ;;  %v4148_v8 = vor.u32 %v4598_v3, %v4147_v6  ;;  %v4594_v4 = vld [vmem:[#allocation5 + $0x454] sm:$0xf]  ;;  %v4149_v9 = vld [vmem:[#allocation5 + $0x474] sm:$0xf0] }
 0x21d   : > { %v2285_v11 = vpop.f32.mrf.mxu2 }
 0x21e   : > { %v2188_v2 = vadd.f32 %v2187_v20, %v2139_v44  ;;  %v5762_v47 = vadd.f32 %v2285_v11, %v2237_v60  ;;  %v2190_v19 = vpop.f32.mrf.mxu0  ;;  %v2239_v7 = vpop.f32.mrf.mxu1  ;;  %v4435_v60 = vld [vmem:[#allocation5 + $0x690] sm:$0xf]  ;;  %v4152_v11 = vor.u32 %v4594_v4, %v4149_v9  ;;  %2690 = vmatpush.bf16.msrb.mxu3 %v4148_v8 }
 0x21f   : > { %v2240_v63 = vadd.f32 %v2239_v7, %v5665_v36 }
 0x220   : > { %v3117_v59 = vmul.f32 0.125, %v2188_v2  ;;  %2336 = vmatmul.bf16.gmra.mxu3 %v5405_v57  ;;  %v4436_v2 = vor.u32 %v4670_v62, %v4435_v60  ;;  %2837 = vmatpush.bf16.msrb.mxu2 %v4152_v11  ;;  %v4589_v11 = vld [vmem:[#allocation5 + $0x428] sm:$0xf0] }
 0x221   : > { %2385 = vmatmul.bf16.gmra.mxu0 %v5399_v48  ;;  %2434 = vmatmul.bf16.gmra.mxu1 %v5401_v52  ;;  %v4585_v62 = vld [vmem:[#allocation5 + $0x40c] sm:$0xf] }
 0x222   : > { %v3153_v53 = vpack.c.bf16 %v3117_v59, %v3117_v59  ;;  %2483 = vmatmul.bf16.gmra.mxu2 %v5405_v57  ;;  %2739 = vmatpush.bf16.msrb.mxu0 %v4436_v2  ;;  %v2095_v59 = vadd.f32 %v5642_v46, %v5661_v23  ;;  %v2098_v46 = vadd.f32 %v5651_v58, %v5661_v23 }
 0x223   : > { %v2141_v20 = vpop.f32.mrf.mxu3 }
 0x224   : > { %3185 = vst [vmem:[%s5557_s3 + $0x8c] sm:$0xf] %v3153_v53  ;;  %v2142_v43 = vadd.f32 %v2141_v20, %v2093_v0  ;;  %v4522_v53 = vld [vmem:[#allocation5 + $0x214] sm:$0xf]  ;;  %v3861_v20 = vld [vmem:[#allocation5 + $0x234] sm:$0xf0] }
 0x225   : > { %v2288_v37 = vpop.f32.mrf.mxu2 }
 0x226   : > { %v2191_v44 = vadd.f32 %v2190_v19, %v2142_v43  ;;  %v5772_v5 = vadd.f32 %v2288_v37, %v2240_v63  ;;  %v2192_v41 = vpop.f32.mrf.mxu0  ;;  %v2241_v22 = vpop.f32.mrf.mxu1  ;;  %v3864_v19 = vor.u32 %v4522_v53, %v3861_v20  ;;  %v4661_v53 = vld [vmem:[#allocation5 + $0x668] sm:$0xf0] }
 0x227   : > { %v2242_v63 = vadd.f32 %v2241_v22, %v5665_v36 }
 0x228   : > { %v3120_v7 = vmul.f32 0.125, %v2191_v44  ;;  %2788 = vmatpush.bf16.msrb.mxu1 %v3864_v19 }
 0x22a   : > { %v3155_v0 = vpack.c.bf16 %v3120_v7, %v3120_v7 }
 0x22b   : > { %v2143_v6 = vpop.f32.mrf.mxu3 }
 0x22c   : > { %3187 = vst [vmem:[%s5557_s3 + $0x98] sm:$0xf] %v3155_v0  ;;  %v2144_v43 = vadd.f32 %v2143_v6, %v2095_v59  ;;  %v4113_v59 = vld [vmem:[#allocation5 + $0x42c] sm:$0xf0]  ;;  %v4399_v0 = vld [vmem:[#allocation5 + $0x648] sm:$0xf] }
 0x22d   : > { %v2290_v3 = vpop.f32.mrf.mxu2  ;;  %v4116_v6 = vor.u32 %v4585_v62, %v4113_v59  ;;  %v4400_v19 = vor.u32 %v4661_v53, %v4399_v0  ;;  %v5793_v62 = vperm.slane %v5658_v17, 4 }
 0x22e   : > { %v2193_v37 = vadd.f32 %v2192_v41, %v2144_v43  ;;  %v5778_v8 = vadd.f32 %v2290_v3, %v2242_v63  ;;  %v2195_v4 = vpop.f32.mrf.mxu0  ;;  %v2244_v9 = vpop.f32.mrf.mxu1  ;;  %v4111_v41 = vld [vmem:[#allocation5 + $0x408] sm:$0xf] }
 0x22f   : > { %v2245_v22 = vadd.f32 %v2244_v9, %v5665_v36  ;;  %v4112_v7 = vor.u32 %v4589_v11, %v4111_v41  ;;  %2838 = vmatpush.bf16.msrb.mxu2 %v4116_v6  ;;  %2740 = vmatpush.bf16.msrb.mxu0 %v4400_v19  ;;  %v4513_v11 = vld [vmem:[#allocation5 + $0x1cc] sm:$0xf]  ;;  %v4075_v6 = vld [vmem:[#allocation5 + $0x3c0] sm:$0xf]  ;;  %v4580_v19 = vld [vmem:[#allocation5 + $0x3e0] sm:$0xf0] }
 0x230   : > { %v3123_v60 = vmul.f32 0.125, %v2193_v37  ;;  %2341 = vmatmul.bf16.gmra.mxu3 %v5425_v33 }
 0x231   : > { %2390 = vmatmul.bf16.gmra.mxu0 %v5419_v34  ;;  %2439 = vmatmul.bf16.gmra.mxu1 %v5421_v29 }
 0x232   : > { %v3157_v44 = vpack.c.bf16 %v3123_v60, %v3123_v60  ;;  %2488 = vmatmul.bf16.gmra.mxu2 %v5425_v33  ;;  %2691 = vmatpush.bf16.msrb.mxu3 %v4112_v7  ;;  %v2100_v60 = vadd.f32 %v5656_v27, %v5661_v23 }
 0x233   : > { %v2146_v2 = vpop.f32.mrf.mxu3 }
 0x234   : > { %3189 = vst [vmem:[%s5557_s3 + $0xa4] sm:$0xf] %v3157_v44  ;;  %v2147_v20 = vadd.f32 %v2146_v2, %v2098_v46  ;;  %v3825_v44 = vld [vmem:[#allocation5 + $0x1ec] sm:$0xf0] }
 0x235   : > { %v2293_v63 = vpop.f32.mrf.mxu2  ;;  %v3828_v2 = vor.u32 %v4513_v11, %v3825_v44 }
 0x236   : > { %v2196_v58 = vadd.f32 %v2195_v4, %v2147_v20  ;;  %v5788_v43 = vadd.f32 %v2293_v63, %v2245_v22  ;;  %v2197_v3 = vpop.f32.mrf.mxu0  ;;  %v2246_v37 = vpop.f32.mrf.mxu1  ;;  %v4576_v63 = vld [vmem:[#allocation5 + $0x3c4] sm:$0xf] }
 0x237   : > { %v2247_v4 = vadd.f32 %v2246_v37, %v5665_v36  ;;  %2789 = vmatpush.bf16.msrb.mxu1 %v3828_v2  ;;  %v4077_v37 = vld [vmem:[#allocation5 + $0x3e4] sm:$0xf0] }
 0x238   : > { %v3126_v9 = vmul.f32 0.125, %v2196_v58  ;;  %v4080_v11 = vor.u32 %v4576_v63, %v4077_v37 }
 0x23a   : > { %v3159_v41 = vpack.c.bf16 %v3126_v9, %v3126_v9  ;;  %v4363_v9 = vld [vmem:[#allocation5 + $0x600] sm:$0xf]  ;;  %2839 = vmatpush.bf16.msrb.mxu2 %v4080_v11  ;;  %v4567_v11 = vld [vmem:[#allocation5 + $0x37c] sm:$0xf] }
 0x23b   : > { %v2148_v46 = vpop.f32.mrf.mxu3 }
 0x23c   : > { %3191 = vst [vmem:[%s5557_s3 + $0xb0] sm:$0xf] %v3159_v41  ;;  %v2149_v22 = vadd.f32 %v2148_v46, %v2100_v60  ;;  %v4652_v60 = vld [vmem:[#allocation5 + $0x620] sm:$0xf0] }
 0x23d   : > { %v2295_v7 = vpop.f32.mrf.mxu2  ;;  %v4364_v44 = vor.u32 %v4652_v60, %v4363_v9  ;;  %v4039_v9 = vld [vmem:[#allocation5 + $0x378] sm:$0xf] }
 0x23e   : > { %v2198_v59 = vadd.f32 %v2197_v3, %v2149_v22  ;;  %v5797_v0 = vadd.f32 %v2295_v7, %v2247_v4  ;;  %v2356_v53 = vpop.f32.mrf.mxu0  ;;  %v2405_v20 = vpop.f32.mrf.mxu1  ;;  %v4076_v3 = vor.u32 %v4580_v19, %v4075_v6 }
 0x23f   : > { %v2357_v27 = vadd.f32 %v2356_v53, %v5793_v62  ;;  %2741 = vmatpush.bf16.msrb.mxu0 %v4364_v44  ;;  %v4504_v53 = vld [vmem:[#allocation5 + $0x184] sm:$0xf]  ;;  %v4041_v44 = vld [vmem:[#allocation5 + $0x39c] sm:$0xf0] }
 0x240   : > { %v3129_v23 = vmul.f32 0.125, %v2198_v59  ;;  %2502 = vmatmul.bf16.vlgmr.msra.gmra.mxu3 %v5301_v31 }
 0x241   : > { %2551 = vmatmul.bf16.vlgmr.msra.gmra.mxu0 %v5352_v54  ;;  %2600 = vmatmul.bf16.vlgmr.msra.gmra.mxu1 %v5403_v1  ;;  %v2406_v36 = vadd.f32 %v2405_v20, %v2357_v27  ;;  %v3789_v20 = vld [vmem:[#allocation5 + $0x1a4] sm:$0xf0] }
 0x242   : > { %v3161_v17 = vpack.c.bf16 %v3129_v23, %v3129_v23  ;;  %2649 = vmatmul.bf16.vlgmr.msra.gmra.mxu2 %v5301_v31  ;;  %2692 = vmatpush.bf16.msrb.mxu3 %v4076_v3  ;;  %v3792_v27 = vor.u32 %v4504_v53, %v3789_v20 }
 0x243   : > { %v2307_v58 = vpop.f32.mrf.mxu3 }
 0x244   : > { %3193 = vst [vmem:[%s5557_s3 + $0xbc] sm:$0xf] %v3161_v17  ;;  %v2308_v41 = vadd.f32 %v2307_v58, %v5676_v10  ;;  %2790 = vmatpush.bf16.msrb.mxu1 %v3792_v27 }
 0x245   : > { %v2454_v46 = vpop.f32.mrf.mxu2 }
 0x246   : > { %v2455_v2 = vadd.f32 %v2454_v46, %v2406_v36  ;;  %v2358_v4 = vpop.f32.mrf.mxu0  ;;  %v2407_v22 = vpop.f32.mrf.mxu1  ;;  %v4327_v46 = vld [vmem:[#allocation5 + $0x5b8] sm:$0xf] }
 0x247   : > { %v2359_v59 = vadd.f32 %v2358_v4, %v5793_v62  ;;  %v4044_v4 = vor.u32 %v4567_v11, %v4041_v44  ;;  %v4003_v11 = vld [vmem:[#allocation5 + $0x330] sm:$0xf] }
 0x248   : > { %v3194_v7 = vpack.c.bf16 %v2455_v2, %v2308_v41 }
 0x249   : > { %v2408_v23 = vadd.f32 %v2407_v22, %v2359_v59  ;;  %v4643_v22 = vld [vmem:[#allocation5 + $0x5d8] sm:$0xf0]  ;;  %2840 = vmatpush.bf16.msrb.mxu2 %v4044_v4  ;;  %v4005_v4 = vld [vmem:[#allocation5 + $0x354] sm:$0xf0] }
 0x24a   : > { %3226 = vst [vmem:[%s5808_s5] sm:$0xff] %v3194_v7  ;;  %v4328_v59 = vor.u32 %v4643_v22, %v4327_v46  ;;  %v4291_v22 = vld [vmem:[#allocation5 + $0x570] sm:$0xf] }
 0x24b   : > { %v2309_v10 = vpop.f32.mrf.mxu3 }
 0x24c   : > { %v2310_v17 = vadd.f32 %v2309_v10, %v5682_v42  ;;  %v4571_v42 = vld [vmem:[#allocation5 + $0x398] sm:$0xf0]  ;;  %2742 = vmatpush.bf16.msrb.mxu0 %v4328_v59 }
 0x24d   : > { %v2456_v36 = vpop.f32.mrf.mxu2  ;;  %v4040_v41 = vor.u32 %v4571_v42, %v4039_v9 }
 0x24e   : > { %v2457_v6 = vadd.f32 %v2456_v36, %v2408_v23  ;;  %v2361_v19 = vpop.f32.mrf.mxu0  ;;  %v2410_v63 = vpop.f32.mrf.mxu1  ;;  %v3753_v36 = vld [vmem:[#allocation5 + $0x15c] sm:$0xf0] }
 0x24f   : > { %v2362_v58 = vadd.f32 %v2361_v19, %v5793_v62  ;;  %2693 = vmatpush.bf16.msrb.mxu3 %v4040_v41 }
 0x250   : > { %v3196_v3 = vpack.c.bf16 %v2457_v6, %v2310_v17  ;;  %2507 = vmatmul.bf16.gmra.mxu3 %v5326_v14  ;;  %v4495_v17 = vld [vmem:[#allocation5 + $0x13c] sm:$0xf] }
 0x251   : > { %2556 = vmatmul.bf16.gmra.mxu0 %v5377_v16  ;;  %2605 = vmatmul.bf16.gmra.mxu1 %v5423_v30  ;;  %v2411_v37 = vadd.f32 %v2410_v63, %v2362_v58  ;;  %v3756_v19 = vor.u32 %v4495_v17, %v3753_v36 }
 0x252   : > { %3228 = vst [vmem:[%s5808_s5 + $0xc] sm:$0xff] %v3196_v3  ;;  %2654 = vmatmul.bf16.gmra.mxu2 %v5326_v14 }
 0x253   : > { %v2312_v60 = vpop.f32.mrf.mxu3  ;;  %2791 = vmatpush.bf16.msrb.mxu1 %v3756_v19  ;;  %v4486_v19 = vld [vmem:[#allocation5 + $0xf4] sm:$0xf] }
 0x254   : > { %v2313_v2 = vadd.f32 %v2312_v60, %v5692_v28 }
 0x255   : > { %v2459_v7 = vpop.f32.mrf.mxu2 }
 0x256   : > { %v2460_v53 = vadd.f32 %v2459_v7, %v2411_v37  ;;  %v2363_v20 = vpop.f32.mrf.mxu0  ;;  %v2412_v10 = vpop.f32.mrf.mxu1 }
 0x257   : > { %v2364_v23 = vadd.f32 %v2363_v20, %v5793_v62 }
 0x258   : > { %v3198_v27 = vpack.c.bf16 %v2460_v53, %v2313_v2  ;;  %v4558_v2 = vld [vmem:[#allocation5 + $0x334] sm:$0xf] }
 0x259   : > { %v2413_v28 = vadd.f32 %v2412_v10, %v2364_v23  ;;  %v4008_v59 = vor.u32 %v4558_v2, %v4005_v4  ;;  %v4634_v53 = vld [vmem:[#allocation5 + $0x590] sm:$0xf0]  ;;  %v4549_v4 = vld [vmem:[#allocation5 + $0x2ec] sm:$0xf] }
 0x25a   : > { %3230 = vst [vmem:[%s5808_s5 + $0x18] sm:$0xff] %v3198_v27  ;;  %v4292_v10 = vor.u32 %v4634_v53, %v4291_v22  ;;  %v3969_v22 = vld [vmem:[#allocation5 + $0x30c] sm:$0xf0] }
 0x25b   : > { %v2314_v6 = vpop.f32.mrf.mxu3  ;;  %2841 = vmatpush.bf16.msrb.mxu2 %v4008_v59  ;;  %v3972_v53 = vor.u32 %v4549_v4, %v3969_v22  ;;  %v3933_v4 = vld [vmem:[#allocation5 + $0x2c4] sm:$0xf0]  ;;  %v4219_v22 = vld [vmem:[#allocation5 + $0x4e0] sm:$0xf] }
 0x25c   : > { %v2315_v63 = vadd.f32 %v2314_v6, %v5698_v26  ;;  %v4562_v26 = vld [vmem:[#allocation5 + $0x350] sm:$0xf0]  ;;  %2743 = vmatpush.bf16.msrb.mxu0 %v4292_v10 }
 0x25d   : > { %v2461_v58 = vpop.f32.mrf.mxu2  ;;  %v4004_v46 = vor.u32 %v4562_v26, %v4003_v11 }
 0x25e   : > { %v2462_v3 = vadd.f32 %v2461_v58, %v2413_v28  ;;  %v2366_v37 = vpop.f32.mrf.mxu0  ;;  %v2415_v9 = vpop.f32.mrf.mxu1  ;;  %v3717_v28 = vld [vmem:[#allocation5 + $0x114] sm:$0xf0] }
 0x25f   : > { %v2367_v42 = vadd.f32 %v2366_v37, %v5793_v62  ;;  %2694 = vmatpush.bf16.msrb.mxu3 %v4004_v46  ;;  %v3720_v58 = vor.u32 %v4486_v19, %v3717_v28  ;;  %2842 = vmatpush.bf16.msrb.mxu2 %v3972_v53  ;;  %v4477_v28 = vld [vmem:[#allocation5 + $0xac] sm:$0xf]  ;;  %v4616_v53 = vld [vmem:[#allocation5 + $0x500] sm:$0xf0] }
 0x260   : > { %v3200_v60 = vpack.c.bf16 %v2462_v3, %v2315_v63  ;;  %2512 = vmatmul.bf16.gmra.mxu3 %v5303_v32 }
 0x261   : > { %2561 = vmatmul.bf16.gmra.mxu0 %v5305_v38  ;;  %2610 = vmatmul.bf16.gmra.mxu1 %v5307_v39  ;;  %v2416_v41 = vadd.f32 %v2415_v9, %v2367_v42 }
 0x262   : > { %3232 = vst [vmem:[%s5808_s5 + $0x24] sm:$0xff] %v3200_v60  ;;  %2659 = vmatmul.bf16.gmra.mxu2 %v5303_v32  ;;  %2792 = vmatpush.bf16.msrb.mxu1 %v3720_v58 }
 0x263   : > { %v2317_v44 = vpop.f32.mrf.mxu3 }
 0x264   : > { %v2318_v7 = vadd.f32 %v2317_v44, %v5708_v49  ;;  %v3967_v44 = vld [vmem:[#allocation5 + $0x2e8] sm:$0xf] }
 0x265   : > { %v2464_v20 = vpop.f32.mrf.mxu2 }
 0x266   : > { %v2465_v27 = vadd.f32 %v2464_v20, %v2416_v41  ;;  %v2368_v23 = vpop.f32.mrf.mxu0  ;;  %v2417_v17 = vpop.f32.mrf.mxu1  ;;  %v4625_v20 = vld [vmem:[#allocation5 + $0x548] sm:$0xf0] }
 0x267   : > { %v2369_v6 = vadd.f32 %v2368_v23, %v5793_v62 }
 0x268   : > { %v3202_v36 = vpack.c.bf16 %v2465_v27, %v2318_v7  ;;  %v4255_v7 = vld [vmem:[#allocation5 + $0x528] sm:$0xf] }
 0x269   : > { %v2418_v49 = vadd.f32 %v2417_v17, %v2369_v6  ;;  %v4256_v27 = vor.u32 %v4625_v20, %v4255_v7 }
 0x26a   : > { %3234 = vst [vmem:[%s5808_s5 + $0x30] sm:$0xff] %v3202_v36 }
 0x26b   : > { %v2319_v63 = vpop.f32.mrf.mxu3  ;;  %2744 = vmatpush.bf16.msrb.mxu0 %v4256_v27 }
 0x26c   : > { %v2320_v3 = vadd.f32 %v2319_v63, %v5714_v61  ;;  %v4553_v61 = vld [vmem:[#allocation5 + $0x308] sm:$0xf0]  ;;  %v3681_v63 = vld [vmem:[#allocation5 + $0xcc] sm:$0xf0] }
 0x26d   : > { %v2466_v37 = vpop.f32.mrf.mxu2  ;;  %v3968_v2 = vor.u32 %v4553_v61, %v3967_v44  ;;  %v3931_v44 = vld [vmem:[#allocation5 + $0x2a0] sm:$0xf] }
 0x26e   : > { %v2467_v9 = vadd.f32 %v2466_v37, %v2418_v49  ;;  %v2371_v42 = vpop.f32.mrf.mxu0  ;;  %v2420_v60 = vpop.f32.mrf.mxu1  ;;  %v3684_v49 = vor.u32 %v4477_v28, %v3681_v63  ;;  %v3645_v28 = vld [vmem:[#allocation5 + $0x84] sm:$0xf0] }
 0x26f   : > { %v2372_v41 = vadd.f32 %v2371_v42, %v5793_v62  ;;  %2695 = vmatpush.bf16.msrb.mxu3 %v3968_v2  ;;  %v4540_v2 = vld [vmem:[#allocation5 + $0x2a4] sm:$0xf] }
 0x270   : > { %v3204_v11 = vpack.c.bf16 %v2467_v9, %v2320_v3  ;;  %2517 = vmatmul.bf16.gmra.mxu3 %v5328_v15  ;;  %2793 = vmatpush.bf16.msrb.mxu1 %v3684_v49 }
 0x271   : > { %2566 = vmatmul.bf16.gmra.mxu0 %v5330_v18  ;;  %2615 = vmatmul.bf16.gmra.mxu1 %v5332_v21  ;;  %v2421_v26 = vadd.f32 %v2420_v60, %v2372_v41 }
 0x272   : > { %3236 = vst [vmem:[%s5808_s5 + $0x3c] sm:$0xff] %v3204_v11  ;;  %2664 = vmatmul.bf16.gmra.mxu2 %v5328_v15 }
 0x273   : > { %v2322_v46 = vpop.f32.mrf.mxu3 }
 0x274   : > { %v2323_v59 = vadd.f32 %v2322_v46, %v5724_v40 }
 0x275   : > { %v2469_v10 = vpop.f32.mrf.mxu2 }
 0x276   : > { %v2470_v23 = vadd.f32 %v2469_v10, %v2421_v26  ;;  %v2373_v17 = vpop.f32.mrf.mxu0  ;;  %v2422_v36 = vpop.f32.mrf.mxu1  ;;  %v4220_v10 = vor.u32 %v4616_v53, %v4219_v22  ;;  %v4607_v22 = vld [vmem:[#allocation5 + $0x4b8] sm:$0xf0] }
 0x277   : > { %v2374_v19 = vadd.f32 %v2373_v17, %v5793_v62 }
 0x278   : > { %v3206_v6 = vpack.c.bf16 %v2470_v23, %v2323_v59  ;;  %v3936_v59 = vor.u32 %v4540_v2, %v3933_v4  ;;  %2745 = vmatpush.bf16.msrb.mxu0 %v4220_v10 }
 0x279   : > { %v2423_v40 = vadd.f32 %v2422_v36, %v2374_v19  ;;  %v4468_v19 = vld [vmem:[#allocation5 + $0x64] sm:$0xf] }
 0x27a   : > { %3238 = vst [vmem:[%s5808_s5 + $0x48] sm:$0xff] %v3206_v6  ;;  %2843 = vmatpush.bf16.msrb.mxu2 %v3936_v59 }
 0x27b   : > { %v2324_v58 = vpop.f32.mrf.mxu3 }
 0x27c   : > { %v2325_v3 = vadd.f32 %v2324_v58, %v5730_v35  ;;  %v4544_v35 = vld [vmem:[#allocation5 + $0x2c0] sm:$0xf0]  ;;  %v3648_v58 = vor.u32 %v4468_v19, %v3645_v28 }
 0x27d   : > { %v2471_v37 = vpop.f32.mrf.mxu2  ;;  %v3932_v46 = vor.u32 %v4544_v35, %v3931_v44  ;;  %v4531_v35 = vld [vmem:[#allocation5 + $0x25c] sm:$0xf] }
 0x27e   : > { %v2472_v9 = vadd.f32 %v2471_v37, %v2423_v40  ;;  %v2376_v42 = vpop.f32.mrf.mxu0  ;;  %v2425_v60 = vpop.f32.mrf.mxu1  ;;  %2794 = vmatpush.bf16.msrb.mxu1 %v3648_v58 }
 0x27f   : > { %v2377_v41 = vadd.f32 %v2376_v42, %v5793_v62  ;;  %2696 = vmatpush.bf16.msrb.mxu3 %v3932_v46  ;;  %v4183_v46 = vld [vmem:[#allocation5 + $0x498] sm:$0xf] }
 0x280   : > { %v3208_v11 = vpack.c.bf16 %v2472_v9, %v2325_v3  ;;  %2522 = vmatmul.bf16.gmra.mxu3 %v5350_v51  ;;  %v4184_v59 = vor.u32 %v4607_v22, %v4183_v46 }
 0x281   : > { %2571 = vmatmul.bf16.gmra.mxu0 %v5354_v55  ;;  %2620 = vmatmul.bf16.gmra.mxu1 %v5357_v56  ;;  %v2426_v26 = vadd.f32 %v2425_v60, %v2377_v41 }
 0x282   : > { %3240 = vst [vmem:[%s5808_s5 + $0x54] sm:$0xff] %v3208_v11  ;;  %2669 = vmatmul.bf16.gmra.mxu2 %v5350_v51  ;;  %v3895_v11 = vld [vmem:[#allocation5 + $0x258] sm:$0xf]  ;;  %2746 = vmatpush.bf16.msrb.mxu0 %v4184_v59 }
 0x283   : > { %v2327_v61 = vpop.f32.mrf.mxu3 }
 0x284   : > { %v2328_v7 = vadd.f32 %v2327_v61, %v5740_v24  ;;  %v3897_v61 = vld [vmem:[#allocation5 + $0x27c] sm:$0xf0] }
 0x285   : > { %v2474_v20 = vpop.f32.mrf.mxu2  ;;  %v3900_v4 = vor.u32 %v4531_v35, %v3897_v61  ;;  %v4527_v35 = vld [vmem:[#allocation5 + $0x238] sm:$0xf0] }
 0x286   : > { %v2475_v27 = vadd.f32 %v2474_v20, %v2426_v26  ;;  %v2378_v23 = vpop.f32.mrf.mxu0  ;;  %v2427_v17 = vpop.f32.mrf.mxu1 }
 0x287   : > { %v2379_v6 = vadd.f32 %v2378_v23, %v5793_v62  ;;  %2844 = vmatpush.bf16.msrb.mxu2 %v3900_v4 }
 0x288   : > { %v3210_v36 = vpack.c.bf16 %v2475_v27, %v2328_v7 }
 0x289   : > { %v2428_v24 = vadd.f32 %v2427_v17, %v2379_v6  ;;  %v4459_v17 = vld [vmem:[#allocation5 + $0x1c] sm:$0xf] }
 0x28a   : > { %3242 = vst [vmem:[%s5808_s5 + $0x60] sm:$0xff] %v3210_v36  ;;  %v3609_v36 = vld [vmem:[#allocation5 + $0x3c] sm:$0xf0] }
 0x28b   : > { %v2329_v63 = vpop.f32.mrf.mxu3  ;;  %v3612_v19 = vor.u32 %v4459_v17, %v3609_v36 }
 0x28c   : > { %v2330_v49 = vadd.f32 %v2329_v63, %v5746_v45  ;;  %v4535_v45 = vld [vmem:[#allocation5 + $0x278] sm:$0xf0] }
 0x28d   : > { %v2476_v40 = vpop.f32.mrf.mxu2  ;;  %v3896_v44 = vor.u32 %v4535_v45, %v3895_v11  ;;  %2795 = vmatpush.bf16.msrb.mxu1 %v3612_v19  ;;  %v4671_v11 = vld [vmem:[#allocation5 + $0x6b8] sm:$0xf0]  ;;  %v3867_v45 = vld [vmem:[#allocation5 + $0x218] sm:$0xf] }
 0x28e   : > { %v2477_v3 = vadd.f32 %v2476_v40, %v2428_v24  ;;  %v2381_v37 = vpop.f32.mrf.mxu0  ;;  %v2430_v9 = vpop.f32.mrf.mxu1  ;;  %v3868_v46 = vor.u32 %v4527_v35, %v3867_v45 }
 0x28f   : > { %v2382_v42 = vadd.f32 %v2381_v37, %v5793_v62  ;;  %2697 = vmatpush.bf16.msrb.mxu3 %v3896_v44 }
 0x290   : > { %v3212_v60 = vpack.c.bf16 %v2477_v3, %v2330_v49  ;;  %2527 = vmatmul.bf16.gmra.mxu3 %v5375_v12  ;;  %2935 = vmatpush.bf16.msra.mxu0 %v3868_v46 }
 0x291   : > { %2576 = vmatmul.bf16.gmra.mxu0 %v5379_v13  ;;  %2625 = vmatmul.bf16.gmra.mxu1 %v5381_v25  ;;  %v2431_v41 = vadd.f32 %v2430_v9, %v2382_v42  ;;  %v4666_v9 = vld [vmem:[#allocation5 + $0x694] sm:$0xf] }
 0x292   : > { %3244 = vst [vmem:[%s5808_s5 + $0x6c] sm:$0xff] %v3212_v60  ;;  %2674 = vmatmul.bf16.gmra.mxu2 %v5375_v12 }
 0x293   : > { %v2332_v26 = vpop.f32.mrf.mxu3 }
 0x294   : > { %v2333_v2 = vadd.f32 %v2332_v26, %v5756_v50 }
 0x295   : > { %v2479_v7 = vpop.f32.mrf.mxu2 }
 0x296   : > { %v2480_v53 = vadd.f32 %v2479_v7, %v2431_v41  ;;  %v2383_v20 = vpop.f32.mrf.mxu0  ;;  %v2432_v10 = vpop.f32.mrf.mxu1  ;;  %v4443_v41 = vld [vmem:[#allocation5 + $0x698] sm:$0xf] }
 0x297   : > { %v2384_v23 = vadd.f32 %v2383_v20, %v5793_v62  ;;  %v4444_v44 = vor.u32 %v4671_v11, %v4443_v41 }
 0x298   : > { %v3214_v27 = vpack.c.bf16 %v2480_v53, %v2333_v2 }
 0x299   : > { %v2433_v50 = vadd.f32 %v2432_v10, %v2384_v23  ;;  %3033 = vmatpush.bf16.msra.mxu2 %v4444_v44 }
 0x29a   : > { %3246 = vst [vmem:[%s5808_s5 + $0x78] sm:$0xff] %v3214_v27  ;;  %v4599_v27 = vld [vmem:[#allocation5 + $0x478] sm:$0xf0] }
 0x29b   : > { %v2334_v6 = vpop.f32.mrf.mxu3 }
 0x29c   : > { %v2335_v28 = vadd.f32 %v2334_v6, %v5762_v47  ;;  %v4437_v47 = vld [vmem:[#allocation5 + $0x6b4] sm:$0xf0] }
 0x29d   : > { %v2481_v63 = vpop.f32.mrf.mxu2  ;;  %v4440_v60 = vor.u32 %v4666_v9, %v4437_v47  ;;  %v4662_v9 = vld [vmem:[#allocation5 + $0x670] sm:$0xf0]  ;;  %v3831_v47 = vld [vmem:[#allocation5 + $0x1d0] sm:$0xf] }
 0x29e   : > { %v2482_v58 = vadd.f32 %v2481_v63, %v2433_v50  ;;  %v2386_v24 = vpop.f32.mrf.mxu0  ;;  %v2435_v49 = vpop.f32.mrf.mxu1 }
 0x29f   : > { %v2387_v40 = vadd.f32 %v2386_v24, %v5793_v62  ;;  %2886 = vmatpush.bf16.msra.mxu3 %v4440_v60  ;;  %v4657_v24 = vld [vmem:[#allocation5 + $0x64c] sm:$0xf] }
 0x2a0   : > { %v3216_v3 = vpack.c.bf16 %v2482_v58, %v2335_v28  ;;  %2532 = vmatmul.bf16.gmra.mxu3 %v5399_v48 }
 0x2a1   : > { %2581 = vmatmul.bf16.gmra.mxu0 %v5401_v52  ;;  %2630 = vmatmul.bf16.gmra.mxu1 %v5405_v57  ;;  %v2436_v37 = vadd.f32 %v2435_v49, %v2387_v40  ;;  %v4401_v49 = vld [vmem:[#allocation5 + $0x66c] sm:$0xf0] }
 0x2a2   : > { %3248 = vst [vmem:[%s5808_s5 + $0x84] sm:$0xff] %v3216_v3  ;;  %2679 = vmatmul.bf16.gmra.mxu2 %v5399_v48  ;;  %v4407_v40 = vld [vmem:[#allocation5 + $0x650] sm:$0xf] }
 0x2a3   : > { %v2337_v42 = vpop.f32.mrf.mxu3  ;;  %v4408_v45 = vor.u32 %v4662_v9, %v4407_v40 }
 0x2a4   : > { %v2338_v26 = vadd.f32 %v2337_v42, %v5772_v5  ;;  %v4155_v5 = vld [vmem:[#allocation5 + $0x458] sm:$0xf]  ;;  %v4518_v42 = vld [vmem:[#allocation5 + $0x1f0] sm:$0xf0] }
 0x2a5   : > { %v2484_v61 = vpop.f32.mrf.mxu2  ;;  %v4156_v17 = vor.u32 %v4599_v27, %v4155_v5  ;;  %3034 = vmatpush.bf16.msra.mxu2 %v4408_v45 }
 0x2a6   : > { %v2485_v2 = vadd.f32 %v2484_v61, %v2436_v37  ;;  %v2388_v4 = vpop.f32.mrf.mxu0  ;;  %v2437_v22 = vpop.f32.mrf.mxu1  ;;  %v4404_v37 = vor.u32 %v4657_v24, %v4401_v49 }
 0x2a7   : > { %v2389_v59 = vadd.f32 %v2388_v4, %v5793_v62  ;;  %2984 = vmatpush.bf16.msra.mxu1 %v4156_v17  ;;  %v4590_v4 = vld [vmem:[#allocation5 + $0x430] sm:$0xf0]  ;;  %v4365_v17 = vld [vmem:[#allocation5 + $0x624] sm:$0xf0] }
 0x2a8   : > { %v3218_v7 = vpack.c.bf16 %v2485_v2, %v2338_v26  ;;  %v3832_v26 = vor.u32 %v4518_v42, %v3831_v47  ;;  %2887 = vmatpush.bf16.msra.mxu3 %v4404_v37  ;;  %v4119_v2 = vld [vmem:[#allocation5 + $0x410] sm:$0xf]  ;;  %v4083_v42 = vld [vmem:[#allocation5 + $0x3c8] sm:$0xf] }
 0x2a9   : > { %v2438_v20 = vadd.f32 %v2437_v22, %v2389_v59 }
 0x2aa   : > { %3250 = vst [vmem:[%s5808_s5 + $0x90] sm:$0xff] %v3218_v7  ;;  %2936 = vmatpush.bf16.msra.mxu0 %v3832_v26  ;;  %v4120_v7 = vor.u32 %v4590_v4, %v4119_v2  ;;  %v4639_v2 = vld [vmem:[#allocation5 + $0x5bc] sm:$0xf]  ;;  %v4329_v4 = vld [vmem:[#allocation5 + $0x5dc] sm:$0xf0] }
 0x2ab   : > { %v2339_v53 = vpop.f32.mrf.mxu3 }
 0x2ac   : > { %v2340_v10 = vadd.f32 %v2339_v53, %v5778_v8  ;;  %2985 = vmatpush.bf16.msra.mxu1 %v4120_v7  ;;  %v4332_v7 = vor.u32 %v4639_v2, %v4329_v4 }
 0x2ad   : > { %v2486_v23 = vpop.f32.mrf.mxu2 }
 0x2ae   : > { %v2487_v36 = vadd.f32 %v2486_v23, %v2438_v20  ;;  %v2391_v6 = vpop.f32.mrf.mxu0  ;;  %v2440_v19 = vpop.f32.mrf.mxu1  ;;  %v4648_v23 = vld [vmem:[#allocation5 + $0x604] sm:$0xf] }
 0x2af   : > { %v2392_v50 = vadd.f32 %v2391_v6, %v5793_v62 }
 0x2b0   : > { %v3220_v28 = vpack.c.bf16 %v2487_v36, %v2340_v10  ;;  %2537 = vmatmul.bf16.gmra.mxu3 %v5419_v34  ;;  %v4371_v36 = vld [vmem:[#allocation5 + $0x608] sm:$0xf] }
 0x2b1   : > { %2586 = vmatmul.bf16.gmra.mxu0 %v5421_v29  ;;  %2635 = vmatmul.bf16.gmra.mxu1 %v5425_v33  ;;  %v2441_v63 = vadd.f32 %v2440_v19, %v2392_v50  ;;  %v4368_v19 = vor.u32 %v4648_v23, %v4365_v17  ;;  %v4653_v50 = vld [vmem:[#allocation5 + $0x628] sm:$0xf0]  ;;  %v4500_v17 = vld [vmem:[#allocation5 + $0x160] sm:$0xf0] }
 0x2b2   : > { %3252 = vst [vmem:[%s5808_s5 + $0x9c] sm:$0xff] %v3220_v28  ;;  %2684 = vmatmul.bf16.gmra.mxu2 %v5419_v34  ;;  %v3795_v28 = vld [vmem:[#allocation5 + $0x188] sm:$0xf]  ;;  %v4372_v49 = vor.u32 %v4653_v50, %v4371_v36 }
 0x2b3   : > { %v2342_v8 = vpop.f32.mrf.mxu3  ;;  %2888 = vmatpush.bf16.msra.mxu3 %v4368_v19 }
 0x2b4   : > { %v2343_v58 = vadd.f32 %v2342_v8, %v5788_v43  ;;  %3035 = vmatpush.bf16.msra.mxu2 %v4372_v49 }
 0x2b5   : > { %v2489_v3 = vpop.f32.mrf.mxu2 }
 0x2b6   : > { %v2490_v60 = vadd.f32 %v2489_v3, %v2441_v63  ;;  %v2393_v41 = vpop.f32.mrf.mxu0  ;;  %v2442_v11 = vpop.f32.mrf.mxu1  ;;  %v4509_v63 = vld [vmem:[#allocation5 + $0x1a8] sm:$0xf0] }
 0x2b7   : > { %v2394_v35 = vadd.f32 %v2393_v41, %v5793_v62  ;;  %v5883_v62 = vld [vmem:[#allocation7] sm:$0xff]  ;;  %v3796_v40 = vor.u32 %v4509_v63, %v3795_v28  ;;  %2889 = vmatpush.bf16.msra.mxu3 %v4332_v7 }
 0x2b8   : > { %v3222_v44 = vpack.c.bf16 %v2490_v60, %v2343_v58  ;;  %v5886_v5 = vperm.slane %v5883_v62, 5  ;;  %v4581_v60 = vld [vmem:[#allocation5 + $0x3e8] sm:$0xf0] }
 0x2b9   : > { %v2443_v61 = vadd.f32 %v2442_v11, %v2394_v35  ;;  %2937 = vmatpush.bf16.msra.mxu0 %v3796_v40  ;;  %v4084_v11 = vor.u32 %v4581_v60, %v4083_v42 }
 0x2ba   : > { %3254 = vst [vmem:[%s5808_s5 + $0xa8] sm:$0xff] %v3222_v44 }
 0x2bb   : > { %v2344_v43 = vpop.f32.mrf.mxu3  ;;  %2986 = vmatpush.bf16.msra.mxu1 %v4084_v11  ;;  %v4630_v11 = vld [vmem:[#allocation5 + $0x574] sm:$0xf] }
 0x2bc   : > { %v2345_v46 = vadd.f32 %v2344_v43, %v5797_v0 }
 0x2bd   : > { %v2491_v22 = vpop.f32.mrf.mxu2 }
 0x2be   : > { %v2492_v59 = vadd.f32 %v2491_v22, %v2443_v61  ;;  %v2552_v53 = vpop.f32.mrf.mxu0  ;;  %v2601_v20 = vpop.f32.mrf.mxu1 }
 0x2c0   : > { %v3224_v10 = vpack.c.bf16 %v2492_v59, %v2345_v46  ;;  %2698 = vmatmul.bf16.vlgmr.msrb.gmra.mxu3 %v5352_v54  ;;  %v4335_v59 = vld [vmem:[#allocation5 + $0x5c0] sm:$0xf] }
 0x2c1   : > { %2747 = vmatmul.bf16.vlgmr.msrb.gmra.mxu0 %v5403_v1  ;;  %2796 = vmatmul.bf16.vlgmr.msrb.gmra.mxu1 %v5301_v31 }
 0x2c2   : > { %3256 = vst [vmem:[%s5808_s5 + $0xb4] sm:$0xff] %v3224_v10  ;;  %2845 = vmatmul.bf16.vlgmr.msrb.gmra.mxu2 %v5352_v54 }
 0x2c3   : > { %v2503_v0 = vpop.f32.mrf.mxu3 }
 0x2c4   : > { %v2504_v27 = vadd.f32 %v2503_v0, %v5886_v5 }
 0x2c5   : > { %v5893_v6 = vpop.f32.mrf.mxu2 }
 0x2c6   : > { %v2553_v8 = vadd.f32 %v2552_v53, %v2504_v27  ;;  %v2554_v58 = vpop.f32.mrf.mxu0  ;;  %v2603_v24 = vpop.f32.mrf.mxu1  ;;  %v4644_v53 = vld [vmem:[#allocation5 + $0x5e0] sm:$0xf0] }
 0x2c7   : > { %v4336_v23 = vor.u32 %v4644_v53, %v4335_v59  ;;  %v4491_v59 = vld [vmem:[#allocation5 + $0x118] sm:$0xf0] }
 0x2c8   : > { %v2602_v3 = vadd.f32 %v2601_v20, %v2553_v8  ;;  %v3759_v20 = vld [vmem:[#allocation5 + $0x140] sm:$0xf] }
 0x2c9   : > { %v3760_v36 = vor.u32 %v4500_v17, %v3759_v20  ;;  %3036 = vmatpush.bf16.msra.mxu2 %v4336_v23  ;;  %v4047_v8 = vld [vmem:[#allocation5 + $0x380] sm:$0xf]  ;;  %v4011_v23 = vld [vmem:[#allocation5 + $0x338] sm:$0xf]  ;;  %v4563_v17 = vld [vmem:[#allocation5 + $0x358] sm:$0xf0] }
 0x2ca   : > { %v3195_v37 = vpack.c.bf16 %v2602_v3, %v2602_v3 }
 0x2cb   : > { %v2505_v9 = vpop.f32.mrf.mxu3  ;;  %2938 = vmatpush.bf16.msra.mxu0 %v3760_v36 }
 0x2cc   : > { %3227 = vst [vmem:[%s5808_s5 + $0x8] sm:$0xf] %v3195_v37  ;;  %v2506_v47 = vadd.f32 %v2505_v9, %v5886_v5 }
 0x2cd   : > { %v5897_v41 = vpop.f32.mrf.mxu2 }
 0x2ce   : > { %v2555_v45 = vadd.f32 %v2554_v58, %v2506_v47  ;;  %v2557_v26 = vpop.f32.mrf.mxu0  ;;  %v2606_v44 = vpop.f32.mrf.mxu1  ;;  %v4572_v58 = vld [vmem:[#allocation5 + $0x3a0] sm:$0xf0] }
 0x2cf   : > { %v4048_v49 = vor.u32 %v4572_v58, %v4047_v8 }
 0x2d0   : > { %v2604_v35 = vadd.f32 %v2603_v24, %v2555_v45  ;;  %2703 = vmatmul.bf16.gmra.mxu3 %v5377_v16  ;;  %v4293_v45 = vld [vmem:[#allocation5 + $0x594] sm:$0xf0] }
 0x2d1   : > { %2752 = vmatmul.bf16.gmra.mxu0 %v5423_v30  ;;  %2801 = vmatmul.bf16.gmra.mxu1 %v5326_v14 }
 0x2d2   : > { %v3197_v43 = vpack.c.bf16 %v2604_v35, %v2604_v35  ;;  %2850 = vmatmul.bf16.gmra.mxu2 %v5377_v16  ;;  %2987 = vmatpush.bf16.msra.mxu1 %v4048_v49  ;;  %v4299_v35 = vld [vmem:[#allocation5 + $0x578] sm:$0xf] }
 0x2d3   : > { %v2508_v61 = vpop.f32.mrf.mxu3 }
 0x2d4   : > { %3229 = vst [vmem:[%s5808_s5 + $0x14] sm:$0xf] %v3197_v43  ;;  %v2509_v46 = vadd.f32 %v2508_v61, %v5886_v5  ;;  %v4635_v43 = vld [vmem:[#allocation5 + $0x598] sm:$0xf0]  ;;  %v3723_v61 = vld [vmem:[#allocation5 + $0xf8] sm:$0xf] }
 0x2d5   : > { %v5905_v22 = vpop.f32.mrf.mxu2  ;;  %v4300_v7 = vor.u32 %v4635_v43, %v4299_v35  ;;  %v3724_v53 = vor.u32 %v4491_v59, %v3723_v61  ;;  %v4482_v61 = vld [vmem:[#allocation5 + $0xd0] sm:$0xf0] }
 0x2d6   : > { %v2558_v10 = vadd.f32 %v2557_v26, %v2509_v46  ;;  %v2559_v0 = vpop.f32.mrf.mxu0  ;;  %v2608_v27 = vpop.f32.mrf.mxu1 }
 0x2d7   : > { %3037 = vmatpush.bf16.msra.mxu2 %v4300_v7  ;;  %2939 = vmatpush.bf16.msra.mxu0 %v3724_v53  ;;  %v3975_v53 = vld [vmem:[#allocation5 + $0x2f0] sm:$0xf] }
 0x2d8   : > { %v2607_v19 = vadd.f32 %v2606_v44, %v2558_v10  ;;  %v4296_v44 = vor.u32 %v4630_v11, %v4293_v45  ;;  %v3687_v11 = vld [vmem:[#allocation5 + $0xb0] sm:$0xf] }
 0x2da   : > { %v3199_v50 = vpack.c.bf16 %v2607_v19, %v2607_v19  ;;  %2890 = vmatpush.bf16.msra.mxu3 %v4296_v44  ;;  %v4012_v19 = vor.u32 %v4563_v17, %v4011_v23 }
 0x2db   : > { %v2510_v28 = vpop.f32.mrf.mxu3 }
 0x2dc   : > { %3231 = vst [vmem:[%s5808_s5 + $0x20] sm:$0xf] %v3199_v50  ;;  %v2511_v63 = vadd.f32 %v2510_v28, %v5886_v5  ;;  %2988 = vmatpush.bf16.msra.mxu1 %v4012_v19 }
 0x2dd   : > { %v5909_v24 = vpop.f32.mrf.mxu2 }
 0x2de   : > { %v2560_v40 = vadd.f32 %v2559_v0, %v2511_v63  ;;  %v2562_v3 = vpop.f32.mrf.mxu0  ;;  %v2611_v37 = vpop.f32.mrf.mxu1 }
 0x2e0   : > { %v2609_v9 = vadd.f32 %v2608_v27, %v2560_v40  ;;  %2708 = vmatmul.bf16.gmra.mxu3 %v5305_v38 }
 0x2e1   : > { %2757 = vmatmul.bf16.gmra.mxu0 %v5307_v39  ;;  %2806 = vmatmul.bf16.gmra.mxu1 %v5303_v32 }
 0x2e2   : > { %v3201_v47 = vpack.c.bf16 %v2609_v9, %v2609_v9  ;;  %2855 = vmatmul.bf16.gmra.mxu2 %v5305_v38 }
 0x2e3   : > { %v2513_v42 = vpop.f32.mrf.mxu3 }
 0x2e4   : > { %3233 = vst [vmem:[%s5808_s5 + $0x2c] sm:$0xf] %v3201_v47  ;;  %v2514_v60 = vadd.f32 %v2513_v42, %v5886_v5  ;;  %v4263_v42 = vld [vmem:[#allocation5 + $0x530] sm:$0xf] }
 0x2e5   : > { %v5917_v26 = vpop.f32.mrf.mxu2 }
 0x2e6   : > { %v2563_v46 = vadd.f32 %v2562_v3, %v2514_v60  ;;  %v2564_v2 = vpop.f32.mrf.mxu0  ;;  %v2613_v4 = vpop.f32.mrf.mxu1  ;;  %v4621_v3 = vld [vmem:[#allocation5 + $0x52c] sm:$0xf]  ;;  %v4626_v60 = vld [vmem:[#allocation5 + $0x550] sm:$0xf0] }
 0x2e7   : > { %v4264_v43 = vor.u32 %v4626_v60, %v4263_v42 }
 0x2e8   : > { %v2612_v20 = vadd.f32 %v2611_v37, %v2563_v46  ;;  %v4257_v37 = vld [vmem:[#allocation5 + $0x54c] sm:$0xf0]  ;;  %v3688_v46 = vor.u32 %v4482_v61, %v3687_v11 }
 0x2e9   : > { %v4260_v47 = vor.u32 %v4621_v3, %v4257_v37  ;;  %3038 = vmatpush.bf16.msra.mxu2 %v4264_v43  ;;  %v4227_v3 = vld [vmem:[#allocation5 + $0x4e8] sm:$0xf]  ;;  %v4617_v37 = vld [vmem:[#allocation5 + $0x508] sm:$0xf0] }
 0x2ea   : > { %v3203_v10 = vpack.c.bf16 %v2612_v20, %v2612_v20  ;;  %2940 = vmatpush.bf16.msra.mxu0 %v3688_v46  ;;  %v4554_v20 = vld [vmem:[#allocation5 + $0x310] sm:$0xf0] }
 0x2eb   : > { %v2515_v0 = vpop.f32.mrf.mxu3  ;;  %2891 = vmatpush.bf16.msra.mxu3 %v4260_v47  ;;  %v3651_v47 = vld [vmem:[#allocation5 + $0x68] sm:$0xf] }
 0x2ec   : > { %3235 = vst [vmem:[%s5808_s5 + $0x38] sm:$0xf] %v3203_v10  ;;  %v2516_v27 = vadd.f32 %v2515_v0, %v5886_v5  ;;  %v3976_v0 = vor.u32 %v4554_v20, %v3975_v53 }
 0x2ed   : > { %v5921_v36 = vpop.f32.mrf.mxu2 }
 0x2ee   : > { %v2565_v50 = vadd.f32 %v2564_v2, %v2516_v27  ;;  %v2567_v28 = vpop.f32.mrf.mxu0  ;;  %v2616_v63 = vpop.f32.mrf.mxu1  ;;  %2989 = vmatpush.bf16.msra.mxu1 %v3976_v0 }
 0x2f0   : > { %v2614_v8 = vadd.f32 %v2613_v4, %v2565_v50  ;;  %2713 = vmatmul.bf16.gmra.mxu3 %v5330_v18 }
 0x2f1   : > { %2762 = vmatmul.bf16.gmra.mxu0 %v5332_v21  ;;  %2811 = vmatmul.bf16.gmra.mxu1 %v5328_v15 }
 0x2f2   : > { %v3205_v58 = vpack.c.bf16 %v2614_v8, %v2614_v8  ;;  %2860 = vmatmul.bf16.gmra.mxu2 %v5330_v18  ;;  %v4612_v8 = vld [vmem:[#allocation5 + $0x4e4] sm:$0xf] }
 0x2f3   : > { %v2518_v49 = vpop.f32.mrf.mxu3 }
 0x2f4   : > { %3237 = vst [vmem:[%s5808_s5 + $0x44] sm:$0xf] %v3205_v58  ;;  %v2519_v40 = vadd.f32 %v2518_v49, %v5886_v5  ;;  %v4221_v58 = vld [vmem:[#allocation5 + $0x504] sm:$0xf0] }
 0x2f5   : > { %v5929_v9 = vpop.f32.mrf.mxu2 }
 0x2f6   : > { %v2568_v45 = vadd.f32 %v2567_v28, %v2519_v40  ;;  %v2569_v44 = vpop.f32.mrf.mxu0  ;;  %v2618_v35 = vpop.f32.mrf.mxu1  ;;  %v4224_v40 = vor.u32 %v4612_v8, %v4221_v58 }
 0x2f8   : > { %v2617_v2 = vadd.f32 %v2616_v63, %v2568_v45  ;;  %v4228_v45 = vor.u32 %v4617_v37, %v4227_v3  ;;  %2892 = vmatpush.bf16.msra.mxu3 %v4224_v40  ;;  %v4191_v40 = vld [vmem:[#allocation5 + $0x4a0] sm:$0xf]  ;;  %v4608_v3 = vld [vmem:[#allocation5 + $0x4c0] sm:$0xf0] }
 0x2f9   : > { %v3615_v37 = vld [vmem:[#allocation5 + $0x20] sm:$0xf] }
 0x2fa   : > { %v3207_v4 = vpack.c.bf16 %v2617_v2, %v2617_v2  ;;  %3039 = vmatpush.bf16.msra.mxu2 %v4228_v45  ;;  %v4464_v45 = vld [vmem:[#allocation5 + $0x40] sm:$0xf0] }
 0x2fb   : > { %v2520_v7 = vpop.f32.mrf.mxu3 }
 0x2fc   : > { %3239 = vst [vmem:[%s5808_s5 + $0x50] sm:$0xf] %v3207_v4  ;;  %v2521_v59 = vadd.f32 %v2520_v7, %v5886_v5  ;;  %v3939_v4 = vld [vmem:[#allocation5 + $0x2a8] sm:$0xf]  ;;  %v4545_v7 = vld [vmem:[#allocation5 + $0x2c8] sm:$0xf0] }
 0x2fd   : > { %v5933_v10 = vpop.f32.mrf.mxu2  ;;  %v3940_v53 = vor.u32 %v4545_v7, %v3939_v4  ;;  %v4536_v4 = vld [vmem:[#allocation5 + $0x280] sm:$0xf0] }
 0x2fe   : > { %v2570_v27 = vadd.f32 %v2569_v44, %v2521_v59  ;;  %v2572_v23 = vpop.f32.mrf.mxu0  ;;  %v2621_v17 = vpop.f32.mrf.mxu1  ;;  %v4473_v44 = vld [vmem:[#allocation5 + $0x88] sm:$0xf0] }
 0x2ff   : > { %2990 = vmatpush.bf16.msra.mxu1 %v3940_v53 }
 0x300   : > { %v2619_v19 = vadd.f32 %v2618_v35, %v2570_v27  ;;  %2718 = vmatmul.bf16.gmra.mxu3 %v5354_v55  ;;  %v3652_v35 = vor.u32 %v4473_v44, %v3651_v47  ;;  %v3616_v44 = vor.u32 %v4464_v45, %v3615_v37 }
 0x301   : > { %2767 = vmatmul.bf16.gmra.mxu0 %v5357_v56  ;;  %2816 = vmatmul.bf16.gmra.mxu1 %v5350_v51 }
 0x302   : > { %v3209_v50 = vpack.c.bf16 %v2619_v19, %v2619_v19  ;;  %2865 = vmatmul.bf16.gmra.mxu2 %v5354_v55  ;;  %2941 = vmatpush.bf16.msra.mxu0 %v3652_v35 }
 0x303   : > { %v2523_v28 = vpop.f32.mrf.mxu3 }
 0x304   : > { %3241 = vst [vmem:[%s5808_s5 + $0x5c] sm:$0xf] %v3209_v50  ;;  %v2524_v63 = vadd.f32 %v2523_v28, %v5886_v5  ;;  %v4603_v28 = vld [vmem:[#allocation5 + $0x49c] sm:$0xf] }
 0x305   : > { %v5941_v49 = vpop.f32.mrf.mxu2 }
 0x306   : > { %v2573_v42 = vadd.f32 %v2572_v23, %v2524_v63  ;;  %v2574_v60 = vpop.f32.mrf.mxu0  ;;  %v2623_v11 = vpop.f32.mrf.mxu1  ;;  %v4185_v63 = vld [vmem:[#allocation5 + $0x4bc] sm:$0xf0]  ;;  %2942 = vmatpush.bf16.msra.mxu0 %v3616_v44 }
 0x307   : > { %v4188_v58 = vor.u32 %v4603_v28, %v4185_v63 }
 0x308   : > { %v2622_v43 = vadd.f32 %v2621_v17, %v2573_v42 }
 0x309   : > { %2893 = vmatpush.bf16.msra.mxu3 %v4188_v58 }
 0x30a   : > { %v3211_v61 = vpack.c.bf16 %v2622_v43, %v2622_v43 }
 0x30b   : > { %v2525_v46 = vpop.f32.mrf.mxu3 }
 0x30c   : > { %3243 = vst [vmem:[%s5808_s5 + $0x68] sm:$0xf] %v3211_v61  ;;  %v2526_v2 = vadd.f32 %v2525_v46, %v5886_v5 }
 0x30d   : > { %v5945_v59 = vpop.f32.mrf.mxu2 }
 0x30e   : > { %v2575_v20 = vadd.f32 %v2574_v60, %v2526_v2  ;;  %v2577_v0 = vpop.f32.mrf.mxu0  ;;  %v2626_v27 = vpop.f32.mrf.mxu1  ;;  %v3903_v2 = vld [vmem:[#allocation5 + $0x260] sm:$0xf] }
 0x30f   : > { %v3904_v53 = vor.u32 %v4536_v4, %v3903_v2 }
 0x310   : > { %v2624_v23 = vadd.f32 %v2623_v11, %v2575_v20  ;;  %2723 = vmatmul.bf16.gmra.mxu3 %v5379_v13  ;;  %v4192_v11 = vor.u32 %v4608_v3, %v4191_v40 }
 0x311   : > { %2772 = vmatmul.bf16.gmra.mxu0 %v5381_v25  ;;  %2821 = vmatmul.bf16.gmra.mxu1 %v5375_v12 }
 0x312   : > { %v3213_v17 = vpack.c.bf16 %v2624_v23, %v2624_v23  ;;  %2870 = vmatmul.bf16.gmra.mxu2 %v5379_v13  ;;  %2991 = vmatpush.bf16.msra.mxu1 %v3904_v53 }
 0x313   : > { %v2528_v19 = vpop.f32.mrf.mxu3  ;;  %3040 = vmatpush.bf16.msra.mxu2 %v4192_v11 }
 0x314   : > { %3245 = vst [vmem:[%s5808_s5 + $0x74] sm:$0xf] %v3213_v17  ;;  %v2529_v50 = vadd.f32 %v2528_v19, %v5886_v5 }
 0x315   : > { %v5953_v8 = vpop.f32.mrf.mxu2 }
 0x316   : > { %v2578_v47 = vadd.f32 %v2577_v0, %v2529_v50  ;;  %v2579_v42 = vpop.f32.mrf.mxu0  ;;  %v2628_v60 = vpop.f32.mrf.mxu1 }
 0x318   : > { %v2627_v35 = vadd.f32 %v2626_v27, %v2578_v47 }
 0x31a   : > { %v3215_v43 = vpack.c.bf16 %v2627_v35, %v2627_v35 }
 0x31b   : > { %v2530_v61 = vpop.f32.mrf.mxu3 }
 0x31c   : > { %3247 = vst [vmem:[%s5808_s5 + $0x80] sm:$0xf] %v3215_v43  ;;  %v2531_v46 = vadd.f32 %v2530_v61, %v5886_v5 }
 0x31d   : > { %v5957_v7 = vpop.f32.mrf.mxu2 }
 0x31e   : > { %v2580_v20 = vadd.f32 %v2579_v42, %v2531_v46  ;;  %v2582_v0 = vpop.f32.mrf.mxu0  ;;  %v2631_v23 = vpop.f32.mrf.mxu1 }
 0x320   : > { %v2629_v17 = vadd.f32 %v2628_v60, %v2580_v20  ;;  %2728 = vmatmul.bf16.gmra.mxu3 %v5401_v52 }
 0x321   : > { %2777 = vmatmul.bf16.gmra.mxu0 %v5405_v57  ;;  %2826 = vmatmul.bf16.gmra.mxu1 %v5399_v48 }
 0x322   : > { %v3217_v27 = vpack.c.bf16 %v2629_v17, %v2629_v17  ;;  %2875 = vmatmul.bf16.gmra.mxu2 %v5401_v52 }
 0x323   : > { %v2533_v19 = vpop.f32.mrf.mxu3 }
 0x324   : > { %3249 = vst [vmem:[%s5808_s5 + $0x8c] sm:$0xf] %v3217_v27  ;;  %v2534_v50 = vadd.f32 %v2533_v19, %v5886_v5 }
 0x325   : > { %v5965_v28 = vpop.f32.mrf.mxu2 }
 0x326   : > { %v2583_v63 = vadd.f32 %v2582_v0, %v2534_v50  ;;  %v2584_v58 = vpop.f32.mrf.mxu0  ;;  %v2633_v40 = vpop.f32.mrf.mxu1  ;;  %v5984_v50 = vperm.slane %v5883_v62, 6 }
 0x328   : > { %v2632_v3 = vadd.f32 %v2631_v23, %v2583_v63 }
 0x32a   : > { %v3219_v37 = vpack.c.bf16 %v2632_v3, %v2632_v3 }
 0x32b   : > { %v2535_v47 = vpop.f32.mrf.mxu3 }
 0x32c   : > { %3251 = vst [vmem:[%s5808_s5 + $0x98] sm:$0xf] %v3219_v37  ;;  %v2536_v42 = vadd.f32 %v2535_v47, %v5886_v5 }
 0x32d   : > { %v5969_v60 = vpop.f32.mrf.mxu2 }
 0x32e   : > { %v2585_v11 = vadd.f32 %v2584_v58, %v2536_v42  ;;  %v2587_v45 = vpop.f32.mrf.mxu0  ;;  %v2636_v44 = vpop.f32.mrf.mxu1 }
 0x330   : > { %v2634_v35 = vadd.f32 %v2633_v40, %v2585_v11  ;;  %2733 = vmatmul.bf16.gmra.mxu3 %v5421_v29  ;;  %v5987_v40 = vperm.slane %v5883_v62, 7 }
 0x331   : > { %2782 = vmatmul.bf16.gmra.mxu0 %v5425_v33  ;;  %2831 = vmatmul.bf16.gmra.mxu1 %v5419_v34 }
 0x332   : > { %v3221_v43 = vpack.c.bf16 %v2634_v35, %v2634_v35  ;;  %2880 = vmatmul.bf16.gmra.mxu2 %v5421_v29 }
 0x333   : > { %v2538_v61 = vpop.f32.mrf.mxu3 }
 0x334   : > { %3253 = vst [vmem:[%s5808_s5 + $0xa4] sm:$0xf] %v3221_v43  ;;  %v2539_v46 = vadd.f32 %v2538_v61, %v5886_v5 }
 0x335   : > { %v5977_v2 = vpop.f32.mrf.mxu2 }
 0x336   : > { %v2588_v4 = vadd.f32 %v2587_v45, %v2539_v46  ;;  %v2589_v53 = vpop.f32.mrf.mxu0  ;;  %v2638_v20 = vpop.f32.mrf.mxu1 }
 0x338   : > { %v2637_v0 = vadd.f32 %v2636_v44, %v2588_v4 }
 0x33a   : > { %v3223_v23 = vpack.c.bf16 %v2637_v0, %v2637_v0 }
 0x33b   : > { %v2540_v17 = vpop.f32.mrf.mxu3 }
 0x33c   : > { %3255 = vst [vmem:[%s5808_s5 + $0xb0] sm:$0xf] %v3223_v23  ;;  %v2541_v27 = vadd.f32 %v2540_v17, %v5886_v5  ;;  %v2651_v5 = vadd.f32 %v5893_v6, %v5984_v50 }
 0x33d   : > { %v5981_v19 = vpop.f32.mrf.mxu2 }
 0x33e   : > { %v2590_v63 = vadd.f32 %v2589_v53, %v2541_v27  ;;  %v2748_v58 = vpop.f32.mrf.mxu0  ;;  %v2797_v3 = vpop.f32.mrf.mxu1 }
 0x33f   : > { %v2798_v42 = vadd.f32 %v2797_v3, %v5987_v40 }
 0x340   : > { %v2639_v37 = vadd.f32 %v2638_v20, %v2590_v63  ;;  %2894 = vmatmul.bf16.vlgmr.msra.gmra.mxu3 %v5403_v1 }
 0x341   : > { %2943 = vmatmul.bf16.vlgmr.msra.gmra.mxu0 %v5301_v31  ;;  %2992 = vmatmul.bf16.vlgmr.msra.gmra.mxu1 %v5352_v54  ;;  %v2653_v54 = vadd.f32 %v5897_v41, %v5984_v50  ;;  %v2656_v41 = vadd.f32 %v5905_v22, %v5984_v50 }
 0x342   : > { %v3225_v47 = vpack.c.bf16 %v2639_v37, %v2639_v37  ;;  %3041 = vmatmul.bf16.vlgmr.msra.gmra.mxu2 %v5403_v1 }
 0x343   : > { %v2699_v11 = vpop.f32.mrf.mxu3 }
 0x344   : > { %3257 = vst [vmem:[%s5808_s5 + $0xbc] sm:$0xf] %v3225_v47  ;;  %v2700_v62 = vadd.f32 %v2699_v11, %v2651_v5 }
 0x345   : > { %v2846_v45 = vpop.f32.mrf.mxu2 }
 0x346   : > { %v5997_v44 = vadd.f32 %v2748_v58, %v2700_v62  ;;  %v5999_v35 = vadd.f32 %v2846_v45, %v2798_v42  ;;  %v2750_v43 = vpop.f32.mrf.mxu0  ;;  %v2799_v31 = vpop.f32.mrf.mxu1 }
 0x347   : > { %v2800_v6 = vadd.f32 %v2799_v31, %v5987_v40 }
 0x34b   : > { %v2701_v61 = vpop.f32.mrf.mxu3 }
 0x34c   : > { %v2702_v46 = vadd.f32 %v2701_v61, %v2653_v54 }
 0x34d   : > { %v2848_v4 = vpop.f32.mrf.mxu2 }
 0x34e   : > { %v6004_v53 = vadd.f32 %v2750_v43, %v2702_v46  ;;  %v6006_v1 = vadd.f32 %v2848_v4, %v2800_v6  ;;  %v2753_v20 = vpop.f32.mrf.mxu0  ;;  %v2802_v0 = vpop.f32.mrf.mxu1 }
 0x34f   : > { %v2803_v23 = vadd.f32 %v2802_v0, %v5987_v40 }
 0x350   : > { %2899 = vmatmul.bf16.gmra.mxu3 %v5423_v30 }
 0x351   : > { %2948 = vmatmul.bf16.gmra.mxu0 %v5326_v14  ;;  %2997 = vmatmul.bf16.gmra.mxu1 %v5377_v16  ;;  %v2658_v14 = vadd.f32 %v5909_v24, %v5984_v50  ;;  %v2661_v24 = vadd.f32 %v5917_v26, %v5984_v50 }
 0x352   : > { %3046 = vmatmul.bf16.gmra.mxu2 %v5423_v30 }
 0x353   : > { %v2704_v17 = vpop.f32.mrf.mxu3 }
 0x354   : > { %v2705_v27 = vadd.f32 %v2704_v17, %v2656_v41 }
 0x355   : > { %v2851_v63 = vpop.f32.mrf.mxu2 }
 0x356   : > { %v6015_v58 = vadd.f32 %v2753_v20, %v2705_v27  ;;  %v6017_v3 = vadd.f32 %v2851_v63, %v2803_v23  ;;  %v2755_v37 = vpop.f32.mrf.mxu0  ;;  %v2804_v5 = vpop.f32.mrf.mxu1 }
 0x357   : > { %v2805_v47 = vadd.f32 %v2804_v5, %v5987_v40 }
 0x35b   : > { %v2706_v16 = vpop.f32.mrf.mxu3 }
 0x35c   : > { %v2707_v22 = vadd.f32 %v2706_v16, %v2658_v14 }
 0x35d   : > { %v2853_v42 = vpop.f32.mrf.mxu2 }
 0x35e   : > { %v6022_v11 = vadd.f32 %v2755_v37, %v2707_v22  ;;  %v6024_v30 = vadd.f32 %v2853_v42, %v2805_v47  ;;  %v2758_v62 = vpop.f32.mrf.mxu0  ;;  %v2807_v45 = vpop.f32.mrf.mxu1 }
 0x35f   : > { %v2808_v43 = vadd.f32 %v2807_v45, %v5987_v40 }
 0x360   : > { %2904 = vmatmul.bf16.gmra.mxu3 %v5307_v39 }
 0x361   : > { %2953 = vmatmul.bf16.gmra.mxu0 %v5303_v32  ;;  %3002 = vmatmul.bf16.gmra.mxu1 %v5305_v38  ;;  %v2663_v32 = vadd.f32 %v5921_v36, %v5984_v50  ;;  %v2666_v36 = vadd.f32 %v5929_v9, %v5984_v50 }
 0x362   : > { %3051 = vmatmul.bf16.gmra.mxu2 %v5307_v39 }
 0x363   : > { %v2709_v31 = vpop.f32.mrf.mxu3 }
 0x364   : > { %v2710_v54 = vadd.f32 %v2709_v31, %v2661_v24 }
 0x365   : > { %v2856_v61 = vpop.f32.mrf.mxu2 }
 0x366   : > { %v6033_v6 = vadd.f32 %v2758_v62, %v2710_v54  ;;  %v6035_v46 = vadd.f32 %v2856_v61, %v2808_v43  ;;  %v2760_v4 = vpop.f32.mrf.mxu0  ;;  %v2809_v20 = vpop.f32.mrf.mxu1 }
 0x367   : > { %v2810_v0 = vadd.f32 %v2809_v20, %v5987_v40 }
 0x36b   : > { %v2711_v38 = vpop.f32.mrf.mxu3 }
 0x36c   : > { %v2712_v26 = vadd.f32 %v2711_v38, %v2663_v32 }
 0x36d   : > { %v2858_v41 = vpop.f32.mrf.mxu2 }
 0x36e   : > { %v6040_v23 = vadd.f32 %v2760_v4, %v2712_v26  ;;  %v6042_v39 = vadd.f32 %v2858_v41, %v2810_v0  ;;  %v2763_v17 = vpop.f32.mrf.mxu0  ;;  %v2812_v27 = vpop.f32.mrf.mxu1 }
 0x36f   : > { %v2813_v63 = vadd.f32 %v2812_v27, %v5987_v40 }
 0x370   : > { %2909 = vmatmul.bf16.gmra.mxu3 %v5332_v21 }
 0x371   : > { %2958 = vmatmul.bf16.gmra.mxu0 %v5328_v15  ;;  %3007 = vmatmul.bf16.gmra.mxu1 %v5330_v18  ;;  %v2668_v15 = vadd.f32 %v5933_v10, %v5984_v50  ;;  %v2671_v10 = vadd.f32 %v5941_v49, %v5984_v50 }
 0x372   : > { %3056 = vmatmul.bf16.gmra.mxu2 %v5332_v21 }
 0x373   : > { %v2714_v37 = vpop.f32.mrf.mxu3 }
 0x374   : > { %v2715_v5 = vadd.f32 %v2714_v37, %v2666_v36 }
 0x375   : > { %v2861_v14 = vpop.f32.mrf.mxu2 }
 0x376   : > { %v6051_v16 = vadd.f32 %v2763_v17, %v2715_v5  ;;  %v6053_v47 = vadd.f32 %v2861_v14, %v2813_v63  ;;  %v2765_v22 = vpop.f32.mrf.mxu0  ;;  %v2814_v42 = vpop.f32.mrf.mxu1 }
 0x377   : > { %v2815_v62 = vadd.f32 %v2814_v42, %v5987_v40 }
 0x37b   : > { %v2716_v18 = vpop.f32.mrf.mxu3 }
 0x37c   : > { %v2717_v9 = vadd.f32 %v2716_v18, %v2668_v15 }
 0x37d   : > { %v2863_v45 = vpop.f32.mrf.mxu2 }
 0x37e   : > { %v6058_v24 = vadd.f32 %v2765_v22, %v2717_v9  ;;  %v6060_v21 = vadd.f32 %v2863_v45, %v2815_v62  ;;  %v2768_v43 = vpop.f32.mrf.mxu0  ;;  %v2817_v31 = vpop.f32.mrf.mxu1 }
 0x37f   : > { %v2818_v54 = vadd.f32 %v2817_v31, %v5987_v40 }
 0x380   : > { %2914 = vmatmul.bf16.gmra.mxu3 %v5357_v56 }
 0x381   : > { %2963 = vmatmul.bf16.gmra.mxu0 %v5350_v51  ;;  %3012 = vmatmul.bf16.gmra.mxu1 %v5354_v55  ;;  %v2673_v51 = vadd.f32 %v5945_v59, %v5984_v50  ;;  %v2676_v59 = vadd.f32 %v5953_v8, %v5984_v50 }
 0x382   : > { %3061 = vmatmul.bf16.gmra.mxu2 %v5357_v56 }
 0x383   : > { %v2719_v61 = vpop.f32.mrf.mxu3 }
 0x384   : > { %v2720_v4 = vadd.f32 %v2719_v61, %v2671_v10 }
 0x385   : > { %v2866_v20 = vpop.f32.mrf.mxu2 }
 0x386   : > { %v6069_v32 = vadd.f32 %v2768_v43, %v2720_v4  ;;  %v6071_v38 = vadd.f32 %v2866_v20, %v2818_v54  ;;  %v2770_v0 = vpop.f32.mrf.mxu0  ;;  %v2819_v26 = vpop.f32.mrf.mxu1 }
 0x387   : > { %v2820_v41 = vadd.f32 %v2819_v26, %v5987_v40 }
 0x38b   : > { %v2721_v55 = vpop.f32.mrf.mxu3 }
 0x38c   : > { %v2722_v49 = vadd.f32 %v2721_v55, %v2673_v51 }
 0x38d   : > { %v2868_v17 = vpop.f32.mrf.mxu2 }
 0x38e   : > { %v6076_v27 = vadd.f32 %v2770_v0, %v2722_v49  ;;  %v6078_v56 = vadd.f32 %v2868_v17, %v2820_v41  ;;  %v2773_v36 = vpop.f32.mrf.mxu0  ;;  %v2822_v63 = vpop.f32.mrf.mxu1 }
 0x38f   : > { %v2823_v37 = vadd.f32 %v2822_v63, %v5987_v40 }
 0x390   : > { %2919 = vmatmul.bf16.gmra.mxu3 %v5381_v25 }
 0x391   : > { %2968 = vmatmul.bf16.gmra.mxu0 %v5375_v12  ;;  %3017 = vmatmul.bf16.gmra.mxu1 %v5379_v13  ;;  %v2678_v12 = vadd.f32 %v5957_v7, %v5984_v50  ;;  %v2681_v7 = vadd.f32 %v5965_v28, %v5984_v50 }
 0x392   : > { %3066 = vmatmul.bf16.gmra.mxu2 %v5381_v25 }
 0x393   : > { %v2724_v5 = vpop.f32.mrf.mxu3 }
 0x394   : > { %v2725_v14 = vadd.f32 %v2724_v5, %v2676_v59 }
 0x395   : > { %v2871_v22 = vpop.f32.mrf.mxu2 }
 0x396   : > { %v6087_v42 = vadd.f32 %v2773_v36, %v2725_v14  ;;  %v6089_v15 = vadd.f32 %v2871_v22, %v2823_v37  ;;  %v2775_v18 = vpop.f32.mrf.mxu0  ;;  %v2824_v62 = vpop.f32.mrf.mxu1 }
 0x397   : > { %v2825_v9 = vadd.f32 %v2824_v62, %v5987_v40 }
 0x39b   : > { %v2726_v13 = vpop.f32.mrf.mxu3 }
 0x39c   : > { %v2727_v8 = vadd.f32 %v2726_v13, %v2678_v12 }
 0x39d   : > { %v2873_v45 = vpop.f32.mrf.mxu2 }
 0x39e   : > { %v6094_v43 = vadd.f32 %v2775_v18, %v2727_v8  ;;  %v6096_v25 = vadd.f32 %v2873_v45, %v2825_v9  ;;  %v2778_v31 = vpop.f32.mrf.mxu0  ;;  %v2827_v10 = vpop.f32.mrf.mxu1 }
 0x39f   : > { %v2828_v54 = vadd.f32 %v2827_v10, %v5987_v40 }
 0x3a0   : > { %2924 = vmatmul.bf16.gmra.mxu3 %v5405_v57 }
 0x3a1   : > { %2973 = vmatmul.bf16.gmra.mxu0 %v5399_v48  ;;  %3022 = vmatmul.bf16.gmra.mxu1 %v5401_v52  ;;  %v2683_v48 = vadd.f32 %v5969_v60, %v5984_v50  ;;  %v2686_v60 = vadd.f32 %v5977_v2, %v5984_v50  ;;  %v6129_v2 = vld [vmem:[#allocation7 + $0x8] ss:$0 sm:$0xff] }
 0x3a2   : > { %3071 = vmatmul.bf16.gmra.mxu2 %v5405_v57 }
 0x3a3   : > { %v2729_v61 = vpop.f32.mrf.mxu3 }
 0x3a4   : > { %v2730_v4 = vadd.f32 %v2729_v61, %v2681_v7 }
 0x3a5   : > { %v2876_v20 = vpop.f32.mrf.mxu2 }
 0x3a6   : > { %v6105_v0 = vadd.f32 %v2778_v31, %v2730_v4  ;;  %v6107_v26 = vadd.f32 %v2876_v20, %v2828_v54  ;;  %v2780_v51 = vpop.f32.mrf.mxu0  ;;  %v2829_v55 = vpop.f32.mrf.mxu1 }
 0x3a7   : > { %v2830_v41 = vadd.f32 %v2829_v55, %v5987_v40 }
 0x3ab   : > { %v2731_v52 = vpop.f32.mrf.mxu3 }
 0x3ac   : > { %v2732_v28 = vadd.f32 %v2731_v52, %v2683_v48 }
 0x3ad   : > { %v2878_v49 = vpop.f32.mrf.mxu2 }
 0x3ae   : > { %v6112_v17 = vadd.f32 %v2780_v51, %v2732_v28  ;;  %v6114_v57 = vadd.f32 %v2878_v49, %v2830_v41  ;;  %v2783_v36 = vpop.f32.mrf.mxu0  ;;  %v2832_v63 = vpop.f32.mrf.mxu1 }
 0x3af   : > { %v2833_v59 = vadd.f32 %v2832_v63, %v5987_v40 }
 0x3b0   : > { %2929 = vmatmul.bf16.gmra.mxu3 %v5425_v33 }
 0x3b1   : > { %2978 = vmatmul.bf16.gmra.mxu0 %v5419_v34  ;;  %3027 = vmatmul.bf16.gmra.mxu1 %v5421_v29  ;;  %v2688_v34 = vadd.f32 %v5981_v19, %v5984_v50 }
 0x3b2   : > { %3076 = vmatmul.bf16.gmra.mxu2 %v5425_v33 }
 0x3b3   : > { %v2734_v37 = vpop.f32.mrf.mxu3 }
 0x3b4   : > { %v2735_v5 = vadd.f32 %v2734_v37, %v2686_v60 }
 0x3b5   : > { %v2881_v14 = vpop.f32.mrf.mxu2 }
 0x3b6   : > { %v6123_v22 = vadd.f32 %v2783_v36, %v2735_v5  ;;  %v6125_v18 = vadd.f32 %v2881_v14, %v2833_v59  ;;  %v2785_v62 = vpop.f32.mrf.mxu0  ;;  %v2834_v12 = vpop.f32.mrf.mxu1 }
 0x3b7   : > { %v2835_v33 = vadd.f32 %v2834_v12, %v5987_v40 }
 0x3bb   : > { %v2736_v29 = vpop.f32.mrf.mxu3 }
 0x3bc   : > { %v2737_v13 = vadd.f32 %v2736_v29, %v2688_v34 }
 0x3bd   : > { %v2883_v9 = vpop.f32.mrf.mxu2 }
 0x3be   : > { %v6134_v8 = vadd.f32 %v2785_v62, %v2737_v13  ;;  %v6136_v45 = vadd.f32 %v2883_v9, %v2835_v33  ;;  %v2944_v31 = vpop.f32.mrf.mxu0  ;;  %v2993_v10 = vpop.f32.mrf.mxu1 }
 0x3bf   : > { %v2945_v7 = vadd.f32 %v6129_v2, %v2944_v31 }
 0x3c1   : > { %v2994_v19 = vadd.f32 %v2993_v10, %v2945_v7 }
 0x3c3   : > { %v2895_v50 = vpop.f32.mrf.mxu3 }
 0x3c4   : > { %v2896_v40 = vadd.f32 %v2895_v50, %v5999_v35 }
 0x3c5   : > { %v3042_v54 = vpop.f32.mrf.mxu2 }
 0x3c6   : > { %4942 = shalt.err (!%p4939_p13)
}
 0x3c7   : > { %s5085_s9 = smov 192   ;;  %s5086_s10 = smov 12   ;;  %v3258_v35 = vpack.c.bf16 %v2896_v40, %v5997_v44  ;;  %v3043_v61 = vadd.f32 %v3042_v54, %v2994_v19  ;;  %v2946_v4 = vpop.f32.mrf.mxu0  ;;  %v2995_v20 = vpop.f32.mrf.mxu1 }
 0x3c8   : > { %4718 = dma.vmem_to_hbm [thread:$0]  (%p5210_p5), %s3369_s22, 3072, %s3371_s12, %s6148_s13, %s5085_s9, %s5085_s9, %s5086_s10   ;;  %v2947_v55 = vadd.f32 %v6129_v2, %v2946_v4 }
 0x3c9   : > { %s6348_s23 = sld [smem:[#allocation25_spill]]  ;;  %s6170_s21 = scalar_lea.vmem [#allocation11], %s5545_s1  ;;  %v3259_v51 = vpack.c.bf16 %v3043_v61, %v3043_v61 }
 0x3ca   : > { %3290 = vst [vmem:[%s6170_s21] sm:$0xff] %v3258_v35  ;;  %s3348_s8 = sshll.u32 %s5557_s3, 4  ;;  %s3323_s22 = scalar_lea.sflag [#allocation4], %s5233_s27  ;;  %s3349_s8 = int_to_ptr.vmem [resolvable:$true] %s3348_s8 }
 0x3cb   : > { %3291 = vst [vmem:[%s6170_s21 + $0x8] sm:$0xf] %v3259_v51  ;;  %v2897_v44 = vpop.f32.mrf.mxu3 }
 0x3cf   : > { %s6349_s29 = smov %s6348_s23  ;;  %s3347_s25 = scalar_lea.hbm %s6348_s23, %s6139_s28 }
 0x3d0   : > { %s3350_s6 = sshll.u32 %s3347_s25, 4  ;;  %s4963_s26 = scalar_lea.hbm %s6349_s29, 768  ;;  %s3351_s6 = int_to_ptr.hbm [resolvable:$true] %s3350_s6 }
 0x3d1   : > { %s4957_s12 = sshra.s32 %s3351_s6, 4  ;;  %s4958_s12 = int_to_ptr.hbm [resolvable:$true] %s4957_s12 }
 0x3d2   : > { %s4959_s14 = scalar_lea.hbm %s4958_s12, 192  ;;  %p4964_p9 = scmp.lt.s32.totalorder %s4958_s12, %s6349_s29 }
 0x3d3   : > { %p4960_p0 = scmp.ne.s32.totalorder %s4958_s12, %s4959_s14  ;;  %p4965_p10 = scmp.lt.s32.totalorder %s4963_s26, %s4959_s14 }
 0x3d5   : > { %p4961_p3 = pnand %p4960_p0, %p5210_p5  ;;  %p4966_p1 = por %p4965_p10, %p4964_p9 }
 0x3d7   : > { %p4962_p7 = pneg %p4961_p3 }
 0x3d9   : > { %p4967_p2 = pnand %p4966_p1, %p4962_p7 }
 0x3db   : > { %4970 = shalt.err (!%p4967_p2)
}
 0x3dc   : > { %4717 = dma.vmem_to_hbm [thread:$0]  (%p5210_p5), %s3349_s8, 3072, %s3351_s6, %s3323_s22, %s5085_s9, %s5085_s9, %s5086_s10   ;;  %v2996_v48 = vadd.f32 %v2995_v20, %v2947_v55  ;;  %v2898_v52 = vadd.f32 %v2897_v44, %v6006_v1  ;;  %v3044_v41 = vpop.f32.mrf.mxu2  ;;  %v2949_v36 = vpop.f32.mrf.mxu0 }
 0x3dd   : > { %v2998_v63 = vpop.f32.mrf.mxu1  ;;  %v2950_v60 = vadd.f32 %v6129_v2, %v2949_v36  ;;  %v2900_v5 = vpop.f32.mrf.mxu3  ;;  %s6350_s7 = sld [smem:[#allocation26_spill]]  ;;  %s3388_s18 = sshll.u32 %s6170_s21, 4  ;;  %s3389_s18 = int_to_ptr.vmem [resolvable:$true] %s3388_s18 }
 0x3de   : > { %v3260_v28 = vpack.c.bf16 %v2898_v52, %v6004_v53  ;;  %v3045_v49 = vadd.f32 %v3044_v41, %v2996_v48  ;;  %v2901_v14 = vadd.f32 %v2900_v5, %v6017_v3 }
 0x3df   : > { %v2999_v37 = vadd.f32 %v2998_v63, %v2950_v60 }
 0x3e0   : > { %3292 = vst [vmem:[%s6170_s21 + $0xc] sm:$0xff] %v3260_v28  ;;  %v3261_v59 = vpack.c.bf16 %v3045_v49, %v3045_v49  ;;  %v3262_v1 = vpack.c.bf16 %v2901_v14, %v6015_v58 }
 0x3e2   : > { %3293 = vst [vmem:[%s6170_s21 + $0x14] sm:$0xf] %v3261_v59 }
 0x3e3   : > { %3294 = vst [vmem:[%s6170_s21 + $0x18] sm:$0xff] %v3262_v1  ;;  %s3387_s30 = scalar_lea.hbm %s6350_s7, %s6139_s28  ;;  %s4991_s6 = scalar_lea.hbm %s6350_s7, 768 }
 0x3e4   : > { %v3047_v62 = vpop.f32.mrf.mxu2  ;;  %v2951_v53 = vpop.f32.mrf.mxu0  ;;  %s3390_s5 = sshll.u32 %s3387_s30, 4  ;;  %s3391_s5 = int_to_ptr.hbm [resolvable:$true] %s3390_s5 }
 0x3e5   : > { %v3048_v12 = vadd.f32 %v3047_v62, %v2999_v37  ;;  %v3000_v34 = vpop.f32.mrf.mxu1  ;;  %v2952_v33 = vadd.f32 %v6129_v2, %v2951_v53  ;;  %v2902_v13 = vpop.f32.mrf.mxu3  ;;  %s4985_s23 = sshra.s32 %s3391_s5, 4  ;;  %s4986_s23 = int_to_ptr.hbm [resolvable:$true] %s4985_s23 }
 0x3e6   : > { %v2903_v31 = vadd.f32 %v2902_v13, %v6024_v30  ;;  %s4987_s28 = scalar_lea.hbm %s4986_s23, 192  ;;  %p4992_p12 = scmp.lt.s32.totalorder %s4986_s23, %s6350_s7 }
 0x3e7   : > { %v3263_v29 = vpack.c.bf16 %v3048_v12, %v3048_v12  ;;  %v3001_v9 = vadd.f32 %v3000_v34, %v2952_v33  ;;  %p4988_p4 = scmp.ne.s32.totalorder %s4986_s23, %s4987_s28  ;;  %p4993_p13 = scmp.lt.s32.totalorder %s4991_s6, %s4987_s28 }
 0x3e8   : > { %v3264_v3 = vpack.c.bf16 %v2903_v31, %v6022_v11 }
 0x3e9   : > { %3295 = vst [vmem:[%s6170_s21 + $0x20] sm:$0xf] %v3263_v29  ;;  %p4989_p8 = pnand %p4988_p4, %p5210_p5  ;;  %p4994_p0 = por %p4993_p13, %p4992_p12 }
 0x3ea   : > { %3296 = vst [vmem:[%s6170_s21 + $0x24] sm:$0xff] %v3264_v3 }
 0x3eb   : > { %p4990_p11 = pneg %p4989_p8 }
 0x3ec   : > { %v3049_v10 = vpop.f32.mrf.mxu2  ;;  %v2954_v58 = vpop.f32.mrf.mxu0 }
 0x3ed   : > { %v3050_v7 = vadd.f32 %v3049_v10, %v3001_v9  ;;  %v3003_v19 = vpop.f32.mrf.mxu1  ;;  %v2955_v50 = vadd.f32 %v6129_v2, %v2954_v58  ;;  %v2905_v35 = vpop.f32.mrf.mxu3  ;;  %p4995_p3 = pnand %p4994_p0, %p4990_p11 }
 0x3ee   : > { %v2906_v61 = vadd.f32 %v2905_v35, %v6035_v46 }
 0x3ef   : > { %v3265_v40 = vpack.c.bf16 %v3050_v7, %v3050_v7  ;;  %v3004_v54 = vadd.f32 %v3003_v19, %v2955_v50 }
 0x3f0   : > { %v3266_v30 = vpack.c.bf16 %v2906_v61, %v6033_v6 }
 0x3f1   : > { %3297 = vst [vmem:[%s6170_s21 + $0x2c] sm:$0xf] %v3265_v40 }
 0x3f2   : > { %3298 = vst [vmem:[%s6170_s21 + $0x30] sm:$0xff] %v3266_v30 }
 0x3f4   : > { %v3052_v4 = vpop.f32.mrf.mxu2  ;;  %v2956_v11 = vpop.f32.mrf.mxu0 }
 0x3f5   : > { %v3053_v20 = vadd.f32 %v3052_v4, %v3004_v54  ;;  %v3005_v51 = vpop.f32.mrf.mxu1  ;;  %v2957_v44 = vadd.f32 %v6129_v2, %v2956_v11  ;;  %v2907_v48 = vpop.f32.mrf.mxu3 }
 0x3f6   : > { %v2908_v41 = vadd.f32 %v2907_v48, %v6042_v39 }
 0x3f7   : > { %v3267_v55 = vpack.c.bf16 %v3053_v20, %v3053_v20  ;;  %v3006_v52 = vadd.f32 %v3005_v51, %v2957_v44 }
 0x3f8   : > { %v3268_v46 = vpack.c.bf16 %v2908_v41, %v6040_v23 }
 0x3f9   : > { %3299 = vst [vmem:[%s6170_s21 + $0x38] sm:$0xf] %v3267_v55 }
 0x3fa   : > { %3300 = vst [vmem:[%s6170_s21 + $0x3c] sm:$0xff] %v3268_v46 }
 0x3fc   : > { %v3054_v28 = vpop.f32.mrf.mxu2  ;;  %v2959_v6 = vpop.f32.mrf.mxu0 }
 0x3fd   : > { %v3055_v49 = vadd.f32 %v3054_v28, %v3006_v52  ;;  %v3008_v36 = vpop.f32.mrf.mxu1  ;;  %v2960_v63 = vadd.f32 %v6129_v2, %v2959_v6  ;;  %v2910_v37 = vpop.f32.mrf.mxu3 }
 0x3fe   : > { %v2911_v5 = vadd.f32 %v2910_v37, %v6053_v47 }
 0x3ff   : > { %v3269_v60 = vpack.c.bf16 %v3055_v49, %v3055_v49  ;;  %v3009_v59 = vadd.f32 %v3008_v36, %v2960_v63 }
 0x400   : > { %v3270_v39 = vpack.c.bf16 %v2911_v5, %v6051_v16 }
 0x401   : > { %3301 = vst [vmem:[%s6170_s21 + $0x44] sm:$0xf] %v3269_v60 }
 0x402   : > { %3302 = vst [vmem:[%s6170_s21 + $0x48] sm:$0xff] %v3270_v39 }
 0x404   : > { %v3057_v14 = vpop.f32.mrf.mxu2  ;;  %v2961_v23 = vpop.f32.mrf.mxu0 }
 0x405   : > { %v3058_v62 = vadd.f32 %v3057_v14, %v3009_v59  ;;  %v3010_v1 = vpop.f32.mrf.mxu1  ;;  %v2962_v53 = vadd.f32 %v6129_v2, %v2961_v23  ;;  %v2912_v34 = vpop.f32.mrf.mxu3 }
 0x406   : > { %v2913_v33 = vadd.f32 %v2912_v34, %v6060_v21 }
 0x407   : > { %v3271_v12 = vpack.c.bf16 %v3058_v62, %v3058_v62  ;;  %v3011_v29 = vadd.f32 %v3010_v1, %v2962_v53 }
 0x408   : > { %v3272_v47 = vpack.c.bf16 %v2913_v33, %v6058_v24 }
 0x409   : > { %3303 = vst [vmem:[%s6170_s21 + $0x50] sm:$0xf] %v3271_v12 }
 0x40a   : > { %3304 = vst [vmem:[%s6170_s21 + $0x54] sm:$0xff] %v3272_v47 }
 0x40c   : > { %v3059_v13 = vpop.f32.mrf.mxu2  ;;  %v2964_v16 = vpop.f32.mrf.mxu0 }
 0x40d   : > { %v3060_v9 = vadd.f32 %v3059_v13, %v3011_v29  ;;  %v3013_v31 = vpop.f32.mrf.mxu1  ;;  %v2965_v10 = vadd.f32 %v6129_v2, %v2964_v16  ;;  %v2915_v58 = vpop.f32.mrf.mxu3 }
 0x40e   : > { %v2916_v19 = vadd.f32 %v2915_v58, %v6071_v38 }
 0x40f   : > { %v3273_v3 = vpack.c.bf16 %v3060_v9, %v3060_v9  ;;  %v3014_v7 = vadd.f32 %v3013_v31, %v2965_v10 }
 0x410   : > { %v3274_v21 = vpack.c.bf16 %v2916_v19, %v6069_v32 }
 0x411   : > { %3305 = vst [vmem:[%s6170_s21 + $0x5c] sm:$0xf] %v3273_v3 }
 0x412   : > { %3306 = vst [vmem:[%s6170_s21 + $0x60] sm:$0xff] %v3274_v21 }
 0x414   : > { %v3062_v50 = vpop.f32.mrf.mxu2  ;;  %v2966_v24 = vpop.f32.mrf.mxu0 }
 0x415   : > { %v3063_v40 = vadd.f32 %v3062_v50, %v3014_v7  ;;  %v3015_v54 = vpop.f32.mrf.mxu1  ;;  %v2967_v61 = vadd.f32 %v6129_v2, %v2966_v24  ;;  %v2917_v4 = vpop.f32.mrf.mxu3 }
 0x416   : > { %v2918_v20 = vadd.f32 %v2917_v4, %v6078_v56 }
 0x417   : > { %v3275_v35 = vpack.c.bf16 %v3063_v40, %v3063_v40  ;;  %v3016_v30 = vadd.f32 %v3015_v54, %v2967_v61 }
 0x418   : > { %v3276_v38 = vpack.c.bf16 %v2918_v20, %v6076_v27 }
 0x419   : > { %3307 = vst [vmem:[%s6170_s21 + $0x68] sm:$0xf] %v3275_v35 }
 0x41a   : > { %3308 = vst [vmem:[%s6170_s21 + $0x6c] sm:$0xff] %v3276_v38 }
 0x41c   : > { %v3064_v11 = vpop.f32.mrf.mxu2  ;;  %v2969_v32 = vpop.f32.mrf.mxu0 }
 0x41d   : > { %v3065_v51 = vadd.f32 %v3064_v11, %v3016_v30  ;;  %v3018_v55 = vpop.f32.mrf.mxu1  ;;  %v2970_v44 = vadd.f32 %v6129_v2, %v2969_v32  ;;  %v2920_v41 = vpop.f32.mrf.mxu3 }
 0x41e   : > { %v2921_v28 = vadd.f32 %v2920_v41, %v6089_v15 }
 0x41f   : > { %v3277_v48 = vpack.c.bf16 %v3065_v51, %v3065_v51  ;;  %v3019_v52 = vadd.f32 %v3018_v55, %v2970_v44 }
 0x420   : > { %v3278_v56 = vpack.c.bf16 %v2921_v28, %v6087_v42 }
 0x421   : > { %3309 = vst [vmem:[%s6170_s21 + $0x74] sm:$0xf] %v3277_v48 }
 0x422   : > { %3310 = vst [vmem:[%s6170_s21 + $0x78] sm:$0xff] %v3278_v56 }
 0x424   : > { %v3067_v46 = vpop.f32.mrf.mxu2  ;;  %v2971_v27 = vpop.f32.mrf.mxu0 }
 0x425   : > { %v3068_v49 = vadd.f32 %v3067_v46, %v3019_v52  ;;  %v3020_v6 = vpop.f32.mrf.mxu1  ;;  %v2972_v63 = vadd.f32 %v6129_v2, %v2971_v27  ;;  %v2922_v60 = vpop.f32.mrf.mxu3 }
 0x426   : > { %v2923_v37 = vadd.f32 %v2922_v60, %v6096_v25 }
 0x427   : > { %v3279_v36 = vpack.c.bf16 %v3068_v49, %v3068_v49  ;;  %v3021_v59 = vadd.f32 %v3020_v6, %v2972_v63 }
 0x428   : > { %v3280_v15 = vpack.c.bf16 %v2923_v37, %v6094_v43 }
 0x429   : > { %3311 = vst [vmem:[%s6170_s21 + $0x80] sm:$0xf] %v3279_v36 }
 0x42a   : > { %3312 = vst [vmem:[%s6170_s21 + $0x84] sm:$0xff] %v3280_v15 }
 0x42c   : > { %v3069_v5 = vpop.f32.mrf.mxu2  ;;  %v2974_v42 = vpop.f32.mrf.mxu0 }
 0x42d   : > { %v3070_v14 = vadd.f32 %v3069_v5, %v3021_v59  ;;  %v3023_v39 = vpop.f32.mrf.mxu1  ;;  %v2975_v62 = vadd.f32 %v6129_v2, %v2974_v42  ;;  %v2925_v12 = vpop.f32.mrf.mxu3 }
 0x42e   : > { %v2926_v53 = vadd.f32 %v2925_v12, %v6107_v26 }
 0x42f   : > { %v3281_v23 = vpack.c.bf16 %v3070_v14, %v3070_v14  ;;  %v3024_v1 = vadd.f32 %v3023_v39, %v2975_v62 }
 0x430   : > { %v3282_v25 = vpack.c.bf16 %v2926_v53, %v6105_v0 }
 0x431   : > { %3313 = vst [vmem:[%s6170_s21 + $0x8c] sm:$0xf] %v3281_v23 }
 0x432   : > { %3314 = vst [vmem:[%s6170_s21 + $0x90] sm:$0xff] %v3282_v25 }
 0x434   : > { %v3072_v34 = vpop.f32.mrf.mxu2  ;;  %v2976_v43 = vpop.f32.mrf.mxu0 }
 0x435   : > { %v3073_v29 = vadd.f32 %v3072_v34, %v3024_v1  ;;  %v3025_v33 = vpop.f32.mrf.mxu1  ;;  %v2977_v47 = vadd.f32 %v6129_v2, %v2976_v43  ;;  %v2927_v9 = vpop.f32.mrf.mxu3 }
 0x436   : > { %v2928_v31 = vadd.f32 %v2927_v9, %v6114_v57 }
 0x437   : > { %v3283_v13 = vpack.c.bf16 %v3073_v29, %v3073_v29  ;;  %v3026_v16 = vadd.f32 %v3025_v33, %v2977_v47 }
 0x438   : > { %v3284_v26 = vpack.c.bf16 %v2928_v31, %v6112_v17 }
 0x439   : > { %3315 = vst [vmem:[%s6170_s21 + $0x98] sm:$0xf] %v3283_v13 }
 0x43a   : > { %3316 = vst [vmem:[%s6170_s21 + $0x9c] sm:$0xff] %v3284_v26 }
 0x43c   : > { %v3074_v10 = vpop.f32.mrf.mxu2  ;;  %v2979_v0 = vpop.f32.mrf.mxu0 }
 0x43d   : > { %v3075_v3 = vadd.f32 %v3074_v10, %v3026_v16  ;;  %v2980_v7 = vadd.f32 %v6129_v2, %v2979_v0  ;;  %v3028_v19 = vpop.f32.mrf.mxu1  ;;  %v2930_v21 = vpop.f32.mrf.mxu3 }
 0x43e   : > { %v2931_v40 = vadd.f32 %v2930_v21, %v6125_v18 }
 0x43f   : > { %v3285_v58 = vpack.c.bf16 %v3075_v3, %v3075_v3  ;;  %v3029_v50 = vadd.f32 %v3028_v19, %v2980_v7 }
 0x440   : > { %v3286_v24 = vpack.c.bf16 %v2931_v40, %v6123_v22 }
 0x441   : > { %3317 = vst [vmem:[%s6170_s21 + $0xa4] sm:$0xf] %v3285_v58 }
 0x442   : > { %3318 = vst [vmem:[%s6170_s21 + $0xa8] sm:$0xff] %v3286_v24 }
 0x444   : > { %v3077_v57 = vpop.f32.mrf.mxu2  ;;  %v2981_v17 = vpop.f32.mrf.mxu0 }
 0x445   : > { %v3078_v54 = vadd.f32 %v3077_v57, %v3029_v50  ;;  %v2982_v61 = vadd.f32 %v6129_v2, %v2981_v17  ;;  %v3030_v4 = vpop.f32.mrf.mxu1  ;;  %v2932_v30 = vpop.f32.mrf.mxu3 }
 0x446   : > { %v2933_v20 = vadd.f32 %v2932_v30, %v6136_v45 }
 0x447   : > { %v3287_v35 = vpack.c.bf16 %v3078_v54, %v3078_v54  ;;  %v3031_v18 = vadd.f32 %v3030_v4, %v2982_v61 }
 0x448   : > { %v3288_v11 = vpack.c.bf16 %v2933_v20, %v6134_v8 }
 0x449   : > { %3319 = vst [vmem:[%s6170_s21 + $0xb0] sm:$0xf] %v3287_v35 }
 0x44a   : > { %3320 = vst [vmem:[%s6170_s21 + $0xb4] sm:$0xff] %v3288_v11 }
 0x44c   : > { %v3079_v22 = vpop.f32.mrf.mxu2 }
 0x44d   : > { %v3080_v38 = vadd.f32 %v3079_v22, %v3031_v18 }
 0x44f   : > { %v3289_v2 = vpack.c.bf16 %v3080_v38, %v3080_v38 }
 0x451   : > { %3321 = vst [vmem:[%s6170_s21 + $0xbc] sm:$0xf] %v3289_v2 }
 0x452   : > { %4998 = shalt.err (!%p4995_p3)
}
 0x453   : > { %4719 = dma.vmem_to_hbm [thread:$0]  (%p5210_p5), %s3389_s18, 3072, %s3391_s5, %s6148_s13, %s5085_s9, %s5085_s9, %s5086_s10  }
 0x454 PF: > { %s6351_s21 = sld [smem:[#allocation18_spill]] }
 0x455   : > { %s6352_s14 = sld [smem:[#allocation16_spill]] }
 0x45a   : > { %p4749_p7 = scmp.ge.s32.totalorder %s6351_s21, 2 }
 0x45b   : > { %s3405_s15 = sand.u32 1, %s6352_s14  }
 0x45c   : > { %p4735_p9 = pnand %p4749_p7, %p5174_p6  ;;  %s3406_s26 = scalar_lea.sflag [#allocation4], %s3405_s15 }
 0x45e   : > { %p4736_p10 = pneg %p4735_p9 }
 0x460   : > { %5040 = dma.done.wait (%p4736_p10), %s3406_s26, 3072  }
 0x461   : > { %5042 = vsyncadd (%p4736_p10), %s3406_s26, 4294964224  ;;  %s6354_s16 = sadd.s32 4294967294, %s6351_s21  }
 0x462   : > { %s3415_s11 = sand.u32 1, %s6354_s16  }
 0x463   : > { %s3416_s17 = scalar_lea.sflag [#allocation10], %s3415_s11 }
 0x464   : > { %5044 = dma.done.wait (%p4736_p10), %s3416_s17, 6144  }
 0x465   : > { %5046 = vsyncadd (%p4736_p10), %s3416_s17, 4294961152  ;;  %s26_s25 = sadd.s32 1, %s6351_s21   ;;  %s6355_s21 = sld [smem:[#allocation17_spill]] }
 0x466   : > { %p23_p5 = scmp.ge.s32.totalorder %s26_s25, 6   ;;  %s6356_s23 = sld [smem:[#allocation20_spill]] }
 0x467   : > { %s6357_s13 = sld [smem:[#allocation21_spill]]  ;;  %s6358_s18 = smov %s5053_s19 }
 0x468   : > { %s6359_s19 = smov %s5057_s20  ;;  %s6360_s20 = smov %s5225_s2 }
 0x469   : > { %s6361_s22 = smov %s5073_s24  ;;  %25 = sbr.rel (!%p23_p5) target bundleno = 15 (0xf), region = 117 }
 0x46d   : > { %s6362_s24 = smov %s6357_s13 }
 0x46e   :  { %3432 = vsyncpa [#allocation3], 1 }
 0x46f   :  { %3434 = vsyncpa [#allocation3 + $0x1], 1 }
 0x470   :  { %3435 = vsyncpa [#allocation6], 1 }
 0x471   :  { %3436 = vsyncpa [#allocation4], 1 }
 0x472   :  { %3438 = vsyncpa [#allocation4 + $0x1], 1 }
 0x473   :  { %3439 = vsyncpa [#allocation10], 1 }
 0x474   :  { %3441 = vsyncpa [#allocation10 + $0x1], 1 }

</bundles_post_ra>
